<compile_context>
chip_gen: v7x
topology: tpu7x:2x2x1
jax: 0.10.0
libtpu: 0.0.40
codegen_flags: <defaults>
</compile_context>

<pallas_src>
from functools import lru_cache

import numpy as np
import jax
import jax.numpy as jnp
from jax.experimental import pallas as pl
from jax.experimental.pallas import tpu as pltpu


_INV_SQRT2 = 0.7071067811865476
_NEVER = object()     # sentinel: tap is never valid (skip at trace time)


# ----------------------------------------------------------------------------
# Hardware-aware budgets
# ----------------------------------------------------------------------------
@lru_cache(maxsize=1)
def _vmem_capacity_bytes():
    try:
        return int(pltpu.get_tpu_info().vmem_capacity_bytes)
    except Exception:
        return 64 * 1024 * 1024          # conservative (v7x per-TensorCore VMEM)


def _vmem_limit_bytes():
    return int(min(_vmem_capacity_bytes() * 3 // 4, 96 * 1024 * 1024))


# ----------------------------------------------------------------------------
# GELU: exact erf when it lowers through Mosaic, f32-accurate polynomial else
# ----------------------------------------------------------------------------
@lru_cache(maxsize=1)
def _erf_lowers_in_mosaic():
    def k(x_ref, o_ref):
        o_ref[...] = jax.lax.erf(x_ref[...])
    try:
        y = pl.pallas_call(
            k, out_shape=jax.ShapeDtypeStruct((8, 128), jnp.float32)
        )(jnp.zeros((8, 128), jnp.float32))
        jax.block_until_ready(y)
        return True
    except Exception:
        return False


def _erf_poly(x):
    # Abramowitz & Stegun 7.1.26, |err| < 1.5e-7 (effectively f32-exact).
    a1, a2, a3, a4, a5 = (0.254829592, -0.284496736, 1.421413741,
                          -1.453152027, 1.061405429)
    pc = 0.3275911
    z = jnp.abs(x)
    t = 1.0 / (1.0 + pc * z)
    poly = ((((a5 * t + a4) * t + a3) * t + a2) * t + a1) * t
    r = 1.0 - poly * jnp.exp(-z * z)
    return jnp.where(x >= 0, r, -r)


def _make_gelu(exact_erf):
    if exact_erf:
        def gelu(x):
            return 0.5 * x * (1.0 + jax.lax.erf(x * _INV_SQRT2))
    else:
        # TODO(synk): lax.erf did not lower through Mosaic on this backend; using a
        # 1.5e-7-accurate polynomial erf (last-ulp difference vs torch.nn.GELU()).
        def gelu(x):
            return 0.5 * x * (1.0 + _erf_poly(x * _INV_SQRT2))
    return gelu


# ----------------------------------------------------------------------------
# Pallas kernel 1: fused Inception-conv -> GELU -> Inception-conv (per period)
# ----------------------------------------------------------------------------
def make_conv_gelu_conv_kernel(H, W, K, R, cin, cmid, cout, gelu, compute_dtype):
    """R = bt*H*W rows per grid step; the bt images are packed back-to-back."""
    p = K // 2
    pwp = p * W + p
    base = ((pwp + 7) // 8) * 8          # 8-aligned start of the live image slab
    Lb = base + R + pwp                  # scratch rows needed for all tap slices

    def kernel(x_ref, h_ref, wi_ref, w1_ref, b1_ref, w2_ref, b2_ref,
               o_ref, xp_ref, hp_ref):
        h_idx = h_ref[...]               # (R, 1) int32: row index within image
        w_idx = wi_ref[...]              # (R, 1) int32: col index within image

        # ---- hoisted validity masks, shared by both convs (K row + K col) ----
        row_m, col_m = [], []
        for d in range(K):
            sh = d - p
            if sh == 0:
                row_m.append(None)
            elif sh >= H or -sh >= H:
                row_m.append(_NEVER)
            else:
                hh = h_idx + sh
                row_m.append(jnp.logical_and(hh >= 0, hh < H))
            if sh == 0:
                col_m.append(None)
            elif sh >= W or -sh >= W:
                col_m.append(_NEVER)
            else:
                ww = w_idx + sh
                col_m.append(jnp.logical_and(ww >= 0, ww < W))

        def conv_block(src_ref, w_ref, bias, c_in):
            # src_ref: (Lb, c_in) padded slab (halo garbage, masked);
            # w_ref: (K*K*c_in, c_out) fused Inception weights.
            acc = None
            for dh in range(K):
                rm = row_m[dh]
                if rm is _NEVER:
                    continue
                for dw in range(K):
                    cm = col_m[dw]
                    if cm is _NEVER:
                        continue
                    start = base - pwp + dh * W + dw
                    patch = src_ref[start:start + R, :]
                    if rm is None:
                        m = cm
                    elif cm is None:
                        m = rm
                    else:
                        m = jnp.logical_and(rm, cm)
                    if m is not None:
                        patch = jnp.where(m, patch, 0)
                    t = dh * K + dw
                    part = jnp.dot(patch, w_ref[t * c_in:(t + 1) * c_in, :],
                                   preferred_element_type=jnp.float32)
                    acc = part if acc is None else acc + part
            return acc + bias

        # Stage this step's (R, cin) image slab into the padded scratch layout.
        # Halo rows stay garbage; they are never read unmasked (row/col masks),
        # so no per-step zeroing and no wrapper-side HBM padding pass.
        xp_ref[base:base + R, :] = x_ref[0]

        act = gelu(conv_block(xp_ref, w1_ref, b1_ref[...], cin))    # (R, cmid) f32
        hp_ref[base:base + R, :] = act.astype(compute_dtype)
        out = conv_block(hp_ref, w2_ref, b2_ref[...], cmid)         # (R, cout) f32
        o_ref[0] = out.astype(o_ref.dtype)

    return kernel, Lb


def fused_inception_gelu_inception(x_flat, w1r, b1r, w2r, b2r, *, H, W, K,
                                   gelu, compute_dtype):
    """Fused Inception conv(w1) -> GELU -> Inception conv(w2), zero 'same' pad.

    x_flat: (B, H*W, Cin), row-major (H, W) flattened, already in compute_dtype.
    Returns (B, H*W, Cout) f32.  Assumes the fused (K*K*Cin, C) weights fit in
    VMEM (true for typical TimesNet d_model / d_ff)."""
    B, HW, Cin = x_flat.shape
    assert HW == H * W
    Cmid = w1r.shape[1]
    Cout = w2r.shape[1]

    elt = 2 if compute_dtype == jnp.bfloat16 else 4
    per_img = HW * (3 * Cin * elt + Cmid * elt + 8 * Cout + 4 * Cmid
                    + 3 * max(Cin, Cmid) * elt)
    budget = max(2 * 1024 * 1024, _vmem_capacity_bytes() // 6)
    # TODO(synk): on v7x (2 TensorCores) prefer an even number of grid steps so
    # dimension_semantics=('parallel',) can shard the batch across both cores.
    bt = max(1, min(B, budget // max(per_img, 1), max(1, 2048 // HW)))
    Bp = ((B + bt - 1) // bt) * bt        # handle non-divisor batch sizes
    if Bp != B:
        x_flat = jnp.pad(x_flat, ((0, Bp - B), (0, 0), (0, 0)))
    R = bt * HW
    xg = x_flat.reshape(Bp // bt, R, Cin)

    # Static per-row (h, w) coordinates passed as tiny inputs so the kernel
    # never needs vector integer div/mod.
    f = np.arange(R) % HW
    h_idx = jnp.asarray((f // W).reshape(R, 1), jnp.int32)
    w_idx = jnp.asarray((f % W).reshape(R, 1), jnp.int32)

    kernel, Lb = make_conv_gelu_conv_kernel(H, W, K, R, Cin, Cmid, Cout,
                                            gelu, compute_dtype)
    out = pl.pallas_call(
        kernel,
        out_shape=jax.ShapeDtypeStruct((Bp // bt, R, Cout), jnp.float32),
        grid=(Bp // bt,),
        in_specs=[
            pl.BlockSpec((1, R, Cin), lambda i: (i, 0, 0)),
            pl.BlockSpec((R, 1), lambda i: (0, 0)),
            pl.BlockSpec((R, 1), lambda i: (0, 0)),
            pl.BlockSpec((K * K * Cin, Cmid), lambda i: (0, 0)),
            pl.BlockSpec((1, Cmid), lambda i: (0, 0)),
            pl.BlockSpec((K * K * Cmid, Cout), lambda i: (0, 0)),
            pl.BlockSpec((1, Cout), lambda i: (0, 0)),
        ],
        out_specs=pl.BlockSpec((1, R, Cout), lambda i: (i, 0, 0)),
        scratch_shapes=[pltpu.VMEM((Lb, Cin), compute_dtype),
                        pltpu.VMEM((Lb, Cmid), compute_dtype)],
        compiler_params=pltpu.CompilerParams(
            dimension_semantics=("parallel",),
            vmem_limit_bytes=_vmem_limit_bytes(),
        ),
    )(xg, h_idx, w_idx, w1r, b1r, w2r, b2r)
    out = out.reshape(Bp, HW, Cout)
    return out[:B] if Bp != B else out


# ----------------------------------------------------------------------------
# Pallas kernel 2: weighted sum over k periods + residual (lane-dense blocks)
# softmax over period weights is done exactly in plain JAX (tiny (B, k) array)
# ----------------------------------------------------------------------------
def make_combine_kernel(k):
    def kernel(w_ref, x_ref, *rest):
        res_refs = rest[:k]
        o_ref = rest[k]
        w = w_ref[...]                                    # (B, k) f32, softmaxed
        acc = x_ref[...].astype(jnp.float32)              # residual
        for i in range(k):
            acc = acc + res_refs[i][...] * w[:, i:i + 1]
        o_ref[...] = acc.astype(o_ref.dtype)
    return kernel


def combine(period_weight, x, res_list):
    B, T, N = x.shape
    k = len(res_list)
    TN = T * N
    x_flat = x.reshape(B, TN)
    res_flat = [r.astype(jnp.float32).reshape(B, TN) for r in res_list]
    pw = jax.nn.softmax(period_weight.astype(jnp.float32), axis=1)   # exact

    budget = max(4 * 1024 * 1024, _vmem_capacity_bytes() // 4)
    tile = TN
    if 2 * (k + 2) * B * TN * 4 > budget:
        tile = max(128, (budget // (2 * (k + 2) * B * 4)) // 128 * 128)
        tile = min(tile, TN)
    grid = (pl.cdiv(TN, tile),)

    out = pl.pallas_call(
        make_combine_kernel(k),
        out_shape=jax.ShapeDtypeStruct((B, TN), x.dtype),
        grid=grid,
        in_specs=[pl.BlockSpec((B, k), lambda j: (0, 0)),
                  pl.BlockSpec((B, tile), lambda j: (0, j))]
                 + [pl.BlockSpec((B, tile), lambda j: (0, j)) for _ in range(k)],
        out_specs=pl.BlockSpec((B, tile), lambda j: (0, j)),
        compiler_params=pltpu.CompilerParams(
            dimension_semantics=("parallel",),
            vmem_limit_bytes=_vmem_limit_bytes(),
        ),
    )(pw, x_flat, *res_flat)
    return out.reshape(B, T, N)


# ----------------------------------------------------------------------------
# Plain-JAX glue: FFT period detection (data-dependent shapes -> host ints)
# ----------------------------------------------------------------------------
def fft_for_period(x, k):
    B, T, N = x.shape
    xf = jnp.fft.rfft(x, axis=1)
    amp = jnp.abs(xf)                               # (B, T//2+1, N)
    freq = amp.mean(axis=0).mean(axis=-1)           # (T//2+1,)
    freq = freq.at[0].set(0.0)
    _, top = jax.lax.top_k(freq, k)
    # TODO(synk): data-dependent periods force a host sync and a fresh Mosaic
    # compile per new (H, W); bucket periods to canonical shapes for reuse.
    top = np.asarray(jax.device_get(top))
    period = T // np.maximum(top, 1)
    period_weight = amp.mean(axis=-1)[:, top]       # (B, k)
    return period, period_weight


# ----------------------------------------------------------------------------
# Parameter init: fuse Inception_Block_V1 (num_kernels convs) into one KxK conv
# (zero-embedding smaller kernels in the KxK grid is exact for zero 'same' pad)
# ----------------------------------------------------------------------------
def init_fused_inception(key, cin, cout, num_kernels):
    kmax = 2 * (num_kernels - 1) + 1
    w_f = jnp.zeros((kmax, kmax, cin, cout), jnp.float32)
    b_f = jnp.zeros((cout,), jnp.float32)
    for i in range(num_kernels):
        ksz = 2 * i + 1
        key, kw, kb = jax.random.split(key, 3)
        fan_in = cin * ksz * ksz
        w = jax.random.normal(kw, (ksz, ksz, cin, cout), jnp.float32) * np.sqrt(2.0 / fan_in)
        b = jax.random.normal(kb, (cout,), jnp.float32) * 0.02
        off = (kmax - ksz) // 2
        w_f = w_f.at[off:off + ksz, off:off + ksz, :, :].add(w)
        b_f = b_f + b
    return w_f / num_kernels, b_f / num_kernels


# ----------------------------------------------------------------------------
# TimesBlock forward
# ----------------------------------------------------------------------------
def times_block_forward(x, params, seq_len, pred_len, top_k, *,
                        compute_dtype=jnp.bfloat16):
    B, T, N = x.shape
    total = seq_len + pred_len
    period_list, period_weight = fft_for_period(x, top_k)

    gelu = _make_gelu(_erf_lowers_in_mosaic())

    K = params["w1"].shape[0]
    Cmid = params["w1"].shape[3]
    Cout = params["w2"].shape[3]
    # fused Inception weights reshaped so each KxK tap is a (Cin, Cout) slice
    w1r = params["w1"].reshape(K * K * N, Cmid).astype(compute_dtype)
    w2r = params["w2"].reshape(K * K * Cmid, Cout).astype(compute_dtype)
    b1r = params["b1"].reshape(1, Cmid).astype(jnp.float32)
    b2r = params["b2"].reshape(1, Cout).astype(jnp.float32)

    xc = x.astype(compute_dtype)        # cast once, reused by every period

    res = []
    for i in range(top_k):
        period = max(1, int(period_list[i]))
        if total % period != 0:
            length = (total // period + 1) * period
            xin = jnp.pad(xc, ((0, 0), (0, length - total), (0, 0)))
        else:
            length = total
            xin = xc
        # NHWC view (B, H=length//period, W=period, C=N) is exactly the flat
        # (B, length, N) time-major layout, so no reshape/permute is needed.
        o = fused_inception_gelu_inception(
            xin, w1r, b1r, w2r, b2r, H=length // period, W=period, K=K,
            gelu=gelu, compute_dtype=compute_dtype)
        res.append(o[:, :total, :])

    return combine(period_weight, x, res)


if __name__ == "__main__":
    # configs: seq_len=16, forecast_horizon=0, top_k=2, d_model=16, d_ff=32, num_kernels=3
    B, seq_len, pred_len = 2, 16, 0
    d_model, d_ff, top_k, num_kernels = 16, 32, 2, 3
    T = seq_len + pred_len

    key = jax.random.PRNGKey(0)
    kx, k1, k2 = jax.random.split(key, 3)
    x = jax.random.normal(kx, (B, T, d_model), jnp.float32)

    w1, b1 = init_fused_inception(k1, d_model, d_ff, num_kernels)
    w2, b2 = init_fused_inception(k2, d_ff, d_model, num_kernels)
    params = {"w1": w1, "b1": b1, "w2": w2, "b2": b2}

    y = times_block_forward(x, params, seq_len, pred_len, top_k)
    y = jax.block_until_ready(y)
    assert y.shape == (B, T, d_model) and y.dtype == jnp.float32
    print("KERNEL_OK")
</pallas_src>

<mosaic_0001>
module attributes {stable_mosaic.version = 11 : i64} {
  func.func @k(%arg0: memref<8x128xf32, #tpu.memory_space<vmem>>, %arg1: memref<8x128xf32, #tpu.memory_space<vmem>>) attributes {dimension_semantics = [], scalar_prefetch = 0 : i64, scratch_operands = 0 : i64, tpu.core_type = #tpu.core_type<tc>} {
    %c0 = arith.constant 0 : index
    %c0_0 = arith.constant 0 : index
    %0 = vector.load %arg0[%c0, %c0_0] : memref<8x128xf32, #tpu.memory_space<vmem>>, vector<8x128xf32>
    %1 = math.erf %0 : vector<8x128xf32>
    %c0_1 = arith.constant 0 : index
    %c0_2 = arith.constant 0 : index
    %2 = vector.load %arg1[%c0_1, %c0_2] : memref<8x128xf32, #tpu.memory_space<vmem>>, vector<8x128xf32>
    tpu.vector_store %arg1[%c0_1, %c0_2], %1 {strides = array<i32>} : memref<8x128xf32, #tpu.memory_space<vmem>>, vector<8x128xf32>,
    return
  }
}

module attributes {stable_mosaic.version = 11 : i64} {
  func.func @kernel(%arg0: i32, %arg1: memref<1x32x16xbf16, #tpu.memory_space<vmem>>, %arg2: memref<32x1xi32, #tpu.memory_space<vmem>>, %arg3: memref<32x1xi32, #tpu.memory_space<vmem>>, %arg4: memref<400x32xbf16, #tpu.memory_space<vmem>>, %arg5: memref<1x32xf32, #tpu.memory_space<vmem>>, %arg6: memref<800x16xbf16, #tpu.memory_space<vmem>>, %arg7: memref<1x16xf32, #tpu.memory_space<vmem>>, %arg8: memref<1x32x16xf32, #tpu.memory_space<vmem>>, %arg9: memref<46x16xbf16, #tpu.memory_space<vmem>>, %arg10: memref<46x32xbf16, #tpu.memory_space<vmem>>) attributes {dimension_semantics = [#tpu.dimension_semantics<parallel>], iteration_bounds = array<i64: 1>, scalar_prefetch = 0 : i64, scratch_operands = 2 : i64, tpu.core_type = #tpu.core_type<tc>, window_params = [{transform_indices = @transform_0, window_bounds = array<i64: 1, 32, 16>}, {pipeline_mode = #tpu.pipeline_mode<synchronous>, transform_indices = @transform_1, window_bounds = array<i64: 32, 1>}, {pipeline_mode = #tpu.pipeline_mode<synchronous>, transform_indices = @transform_2, window_bounds = array<i64: 32, 1>}, {pipeline_mode = #tpu.pipeline_mode<synchronous>, transform_indices = @transform_3, window_bounds = array<i64: 400, 32>}, {pipeline_mode = #tpu.pipeline_mode<synchronous>, transform_indices = @transform_4, window_bounds = array<i64: 1, 32>}, {pipeline_mode = #tpu.pipeline_mode<synchronous>, transform_indices = @transform_5, window_bounds = array<i64: 800, 16>}, {pipeline_mode = #tpu.pipeline_mode<synchronous>, transform_indices = @transform_6, window_bounds = array<i64: 1, 16>}, {transform_indices = @transform_7, window_bounds = array<i64: 1, 32, 16>}]} {
    %c0 = arith.constant 0 : index
    %c0_0 = arith.constant 0 : index
    %0 = vector.load %arg2[%c0, %c0_0] : memref<32x1xi32, #tpu.memory_space<vmem>>, vector<32x1xi32>
    %c0_1 = arith.constant 0 : index
    %c0_2 = arith.constant 0 : index
    %1 = vector.load %arg3[%c0_1, %c0_2] : memref<32x1xi32, #tpu.memory_space<vmem>>, vector<32x1xi32>
    %c-2_i32 = arith.constant -2 : i32
    %2 = vector.broadcast %c-2_i32 : i32 to vector<32x1xi32>
    %3 = arith.addi %0, %2 : vector<32x1xi32>
    %c0_i32 = arith.constant 0 : i32
    %4 = vector.broadcast %c0_i32 : i32 to vector<32x1xi32>
    %5 = arith.cmpi sge, %3, %4 : vector<32x1xi32>
    %c8_i32 = arith.constant 8 : i32
    %6 = vector.broadcast %c8_i32 : i32 to vector<32x1xi32>
    %7 = arith.cmpi slt, %3, %6 : vector<32x1xi32>
    %8 = arith.andi %5, %7 : vector<32x1xi1>
    %c-1_i32 = arith.constant -1 : i32
    %9 = vector.broadcast %c-1_i32 : i32 to vector<32x1xi32>
    %10 = arith.addi %0, %9 : vector<32x1xi32>
    %c0_i32_3 = arith.constant 0 : i32
    %11 = vector.broadcast %c0_i32_3 : i32 to vector<32x1xi32>
    %12 = arith.cmpi sge, %10, %11 : vector<32x1xi32>
    %c8_i32_4 = arith.constant 8 : i32
    %13 = vector.broadcast %c8_i32_4 : i32 to vector<32x1xi32>
    %14 = arith.cmpi slt, %10, %13 : vector<32x1xi32>
    %15 = arith.andi %12, %14 : vector<32x1xi1>
    %c-1_i32_5 = arith.constant -1 : i32
    %16 = vector.broadcast %c-1_i32_5 : i32 to vector<32x1xi32>
    %17 = arith.addi %1, %16 : vector<32x1xi32>
    %c0_i32_6 = arith.constant 0 : i32
    %18 = vector.broadcast %c0_i32_6 : i32 to vector<32x1xi32>
    %19 = arith.cmpi sge, %17, %18 : vector<32x1xi32>
    %c2_i32 = arith.constant 2 : i32
    %20 = vector.broadcast %c2_i32 : i32 to vector<32x1xi32>
    %21 = arith.cmpi slt, %17, %20 : vector<32x1xi32>
    %22 = arith.andi %19, %21 : vector<32x1xi1>
    %c1_i32 = arith.constant 1 : i32
    %23 = vector.broadcast %c1_i32 : i32 to vector<32x1xi32>
    %24 = arith.addi %0, %23 : vector<32x1xi32>
    %c0_i32_7 = arith.constant 0 : i32
    %25 = vector.broadcast %c0_i32_7 : i32 to vector<32x1xi32>
    %26 = arith.cmpi sge, %24, %25 : vector<32x1xi32>
    %c8_i32_8 = arith.constant 8 : i32
    %27 = vector.broadcast %c8_i32_8 : i32 to vector<32x1xi32>
    %28 = arith.cmpi slt, %24, %27 : vector<32x1xi32>
    %29 = arith.andi %26, %28 : vector<32x1xi1>
    %c1_i32_9 = arith.constant 1 : i32
    %30 = vector.broadcast %c1_i32_9 : i32 to vector<32x1xi32>
    %31 = arith.addi %1, %30 : vector<32x1xi32>
    %c0_i32_10 = arith.constant 0 : i32
    %32 = vector.broadcast %c0_i32_10 : i32 to vector<32x1xi32>
    %33 = arith.cmpi sge, %31, %32 : vector<32x1xi32>
    %c2_i32_11 = arith.constant 2 : i32
    %34 = vector.broadcast %c2_i32_11 : i32 to vector<32x1xi32>
    %35 = arith.cmpi slt, %31, %34 : vector<32x1xi32>
    %36 = arith.andi %33, %35 : vector<32x1xi1>
    %c2_i32_12 = arith.constant 2 : i32
    %37 = vector.broadcast %c2_i32_12 : i32 to vector<32x1xi32>
    %38 = arith.addi %0, %37 : vector<32x1xi32>
    %c0_i32_13 = arith.constant 0 : i32
    %39 = vector.broadcast %c0_i32_13 : i32 to vector<32x1xi32>
    %40 = arith.cmpi sge, %38, %39 : vector<32x1xi32>
    %c8_i32_14 = arith.constant 8 : i32
    %41 = vector.broadcast %c8_i32_14 : i32 to vector<32x1xi32>
    %42 = arith.cmpi slt, %38, %41 : vector<32x1xi32>
    %43 = arith.andi %40, %42 : vector<32x1xi1>
    %c0_15 = arith.constant 0 : index
    %c0_16 = arith.constant 0 : index
    %c0_17 = arith.constant 0 : index
    %44 = vector.load %arg1[%c0_15, %c0_16, %c0_17] : memref<1x32x16xbf16, #tpu.memory_space<vmem>>, vector<1x32x16xbf16>
    %45 = vector.shape_cast %44 : vector<1x32x16xbf16> to vector<32x16xbf16>
    %c8 = arith.constant 8 : index
    %c0_18 = arith.constant 0 : index
    %46 = vector.load %arg9[%c8, %c0_18] : memref<46x16xbf16, #tpu.memory_space<vmem>>, vector<32x16xbf16>
    tpu.vector_store %arg9[%c8, %c0_18], %45 {strides = array<i32>} : memref<46x16xbf16, #tpu.memory_space<vmem>>, vector<32x16xbf16>,
    %c0_19 = arith.constant 0 : index
    %c0_20 = arith.constant 0 : index
    %47 = vector.load %arg5[%c0_19, %c0_20] : memref<1x32xf32, #tpu.memory_space<vmem>>, vector<1x32xf32>
    %c3 = arith.constant 3 : index
    %c0_21 = arith.constant 0 : index
    %48 = vector.load %arg9[%c3, %c0_21] : memref<46x16xbf16, #tpu.memory_space<vmem>>, vector<32x16xbf16>
    %49 = arith.andi %8, %22 : vector<32x1xi1>
    %c0_i32_22 = arith.constant 0 : i32
    %50 = arith.sitofp %c0_i32_22 : i32 to bf16
    %51 = vector.shape_cast %49 : vector<32x1xi1> to vector<32x1xi1>
    %52 = vector.broadcast %51 : vector<32x1xi1> to vector<32x16xi1>
    %53 = vector.broadcast %50 : bf16 to vector<32x16xbf16>
    %54 = arith.select %52, %48, %53 : vector<32x16xi1>, vector<32x16xbf16>
    %c16 = arith.constant 16 : index
    %c0_23 = arith.constant 0 : index
    %55 = vector.load %arg4[%c16, %c0_23] : memref<400x32xbf16, #tpu.memory_space<vmem>>, vector<16x32xbf16>
    %cst = arith.constant dense<0.000000e+00> : vector<32x32xf32>
    %56 = tpu.matmul %54, %55, %cst {dimension_numbers = #tpu.dot_dimension_numbers<[1], [0], [0], [1], [0, 0, 1, 1], [], []>} : vector<32x16xbf16>, vector<16x32xbf16>, vector<32x32xf32> -> vector<32x32xf32>
    %c4 = arith.constant 4 : index
    %c0_24 = arith.constant 0 : index
    %57 = vector.load %arg9[%c4, %c0_24] : memref<46x16xbf16, #tpu.memory_space<vmem>>, vector<32x16xbf16>
    %c0_i32_25 = arith.constant 0 : i32
    %58 = arith.sitofp %c0_i32_25 : i32 to bf16
    %59 = vector.shape_cast %8 : vector<32x1xi1> to vector<32x1xi1>
    %60 = vector.broadcast %59 : vector<32x1xi1> to vector<32x16xi1>
    %61 = vector.broadcast %58 : bf16 to vector<32x16xbf16>
    %62 = arith.select %60, %57, %61 : vector<32x16xi1>, vector<32x16xbf16>
    %c32 = arith.constant 32 : index
    %c0_26 = arith.constant 0 : index
    %63 = vector.load %arg4[%c32, %c0_26] : memref<400x32xbf16, #tpu.memory_space<vmem>>, vector<16x32xbf16>
    %cst_27 = arith.constant dense<0.000000e+00> : vector<32x32xf32>
    %64 = tpu.matmul %62, %63, %cst_27 {dimension_numbers = #tpu.dot_dimension_numbers<[1], [0], [0], [1], [0, 0, 1, 1], [], []>} : vector<32x16xbf16>, vector<16x32xbf16>, vector<32x32xf32> -> vector<32x32xf32>
    %65 = arith.addf %56, %64 : vector<32x32xf32>
    %c5 = arith.constant 5 : index
    %c0_28 = arith.constant 0 : index
    %66 = vector.load %arg9[%c5, %c0_28] : memref<46x16xbf16, #tpu.memory_space<vmem>>, vector<32x16xbf16>
    %67 = arith.andi %8, %36 : vector<32x1xi1>
    %c0_i32_29 = arith.constant 0 : i32
    %68 = arith.sitofp %c0_i32_29 : i32 to bf16
    %69 = vector.shape_cast %67 : vector<32x1xi1> to vector<32x1xi1>
    %70 = vector.broadcast %69 : vector<32x1xi1> to vector<32x16xi1>
    %71 = vector.broadcast %68 : bf16 to vector<32x16xbf16>
    %72 = arith.select %70, %66, %71 : vector<32x16xi1>, vector<32x16xbf16>
    %c48 = arith.constant 48 : index
    %c0_30 = arith.constant 0 : index
    %73 = vector.load %arg4[%c48, %c0_30] : memref<400x32xbf16, #tpu.memory_space<vmem>>, vector<16x32xbf16>
    %cst_31 = arith.constant dense<0.000000e+00> : vector<32x32xf32>
    %74 = tpu.matmul %72, %73, %cst_31 {dimension_numbers = #tpu.dot_dimension_numbers<[1], [0], [0], [1], [0, 0, 1, 1], [], []>} : vector<32x16xbf16>, vector<16x32xbf16>, vector<32x32xf32> -> vector<32x32xf32>
    %75 = arith.addf %65, %74 : vector<32x32xf32>
    %c5_32 = arith.constant 5 : index
    %c0_33 = arith.constant 0 : index
    %76 = vector.load %arg9[%c5_32, %c0_33] : memref<46x16xbf16, #tpu.memory_space<vmem>>, vector<32x16xbf16>
    %77 = arith.andi %15, %22 : vector<32x1xi1>
    %c0_i32_34 = arith.constant 0 : i32
    %78 = arith.sitofp %c0_i32_34 : i32 to bf16
    %79 = vector.shape_cast %77 : vector<32x1xi1> to vector<32x1xi1>
    %80 = vector.broadcast %79 : vector<32x1xi1> to vector<32x16xi1>
    %81 = vector.broadcast %78 : bf16 to vector<32x16xbf16>
    %82 = arith.select %80, %76, %81 : vector<32x16xi1>, vector<32x16xbf16>
    %c96 = arith.constant 96 : index
    %c0_35 = arith.constant 0 : index
    %83 = vector.load %arg4[%c96, %c0_35] : memref<400x32xbf16, #tpu.memory_space<vmem>>, vector<16x32xbf16>
    %cst_36 = arith.constant dense<0.000000e+00> : vector<32x32xf32>
    %84 = tpu.matmul %82, %83, %cst_36 {dimension_numbers = #tpu.dot_dimension_numbers<[1], [0], [0], [1], [0, 0, 1, 1], [], []>} : vector<32x16xbf16>, vector<16x32xbf16>, vector<32x32xf32> -> vector<32x32xf32>
    %85 = arith.addf %75, %84 : vector<32x32xf32>
    %c6 = arith.constant 6 : index
    %c0_37 = arith.constant 0 : index
    %86 = vector.load %arg9[%c6, %c0_37] : memref<46x16xbf16, #tpu.memory_space<vmem>>, vector<32x16xbf16>
    %c0_i32_38 = arith.constant 0 : i32
    %87 = arith.sitofp %c0_i32_38 : i32 to bf16
    %88 = vector.shape_cast %15 : vector<32x1xi1> to vector<32x1xi1>
    %89 = vector.broadcast %88 : vector<32x1xi1> to vector<32x16xi1>
    %90 = vector.broadcast %87 : bf16 to vector<32x16xbf16>
    %91 = arith.select %89, %86, %90 : vector<32x16xi1>, vector<32x16xbf16>
    %c112 = arith.constant 112 : index
    %c0_39 = arith.constant 0 : index
    %92 = vector.load %arg4[%c112, %c0_39] : memref<400x32xbf16, #tpu.memory_space<vmem>>, vector<16x32xbf16>
    %cst_40 = arith.constant dense<0.000000e+00> : vector<32x32xf32>
    %93 = tpu.matmul %91, %92, %cst_40 {dimension_numbers = #tpu.dot_dimension_numbers<[1], [0], [0], [1], [0, 0, 1, 1], [], []>} : vector<32x16xbf16>, vector<16x32xbf16>, vector<32x32xf32> -> vector<32x32xf32>
    %94 = arith.addf %85, %93 : vector<32x32xf32>
    %c7 = arith.constant 7 : index
    %c0_41 = arith.constant 0 : index
    %95 = vector.load %arg9[%c7, %c0_41] : memref<46x16xbf16, #tpu.memory_space<vmem>>, vector<32x16xbf16>
    %96 = arith.andi %15, %36 : vector<32x1xi1>
    %c0_i32_42 = arith.constant 0 : i32
    %97 = arith.sitofp %c0_i32_42 : i32 to bf16
    %98 = vector.shape_cast %96 : vector<32x1xi1> to vector<32x1xi1>
    %99 = vector.broadcast %98 : vector<32x1xi1> to vector<32x16xi1>
    %100 = vector.broadcast %97 : bf16 to vector<32x16xbf16>
    %101 = arith.select %99, %95, %100 : vector<32x16xi1>, vector<32x16xbf16>
    %c128 = arith.constant 128 : index
    %c0_43 = arith.constant 0 : index
    %102 = vector.load %arg4[%c128, %c0_43] : memref<400x32xbf16, #tpu.memory_space<vmem>>, vector<16x32xbf16>
    %cst_44 = arith.constant dense<0.000000e+00> : vector<32x32xf32>
    %103 = tpu.matmul %101, %102, %cst_44 {dimension_numbers = #tpu.dot_dimension_numbers<[1], [0], [0], [1], [0, 0, 1, 1], [], []>} : vector<32x16xbf16>, vector<16x32xbf16>, vector<32x32xf32> -> vector<32x32xf32>
    %104 = arith.addf %94, %103 : vector<32x32xf32>
    %c7_45 = arith.constant 7 : index
    %c0_46 = arith.constant 0 : index
    %105 = vector.load %arg9[%c7_45, %c0_46] : memref<46x16xbf16, #tpu.memory_space<vmem>>, vector<32x16xbf16>
    %c0_i32_47 = arith.constant 0 : i32
    %106 = arith.sitofp %c0_i32_47 : i32 to bf16
    %107 = vector.shape_cast %22 : vector<32x1xi1> to vector<32x1xi1>
    %108 = vector.broadcast %107 : vector<32x1xi1> to vector<32x16xi1>
    %109 = vector.broadcast %106 : bf16 to vector<32x16xbf16>
    %110 = arith.select %108, %105, %109 : vector<32x16xi1>, vector<32x16xbf16>
    %c176 = arith.constant 176 : index
    %c0_48 = arith.constant 0 : index
    %111 = vector.load %arg4[%c176, %c0_48] : memref<400x32xbf16, #tpu.memory_space<vmem>>, vector<16x32xbf16>
    %cst_49 = arith.constant dense<0.000000e+00> : vector<32x32xf32>
    %112 = tpu.matmul %110, %111, %cst_49 {dimension_numbers = #tpu.dot_dimension_numbers<[1], [0], [0], [1], [0, 0, 1, 1], [], []>} : vector<32x16xbf16>, vector<16x32xbf16>, vector<32x32xf32> -> vector<32x32xf32>
    %113 = arith.addf %104, %112 : vector<32x32xf32>
    %c8_50 = arith.constant 8 : index
    %c0_51 = arith.constant 0 : index
    %114 = vector.load %arg9[%c8_50, %c0_51] : memref<46x16xbf16, #tpu.memory_space<vmem>>, vector<32x16xbf16>
    %c192 = arith.constant 192 : index
    %c0_52 = arith.constant 0 : index
    %115 = vector.load %arg4[%c192, %c0_52] : memref<400x32xbf16, #tpu.memory_space<vmem>>, vector<16x32xbf16>
    %cst_53 = arith.constant dense<0.000000e+00> : vector<32x32xf32>
    %116 = tpu.matmul %114, %115, %cst_53 {dimension_numbers = #tpu.dot_dimension_numbers<[1], [0], [0], [1], [0, 0, 1, 1], [], []>} : vector<32x16xbf16>, vector<16x32xbf16>, vector<32x32xf32> -> vector<32x32xf32>
    %117 = arith.addf %113, %116 : vector<32x32xf32>
    %c9 = arith.constant 9 : index
    %c0_54 = arith.constant 0 : index
    %118 = vector.load %arg9[%c9, %c0_54] : memref<46x16xbf16, #tpu.memory_space<vmem>>, vector<32x16xbf16>
    %c0_i32_55 = arith.constant 0 : i32
    %119 = arith.sitofp %c0_i32_55 : i32 to bf16
    %120 = vector.shape_cast %36 : vector<32x1xi1> to vector<32x1xi1>
    %121 = vector.broadcast %120 : vector<32x1xi1> to vector<32x16xi1>
    %122 = vector.broadcast %119 : bf16 to vector<32x16xbf16>
    %123 = arith.select %121, %118, %122 : vector<32x16xi1>, vector<32x16xbf16>
    %c208 = arith.constant 208 : index
    %c0_56 = arith.constant 0 : index
    %124 = vector.load %arg4[%c208, %c0_56] : memref<400x32xbf16, #tpu.memory_space<vmem>>, vector<16x32xbf16>
    %cst_57 = arith.constant dense<0.000000e+00> : vector<32x32xf32>
    %125 = tpu.matmul %123, %124, %cst_57 {dimension_numbers = #tpu.dot_dimension_numbers<[1], [0], [0], [1], [0, 0, 1, 1], [], []>} : vector<32x16xbf16>, vector<16x32xbf16>, vector<32x32xf32> -> vector<32x32xf32>
    %126 = arith.addf %117, %125 : vector<32x32xf32>
    %c9_58 = arith.constant 9 : index
    %c0_59 = arith.constant 0 : index
    %127 = vector.load %arg9[%c9_58, %c0_59] : memref<46x16xbf16, #tpu.memory_space<vmem>>, vector<32x16xbf16>
    %128 = arith.andi %29, %22 : vector<32x1xi1>
    %c0_i32_60 = arith.constant 0 : i32
    %129 = arith.sitofp %c0_i32_60 : i32 to bf16
    %130 = vector.shape_cast %128 : vector<32x1xi1> to vector<32x1xi1>
    %131 = vector.broadcast %130 : vector<32x1xi1> to vector<32x16xi1>
    %132 = vector.broadcast %129 : bf16 to vector<32x16xbf16>
    %133 = arith.select %131, %127, %132 : vector<32x16xi1>, vector<32x16xbf16>
    %c256 = arith.constant 256 : index
    %c0_61 = arith.constant 0 : index
    %134 = vector.load %arg4[%c256, %c0_61] : memref<400x32xbf16, #tpu.memory_space<vmem>>, vector<16x32xbf16>
    %cst_62 = arith.constant dense<0.000000e+00> : vector<32x32xf32>
    %135 = tpu.matmul %133, %134, %cst_62 {dimension_numbers = #tpu.dot_dimension_numbers<[1], [0], [0], [1], [0, 0, 1, 1], [], []>} : vector<32x16xbf16>, vector<16x32xbf16>, vector<32x32xf32> -> vector<32x32xf32>
    %136 = arith.addf %126, %135 : vector<32x32xf32>
    %c10 = arith.constant 10 : index
    %c0_63 = arith.constant 0 : index
    %137 = vector.load %arg9[%c10, %c0_63] : memref<46x16xbf16, #tpu.memory_space<vmem>>, vector<32x16xbf16>
    %c0_i32_64 = arith.constant 0 : i32
    %138 = arith.sitofp %c0_i32_64 : i32 to bf16
    %139 = vector.shape_cast %29 : vector<32x1xi1> to vector<32x1xi1>
    %140 = vector.broadcast %139 : vector<32x1xi1> to vector<32x16xi1>
    %141 = vector.broadcast %138 : bf16 to vector<32x16xbf16>
    %142 = arith.select %140, %137, %141 : vector<32x16xi1>, vector<32x16xbf16>
    %c272 = arith.constant 272 : index
    %c0_65 = arith.constant 0 : index
    %143 = vector.load %arg4[%c272, %c0_65] : memref<400x32xbf16, #tpu.memory_space<vmem>>, vector<16x32xbf16>
    %cst_66 = arith.constant dense<0.000000e+00> : vector<32x32xf32>
    %144 = tpu.matmul %142, %143, %cst_66 {dimension_numbers = #tpu.dot_dimension_numbers<[1], [0], [0], [1], [0, 0, 1, 1], [], []>} : vector<32x16xbf16>, vector<16x32xbf16>, vector<32x32xf32> -> vector<32x32xf32>
    %145 = arith.addf %136, %144 : vector<32x32xf32>
    %c11 = arith.constant 11 : index
    %c0_67 = arith.constant 0 : index
    %146 = vector.load %arg9[%c11, %c0_67] : memref<46x16xbf16, #tpu.memory_space<vmem>>, vector<32x16xbf16>
    %147 = arith.andi %29, %36 : vector<32x1xi1>
    %c0_i32_68 = arith.constant 0 : i32
    %148 = arith.sitofp %c0_i32_68 : i32 to bf16
    %149 = vector.shape_cast %147 : vector<32x1xi1> to vector<32x1xi1>
    %150 = vector.broadcast %149 : vector<32x1xi1> to vector<32x16xi1>
    %151 = vector.broadcast %148 : bf16 to vector<32x16xbf16>
    %152 = arith.select %150, %146, %151 : vector<32x16xi1>, vector<32x16xbf16>
    %c288 = arith.constant 288 : index
    %c0_69 = arith.constant 0 : index
    %153 = vector.load %arg4[%c288, %c0_69] : memref<400x32xbf16, #tpu.memory_space<vmem>>, vector<16x32xbf16>
    %cst_70 = arith.constant dense<0.000000e+00> : vector<32x32xf32>
    %154 = tpu.matmul %152, %153, %cst_70 {dimension_numbers = #tpu.dot_dimension_numbers<[1], [0], [0], [1], [0, 0, 1, 1], [], []>} : vector<32x16xbf16>, vector<16x32xbf16>, vector<32x32xf32> -> vector<32x32xf32>
    %155 = arith.addf %145, %154 : vector<32x32xf32>
    %c11_71 = arith.constant 11 : index
    %c0_72 = arith.constant 0 : index
    %156 = vector.load %arg9[%c11_71, %c0_72] : memref<46x16xbf16, #tpu.memory_space<vmem>>, vector<32x16xbf16>
    %157 = arith.andi %43, %22 : vector<32x1xi1>
    %c0_i32_73 = arith.constant 0 : i32
    %158 = arith.sitofp %c0_i32_73 : i32 to bf16
    %159 = vector.shape_cast %157 : vector<32x1xi1> to vector<32x1xi1>
    %160 = vector.broadcast %159 : vector<32x1xi1> to vector<32x16xi1>
    %161 = vector.broadcast %158 : bf16 to vector<32x16xbf16>
    %162 = arith.select %160, %156, %161 : vector<32x16xi1>, vector<32x16xbf16>
    %c336 = arith.constant 336 : index
    %c0_74 = arith.constant 0 : index
    %163 = vector.load %arg4[%c336, %c0_74] : memref<400x32xbf16, #tpu.memory_space<vmem>>, vector<16x32xbf16>
    %cst_75 = arith.constant dense<0.000000e+00> : vector<32x32xf32>
    %164 = tpu.matmul %162, %163, %cst_75 {dimension_numbers = #tpu.dot_dimension_numbers<[1], [0], [0], [1], [0, 0, 1, 1], [], []>} : vector<32x16xbf16>, vector<16x32xbf16>, vector<32x32xf32> -> vector<32x32xf32>
    %165 = arith.addf %155, %164 : vector<32x32xf32>
    %c12 = arith.constant 12 : index
    %c0_76 = arith.constant 0 : index
    %166 = vector.load %arg9[%c12, %c0_76] : memref<46x16xbf16, #tpu.memory_space<vmem>>, vector<32x16xbf16>
    %c0_i32_77 = arith.constant 0 : i32
    %167 = arith.sitofp %c0_i32_77 : i32 to bf16
    %168 = vector.shape_cast %43 : vector<32x1xi1> to vector<32x1xi1>
    %169 = vector.broadcast %168 : vector<32x1xi1> to vector<32x16xi1>
    %170 = vector.broadcast %167 : bf16 to vector<32x16xbf16>
    %171 = arith.select %169, %166, %170 : vector<32x16xi1>, vector<32x16xbf16>
    %c352 = arith.constant 352 : index
    %c0_78 = arith.constant 0 : index
    %172 = vector.load %arg4[%c352, %c0_78] : memref<400x32xbf16, #tpu.memory_space<vmem>>, vector<16x32xbf16>
    %cst_79 = arith.constant dense<0.000000e+00> : vector<32x32xf32>
    %173 = tpu.matmul %171, %172, %cst_79 {dimension_numbers = #tpu.dot_dimension_numbers<[1], [0], [0], [1], [0, 0, 1, 1], [], []>} : vector<32x16xbf16>, vector<16x32xbf16>, vector<32x32xf32> -> vector<32x32xf32>
    %174 = arith.addf %165, %173 : vector<32x32xf32>
    %c13 = arith.constant 13 : index
    %c0_80 = arith.constant 0 : index
    %175 = vector.load %arg9[%c13, %c0_80] : memref<46x16xbf16, #tpu.memory_space<vmem>>, vector<32x16xbf16>
    %176 = arith.andi %43, %36 : vector<32x1xi1>
    %c0_i32_81 = arith.constant 0 : i32
    %177 = arith.sitofp %c0_i32_81 : i32 to bf16
    %178 = vector.shape_cast %176 : vector<32x1xi1> to vector<32x1xi1>
    %179 = vector.broadcast %178 : vector<32x1xi1> to vector<32x16xi1>
    %180 = vector.broadcast %177 : bf16 to vector<32x16xbf16>
    %181 = arith.select %179, %175, %180 : vector<32x16xi1>, vector<32x16xbf16>
    %c368 = arith.constant 368 : index
    %c0_82 = arith.constant 0 : index
    %182 = vector.load %arg4[%c368, %c0_82] : memref<400x32xbf16, #tpu.memory_space<vmem>>, vector<16x32xbf16>
    %cst_83 = arith.constant dense<0.000000e+00> : vector<32x32xf32>
    %183 = tpu.matmul %181, %182, %cst_83 {dimension_numbers = #tpu.dot_dimension_numbers<[1], [0], [0], [1], [0, 0, 1, 1], [], []>} : vector<32x16xbf16>, vector<16x32xbf16>, vector<32x32xf32> -> vector<32x32xf32>
    %184 = arith.addf %174, %183 : vector<32x32xf32>
    %185 = vector.broadcast %47 : vector<1x32xf32> to vector<32x32xf32>
    %186 = arith.addf %184, %185 : vector<32x32xf32>
    %cst_84 = arith.constant 5.000000e-01 : f32
    %187 = vector.broadcast %cst_84 : f32 to vector<32x32xf32>
    %188 = arith.mulf %187, %186 : vector<32x32xf32>
    %cst_85 = arith.constant 0.707106769 : f32
    %189 = vector.broadcast %cst_85 : f32 to vector<32x32xf32>
    %190 = arith.mulf %186, %189 : vector<32x32xf32>
    %191 = math.absf %190 : vector<32x32xf32>
    %cst_86 = arith.constant 0.327591091 : f32
    %192 = vector.broadcast %cst_86 : f32 to vector<32x32xf32>
    %193 = arith.mulf %192, %191 : vector<32x32xf32>
    %cst_87 = arith.constant 1.000000e+00 : f32
    %194 = vector.broadcast %cst_87 : f32 to vector<32x32xf32>
    %195 = arith.addf %194, %193 : vector<32x32xf32>
    %cst_88 = arith.constant 1.000000e+00 : f32
    %196 = vector.broadcast %cst_88 : f32 to vector<32x32xf32>
    %197 = arith.divf %196, %195 : vector<32x32xf32>
    %cst_89 = arith.constant 1.06140542 : f32
    %198 = vector.broadcast %cst_89 : f32 to vector<32x32xf32>
    %199 = arith.mulf %198, %197 : vector<32x32xf32>
    %cst_90 = arith.constant -1.45315206 : f32
    %200 = vector.broadcast %cst_90 : f32 to vector<32x32xf32>
    %201 = arith.addf %199, %200 : vector<32x32xf32>
    %202 = arith.mulf %201, %197 : vector<32x32xf32>
    %cst_91 = arith.constant 1.42141378 : f32
    %203 = vector.broadcast %cst_91 : f32 to vector<32x32xf32>
    %204 = arith.addf %202, %203 : vector<32x32xf32>
    %205 = arith.mulf %204, %197 : vector<32x32xf32>
    %cst_92 = arith.constant -0.284496725 : f32
    %206 = vector.broadcast %cst_92 : f32 to vector<32x32xf32>
    %207 = arith.addf %205, %206 : vector<32x32xf32>
    %208 = arith.mulf %207, %197 : vector<32x32xf32>
    %cst_93 = arith.constant 0.254829586 : f32
    %209 = vector.broadcast %cst_93 : f32 to vector<32x32xf32>
    %210 = arith.addf %208, %209 : vector<32x32xf32>
    %211 = arith.mulf %210, %197 : vector<32x32xf32>
    %cst_94 = arith.constant 0.000000e+00 : f32
    %212 = vector.broadcast %cst_94 : f32 to vector<32x32xf32>
    %213 = arith.subf %212, %191 : vector<32x32xf32>
    %214 = arith.mulf %213, %191 : vector<32x32xf32>
    %215 = math.exp %214 : vector<32x32xf32>
    %216 = arith.mulf %211, %215 : vector<32x32xf32>
    %cst_95 = arith.constant 1.000000e+00 : f32
    %217 = vector.broadcast %cst_95 : f32 to vector<32x32xf32>
    %218 = arith.subf %217, %216 : vector<32x32xf32>
    %cst_96 = arith.constant 0.000000e+00 : f32
    %219 = vector.broadcast %cst_96 : f32 to vector<32x32xf32>
    %220 = arith.cmpf oge, %190, %219 : vector<32x32xf32>
    %cst_97 = arith.constant 0.000000e+00 : f32
    %221 = vector.broadcast %cst_97 : f32 to vector<32x32xf32>
    %222 = arith.subf %221, %218 : vector<32x32xf32>
    %223 = arith.select %220, %218, %222 : vector<32x32xi1>, vector<32x32xf32>
    %cst_98 = arith.constant 1.000000e+00 : f32
    %224 = vector.broadcast %cst_98 : f32 to vector<32x32xf32>
    %225 = arith.addf %224, %223 : vector<32x32xf32>
    %226 = arith.mulf %188, %225 : vector<32x32xf32>
    %227 = arith.truncf %226 : vector<32x32xf32> to vector<32x32xbf16>
    %c8_99 = arith.constant 8 : index
    %c0_100 = arith.constant 0 : index
    %228 = vector.load %arg10[%c8_99, %c0_100] : memref<46x32xbf16, #tpu.memory_space<vmem>>, vector<32x32xbf16>
    tpu.vector_store %arg10[%c8_99, %c0_100], %227 {strides = array<i32>} : memref<46x32xbf16, #tpu.memory_space<vmem>>, vector<32x32xbf16>,
    %c0_101 = arith.constant 0 : index
    %c0_102 = arith.constant 0 : index
    %229 = vector.load %arg7[%c0_101, %c0_102] : memref<1x16xf32, #tpu.memory_space<vmem>>, vector<1x16xf32>
    %c3_103 = arith.constant 3 : index
    %c0_104 = arith.constant 0 : index
    %230 = vector.load %arg10[%c3_103, %c0_104] : memref<46x32xbf16, #tpu.memory_space<vmem>>, vector<32x32xbf16>
    %231 = arith.andi %8, %22 : vector<32x1xi1>
    %c0_i32_105 = arith.constant 0 : i32
    %232 = arith.sitofp %c0_i32_105 : i32 to bf16
    %233 = vector.shape_cast %231 : vector<32x1xi1> to vector<32x1xi1>
    %234 = vector.broadcast %233 : vector<32x1xi1> to vector<32x32xi1>
    %235 = vector.broadcast %232 : bf16 to vector<32x32xbf16>
    %236 = arith.select %234, %230, %235 : vector<32x32xi1>, vector<32x32xbf16>
    %c32_106 = arith.constant 32 : index
    %c0_107 = arith.constant 0 : index
    %237 = vector.load %arg6[%c32_106, %c0_107] : memref<800x16xbf16, #tpu.memory_space<vmem>>, vector<32x16xbf16>
    %cst_108 = arith.constant dense<0.000000e+00> : vector<32x16xf32>
    %238 = tpu.matmul %236, %237, %cst_108 {dimension_numbers = #tpu.dot_dimension_numbers<[1], [0], [0], [1], [0, 0, 1, 1], [], []>} : vector<32x32xbf16>, vector<32x16xbf16>, vector<32x16xf32> -> vector<32x16xf32>
    %c4_109 = arith.constant 4 : index
    %c0_110 = arith.constant 0 : index
    %239 = vector.load %arg10[%c4_109, %c0_110] : memref<46x32xbf16, #tpu.memory_space<vmem>>, vector<32x32xbf16>
    %c0_i32_111 = arith.constant 0 : i32
    %240 = arith.sitofp %c0_i32_111 : i32 to bf16
    %241 = vector.shape_cast %8 : vector<32x1xi1> to vector<32x1xi1>
    %242 = vector.broadcast %241 : vector<32x1xi1> to vector<32x32xi1>
    %243 = vector.broadcast %240 : bf16 to vector<32x32xbf16>
    %244 = arith.select %242, %239, %243 : vector<32x32xi1>, vector<32x32xbf16>
    %c64 = arith.constant 64 : index
    %c0_112 = arith.constant 0 : index
    %245 = vector.load %arg6[%c64, %c0_112] : memref<800x16xbf16, #tpu.memory_space<vmem>>, vector<32x16xbf16>
    %cst_113 = arith.constant dense<0.000000e+00> : vector<32x16xf32>
    %246 = tpu.matmul %244, %245, %cst_113 {dimension_numbers = #tpu.dot_dimension_numbers<[1], [0], [0], [1], [0, 0, 1, 1], [], []>} : vector<32x32xbf16>, vector<32x16xbf16>, vector<32x16xf32> -> vector<32x16xf32>
    %247 = arith.addf %238, %246 : vector<32x16xf32>
    %c5_114 = arith.constant 5 : index
    %c0_115 = arith.constant 0 : index
    %248 = vector.load %arg10[%c5_114, %c0_115] : memref<46x32xbf16, #tpu.memory_space<vmem>>, vector<32x32xbf16>
    %249 = arith.andi %8, %36 : vector<32x1xi1>
    %c0_i32_116 = arith.constant 0 : i32
    %250 = arith.sitofp %c0_i32_116 : i32 to bf16
    %251 = vector.shape_cast %249 : vector<32x1xi1> to vector<32x1xi1>
    %252 = vector.broadcast %251 : vector<32x1xi1> to vector<32x32xi1>
    %253 = vector.broadcast %250 : bf16 to vector<32x32xbf16>
    %254 = arith.select %252, %248, %253 : vector<32x32xi1>, vector<32x32xbf16>
    %c96_117 = arith.constant 96 : index
    %c0_118 = arith.constant 0 : index
    %255 = vector.load %arg6[%c96_117, %c0_118] : memref<800x16xbf16, #tpu.memory_space<vmem>>, vector<32x16xbf16>
    %cst_119 = arith.constant dense<0.000000e+00> : vector<32x16xf32>
    %256 = tpu.matmul %254, %255, %cst_119 {dimension_numbers = #tpu.dot_dimension_numbers<[1], [0], [0], [1], [0, 0, 1, 1], [], []>} : vector<32x32xbf16>, vector<32x16xbf16>, vector<32x16xf32> -> vector<32x16xf32>
    %257 = arith.addf %247, %256 : vector<32x16xf32>
    %c5_120 = arith.constant 5 : index
    %c0_121 = arith.constant 0 : index
    %258 = vector.load %arg10[%c5_120, %c0_121] : memref<46x32xbf16, #tpu.memory_space<vmem>>, vector<32x32xbf16>
    %259 = arith.andi %15, %22 : vector<32x1xi1>
    %c0_i32_122 = arith.constant 0 : i32
    %260 = arith.sitofp %c0_i32_122 : i32 to bf16
    %261 = vector.shape_cast %259 : vector<32x1xi1> to vector<32x1xi1>
    %262 = vector.broadcast %261 : vector<32x1xi1> to vector<32x32xi1>
    %263 = vector.broadcast %260 : bf16 to vector<32x32xbf16>
    %264 = arith.select %262, %258, %263 : vector<32x32xi1>, vector<32x32xbf16>
    %c192_123 = arith.constant 192 : index
    %c0_124 = arith.constant 0 : index
    %265 = vector.load %arg6[%c192_123, %c0_124] : memref<800x16xbf16, #tpu.memory_space<vmem>>, vector<32x16xbf16>
    %cst_125 = arith.constant dense<0.000000e+00> : vector<32x16xf32>
    %266 = tpu.matmul %264, %265, %cst_125 {dimension_numbers = #tpu.dot_dimension_numbers<[1], [0], [0], [1], [0, 0, 1, 1], [], []>} : vector<32x32xbf16>, vector<32x16xbf16>, vector<32x16xf32> -> vector<32x16xf32>
    %267 = arith.addf %257, %266 : vector<32x16xf32>
    %c6_126 = arith.constant 6 : index
    %c0_127 = arith.constant 0 : index
    %268 = vector.load %arg10[%c6_126, %c0_127] : memref<46x32xbf16, #tpu.memory_space<vmem>>, vector<32x32xbf16>
    %c0_i32_128 = arith.constant 0 : i32
    %269 = arith.sitofp %c0_i32_128 : i32 to bf16
    %270 = vector.shape_cast %15 : vector<32x1xi1> to vector<32x1xi1>
    %271 = vector.broadcast %270 : vector<32x1xi1> to vector<32x32xi1>
    %272 = vector.broadcast %269 : bf16 to vector<32x32xbf16>
    %273 = arith.select %271, %268, %272 : vector<32x32xi1>, vector<32x32xbf16>
    %c224 = arith.constant 224 : index
    %c0_129 = arith.constant 0 : index
    %274 = vector.load %arg6[%c224, %c0_129] : memref<800x16xbf16, #tpu.memory_space<vmem>>, vector<32x16xbf16>
    %cst_130 = arith.constant dense<0.000000e+00> : vector<32x16xf32>
    %275 = tpu.matmul %273, %274, %cst_130 {dimension_numbers = #tpu.dot_dimension_numbers<[1], [0], [0], [1], [0, 0, 1, 1], [], []>} : vector<32x32xbf16>, vector<32x16xbf16>, vector<32x16xf32> -> vector<32x16xf32>
    %276 = arith.addf %267, %275 : vector<32x16xf32>
    %c7_131 = arith.constant 7 : index
    %c0_132 = arith.constant 0 : index
    %277 = vector.load %arg10[%c7_131, %c0_132] : memref<46x32xbf16, #tpu.memory_space<vmem>>, vector<32x32xbf16>
    %278 = arith.andi %15, %36 : vector<32x1xi1>
    %c0_i32_133 = arith.constant 0 : i32
    %279 = arith.sitofp %c0_i32_133 : i32 to bf16
    %280 = vector.shape_cast %278 : vector<32x1xi1> to vector<32x1xi1>
    %281 = vector.broadcast %280 : vector<32x1xi1> to vector<32x32xi1>
    %282 = vector.broadcast %279 : bf16 to vector<32x32xbf16>
    %283 = arith.select %281, %277, %282 : vector<32x32xi1>, vector<32x32xbf16>
    %c256_134 = arith.constant 256 : index
    %c0_135 = arith.constant 0 : index
    %284 = vector.load %arg6[%c256_134, %c0_135] : memref<800x16xbf16, #tpu.memory_space<vmem>>, vector<32x16xbf16>
    %cst_136 = arith.constant dense<0.000000e+00> : vector<32x16xf32>
    %285 = tpu.matmul %283, %284, %cst_136 {dimension_numbers = #tpu.dot_dimension_numbers<[1], [0], [0], [1], [0, 0, 1, 1], [], []>} : vector<32x32xbf16>, vector<32x16xbf16>, vector<32x16xf32> -> vector<32x16xf32>
    %286 = arith.addf %276, %285 : vector<32x16xf32>
    %c7_137 = arith.constant 7 : index
    %c0_138 = arith.constant 0 : index
    %287 = vector.load %arg10[%c7_137, %c0_138] : memref<46x32xbf16, #tpu.memory_space<vmem>>, vector<32x32xbf16>
    %c0_i32_139 = arith.constant 0 : i32
    %288 = arith.sitofp %c0_i32_139 : i32 to bf16
    %289 = vector.shape_cast %22 : vector<32x1xi1> to vector<32x1xi1>
    %290 = vector.broadcast %289 : vector<32x1xi1> to vector<32x32xi1>
    %291 = vector.broadcast %288 : bf16 to vector<32x32xbf16>
    %292 = arith.select %290, %287, %291 : vector<32x32xi1>, vector<32x32xbf16>
    %c352_140 = arith.constant 352 : index
    %c0_141 = arith.constant 0 : index
    %293 = vector.load %arg6[%c352_140, %c0_141] : memref<800x16xbf16, #tpu.memory_space<vmem>>, vector<32x16xbf16>
    %cst_142 = arith.constant dense<0.000000e+00> : vector<32x16xf32>
    %294 = tpu.matmul %292, %293, %cst_142 {dimension_numbers = #tpu.dot_dimension_numbers<[1], [0], [0], [1], [0, 0, 1, 1], [], []>} : vector<32x32xbf16>, vector<32x16xbf16>, vector<32x16xf32> -> vector<32x16xf32>
    %295 = arith.addf %286, %294 : vector<32x16xf32>
    %c8_143 = arith.constant 8 : index
    %c0_144 = arith.constant 0 : index
    %296 = vector.load %arg10[%c8_143, %c0_144] : memref<46x32xbf16, #tpu.memory_space<vmem>>, vector<32x32xbf16>
    %c384 = arith.constant 384 : index
    %c0_145 = arith.constant 0 : index
    %297 = vector.load %arg6[%c384, %c0_145] : memref<800x16xbf16, #tpu.memory_space<vmem>>, vector<32x16xbf16>
    %cst_146 = arith.constant dense<0.000000e+00> : vector<32x16xf32>
    %298 = tpu.matmul %296, %297, %cst_146 {dimension_numbers = #tpu.dot_dimension_numbers<[1], [0], [0], [1], [0, 0, 1, 1], [], []>} : vector<32x32xbf16>, vector<32x16xbf16>, vector<32x16xf32> -> vector<32x16xf32>
    %299 = arith.addf %295, %298 : vector<32x16xf32>
    %c9_147 = arith.constant 9 : index
    %c0_148 = arith.constant 0 : index
    %300 = vector.load %arg10[%c9_147, %c0_148] : memref<46x32xbf16, #tpu.memory_space<vmem>>, vector<32x32xbf16>
    %c0_i32_149 = arith.constant 0 : i32
    %301 = arith.sitofp %c0_i32_149 : i32 to bf16
    %302 = vector.shape_cast %36 : vector<32x1xi1> to vector<32x1xi1>
    %303 = vector.broadcast %302 : vector<32x1xi1> to vector<32x32xi1>
    %304 = vector.broadcast %301 : bf16 to vector<32x32xbf16>
    %305 = arith.select %303, %300, %304 : vector<32x32xi1>, vector<32x32xbf16>
    %c416 = arith.constant 416 : index
    %c0_150 = arith.constant 0 : index
    %306 = vector.load %arg6[%c416, %c0_150] : memref<800x16xbf16, #tpu.memory_space<vmem>>, vector<32x16xbf16>
    %cst_151 = arith.constant dense<0.000000e+00> : vector<32x16xf32>
    %307 = tpu.matmul %305, %306, %cst_151 {dimension_numbers = #tpu.dot_dimension_numbers<[1], [0], [0], [1], [0, 0, 1, 1], [], []>} : vector<32x32xbf16>, vector<32x16xbf16>, vector<32x16xf32> -> vector<32x16xf32>
    %308 = arith.addf %299, %307 : vector<32x16xf32>
    %c9_152 = arith.constant 9 : index
    %c0_153 = arith.constant 0 : index
    %309 = vector.load %arg10[%c9_152, %c0_153] : memref<46x32xbf16, #tpu.memory_space<vmem>>, vector<32x32xbf16>
    %310 = arith.andi %29, %22 : vector<32x1xi1>
    %c0_i32_154 = arith.constant 0 : i32
    %311 = arith.sitofp %c0_i32_154 : i32 to bf16
    %312 = vector.shape_cast %310 : vector<32x1xi1> to vector<32x1xi1>
    %313 = vector.broadcast %312 : vector<32x1xi1> to vector<32x32xi1>
    %314 = vector.broadcast %311 : bf16 to vector<32x32xbf16>
    %315 = arith.select %313, %309, %314 : vector<32x32xi1>, vector<32x32xbf16>
    %c512 = arith.constant 512 : index
    %c0_155 = arith.constant 0 : index
    %316 = vector.load %arg6[%c512, %c0_155] : memref<800x16xbf16, #tpu.memory_space<vmem>>, vector<32x16xbf16>
    %cst_156 = arith.constant dense<0.000000e+00> : vector<32x16xf32>
    %317 = tpu.matmul %315, %316, %cst_156 {dimension_numbers = #tpu.dot_dimension_numbers<[1], [0], [0], [1], [0, 0, 1, 1], [], []>} : vector<32x32xbf16>, vector<32x16xbf16>, vector<32x16xf32> -> vector<32x16xf32>
    %318 = arith.addf %308, %317 : vector<32x16xf32>
    %c10_157 = arith.constant 10 : index
    %c0_158 = arith.constant 0 : index
    %319 = vector.load %arg10[%c10_157, %c0_158] : memref<46x32xbf16, #tpu.memory_space<vmem>>, vector<32x32xbf16>
    %c0_i32_159 = arith.constant 0 : i32
    %320 = arith.sitofp %c0_i32_159 : i32 to bf16
    %321 = vector.shape_cast %29 : vector<32x1xi1> to vector<32x1xi1>
    %322 = vector.broadcast %321 : vector<32x1xi1> to vector<32x32xi1>
    %323 = vector.broadcast %320 : bf16 to vector<32x32xbf16>
    %324 = arith.select %322, %319, %323 : vector<32x32xi1>, vector<32x32xbf16>
    %c544 = arith.constant 544 : index
    %c0_160 = arith.constant 0 : index
    %325 = vector.load %arg6[%c544, %c0_160] : memref<800x16xbf16, #tpu.memory_space<vmem>>, vector<32x16xbf16>
    %cst_161 = arith.constant dense<0.000000e+00> : vector<32x16xf32>
    %326 = tpu.matmul %324, %325, %cst_161 {dimension_numbers = #tpu.dot_dimension_numbers<[1], [0], [0], [1], [0, 0, 1, 1], [], []>} : vector<32x32xbf16>, vector<32x16xbf16>, vector<32x16xf32> -> vector<32x16xf32>
    %327 = arith.addf %318, %326 : vector<32x16xf32>
    %c11_162 = arith.constant 11 : index
    %c0_163 = arith.constant 0 : index
    %328 = vector.load %arg10[%c11_162, %c0_163] : memref<46x32xbf16, #tpu.memory_space<vmem>>, vector<32x32xbf16>
    %329 = arith.andi %29, %36 : vector<32x1xi1>
    %c0_i32_164 = arith.constant 0 : i32
    %330 = arith.sitofp %c0_i32_164 : i32 to bf16
    %331 = vector.shape_cast %329 : vector<32x1xi1> to vector<32x1xi1>
    %332 = vector.broadcast %331 : vector<32x1xi1> to vector<32x32xi1>
    %333 = vector.broadcast %330 : bf16 to vector<32x32xbf16>
    %334 = arith.select %332, %328, %333 : vector<32x32xi1>, vector<32x32xbf16>
    %c576 = arith.constant 576 : index
    %c0_165 = arith.constant 0 : index
    %335 = vector.load %arg6[%c576, %c0_165] : memref<800x16xbf16, #tpu.memory_space<vmem>>, vector<32x16xbf16>
    %cst_166 = arith.constant dense<0.000000e+00> : vector<32x16xf32>
    %336 = tpu.matmul %334, %335, %cst_166 {dimension_numbers = #tpu.dot_dimension_numbers<[1], [0], [0], [1], [0, 0, 1, 1], [], []>} : vector<32x32xbf16>, vector<32x16xbf16>, vector<32x16xf32> -> vector<32x16xf32>
    %337 = arith.addf %327, %336 : vector<32x16xf32>
    %c11_167 = arith.constant 11 : index
    %c0_168 = arith.constant 0 : index
    %338 = vector.load %arg10[%c11_167, %c0_168] : memref<46x32xbf16, #tpu.memory_space<vmem>>, vector<32x32xbf16>
    %339 = arith.andi %43, %22 : vector<32x1xi1>
    %c0_i32_169 = arith.constant 0 : i32
    %340 = arith.sitofp %c0_i32_169 : i32 to bf16
    %341 = vector.shape_cast %339 : vector<32x1xi1> to vector<32x1xi1>
    %342 = vector.broadcast %341 : vector<32x1xi1> to vector<32x32xi1>
    %343 = vector.broadcast %340 : bf16 to vector<32x32xbf16>
    %344 = arith.select %342, %338, %343 : vector<32x32xi1>, vector<32x32xbf16>
    %c672 = arith.constant 672 : index
    %c0_170 = arith.constant 0 : index
    %345 = vector.load %arg6[%c672, %c0_170] : memref<800x16xbf16, #tpu.memory_space<vmem>>, vector<32x16xbf16>
    %cst_171 = arith.constant dense<0.000000e+00> : vector<32x16xf32>
    %346 = tpu.matmul %344, %345, %cst_171 {dimension_numbers = #tpu.dot_dimension_numbers<[1], [0], [0], [1], [0, 0, 1, 1], [], []>} : vector<32x32xbf16>, vector<32x16xbf16>, vector<32x16xf32> -> vector<32x16xf32>
    %347 = arith.addf %337, %346 : vector<32x16xf32>
    %c12_172 = arith.constant 12 : index
    %c0_173 = arith.constant 0 : index
    %348 = vector.load %arg10[%c12_172, %c0_173] : memref<46x32xbf16, #tpu.memory_space<vmem>>, vector<32x32xbf16>
    %c0_i32_174 = arith.constant 0 : i32
    %349 = arith.sitofp %c0_i32_174 : i32 to bf16
    %350 = vector.shape_cast %43 : vector<32x1xi1> to vector<32x1xi1>
    %351 = vector.broadcast %350 : vector<32x1xi1> to vector<32x32xi1>
    %352 = vector.broadcast %349 : bf16 to vector<32x32xbf16>
    %353 = arith.select %351, %348, %352 : vector<32x32xi1>, vector<32x32xbf16>
    %c704 = arith.constant 704 : index
    %c0_175 = arith.constant 0 : index
    %354 = vector.load %arg6[%c704, %c0_175] : memref<800x16xbf16, #tpu.memory_space<vmem>>, vector<32x16xbf16>
    %cst_176 = arith.constant dense<0.000000e+00> : vector<32x16xf32>
    %355 = tpu.matmul %353, %354, %cst_176 {dimension_numbers = #tpu.dot_dimension_numbers<[1], [0], [0], [1], [0, 0, 1, 1], [], []>} : vector<32x32xbf16>, vector<32x16xbf16>, vector<32x16xf32> -> vector<32x16xf32>
    %356 = arith.addf %347, %355 : vector<32x16xf32>
    %c13_177 = arith.constant 13 : index
    %c0_178 = arith.constant 0 : index
    %357 = vector.load %arg10[%c13_177, %c0_178] : memref<46x32xbf16, #tpu.memory_space<vmem>>, vector<32x32xbf16>
    %358 = arith.andi %43, %36 : vector<32x1xi1>
    %c0_i32_179 = arith.constant 0 : i32
    %359 = arith.sitofp %c0_i32_179 : i32 to bf16
    %360 = vector.shape_cast %358 : vector<32x1xi1> to vector<32x1xi1>
    %361 = vector.broadcast %360 : vector<32x1xi1> to vector<32x32xi1>
    %362 = vector.broadcast %359 : bf16 to vector<32x32xbf16>
    %363 = arith.select %361, %357, %362 : vector<32x32xi1>, vector<32x32xbf16>
    %c736 = arith.constant 736 : index
    %c0_180 = arith.constant 0 : index
    %364 = vector.load %arg6[%c736, %c0_180] : memref<800x16xbf16, #tpu.memory_space<vmem>>, vector<32x16xbf16>
    %cst_181 = arith.constant dense<0.000000e+00> : vector<32x16xf32>
    %365 = tpu.matmul %363, %364, %cst_181 {dimension_numbers = #tpu.dot_dimension_numbers<[1], [0], [0], [1], [0, 0, 1, 1], [], []>} : vector<32x32xbf16>, vector<32x16xbf16>, vector<32x16xf32> -> vector<32x16xf32>
    %366 = arith.addf %356, %365 : vector<32x16xf32>
    %367 = vector.broadcast %229 : vector<1x16xf32> to vector<32x16xf32>
    %368 = arith.addf %366, %367 : vector<32x16xf32>
    %c0_182 = arith.constant 0 : index
    %c0_183 = arith.constant 0 : index
    %c0_184 = arith.constant 0 : index
    %369 = vector.load %arg8[%c0_182, %c0_183, %c0_184] : memref<1x32x16xf32, #tpu.memory_space<vmem>>, vector<1x32x16xf32>
    %370 = vector.shape_cast %369 : vector<1x32x16xf32> to vector<32x16xf32>
    %371 = vector.shape_cast %368 : vector<32x16xf32> to vector<1x32x16xf32>
    tpu.vector_store %arg8[%c0_182, %c0_183, %c0_184], %371 {strides = array<i32>} : memref<1x32x16xf32, #tpu.memory_space<vmem>>, vector<1x32x16xf32>,
    return
  }
  func.func @transform_0(%arg0: i32) -> (i32, i32, i32) {
    %c0_i32 = arith.constant 0 : i32
    %c0_i32_0 = arith.constant 0 : i32
    %c0_i32_1 = arith.constant 0 : i32
    return %arg0, %c0_i32, %c0_i32_0 : i32, i32, i32
  }
  func.func @transform_1(%arg0: i32) -> (i32, i32) {
    %c0_i32 = arith.constant 0 : i32
    %c0_i32_0 = arith.constant 0 : i32
    %c0_i32_1 = arith.constant 0 : i32
    return %c0_i32, %c0_i32_0 : i32, i32
  }
  func.func @transform_2(%arg0: i32) -> (i32, i32) {
    %c0_i32 = arith.constant 0 : i32
    %c0_i32_0 = arith.constant 0 : i32
    %c0_i32_1 = arith.constant 0 : i32
    return %c0_i32, %c0_i32_0 : i32, i32
  }
  func.func @transform_3(%arg0: i32) -> (i32, i32) {
    %c0_i32 = arith.constant 0 : i32
    %c0_i32_0 = arith.constant 0 : i32
    %c0_i32_1 = arith.constant 0 : i32
    return %c0_i32, %c0_i32_0 : i32, i32
  }
  func.func @transform_4(%arg0: i32) -> (i32, i32) {
    %c0_i32 = arith.constant 0 : i32
    %c0_i32_0 = arith.constant 0 : i32
    %c0_i32_1 = arith.constant 0 : i32
    return %c0_i32, %c0_i32_0 : i32, i32
  }
  func.func @transform_5(%arg0: i32) -> (i32, i32) {
    %c0_i32 = arith.constant 0 : i32
    %c0_i32_0 = arith.constant 0 : i32
    %c0_i32_1 = arith.constant 0 : i32
    return %c0_i32, %c0_i32_0 : i32, i32
  }
  func.func @transform_6(%arg0: i32) -> (i32, i32) {
    %c0_i32 = arith.constant 0 : i32
    %c0_i32_0 = arith.constant 0 : i32
    %c0_i32_1 = arith.constant 0 : i32
    return %c0_i32, %c0_i32_0 : i32, i32
  }
  func.func @transform_7(%arg0: i32) -> (i32, i32, i32) {
    %c0_i32 = arith.constant 0 : i32
    %c0_i32_0 = arith.constant 0 : i32
    %c0_i32_1 = arith.constant 0 : i32
    return %arg0, %c0_i32, %c0_i32_0 : i32, i32, i32
  }
}

</mosaic_0001>

<bundles_post_ra>
// kernel: tpu_custom_call.1
= control target key start
LH: loop header
LB: loop body
LE: loop exit
PB: predicated region body
PF: predicated region fallthrough
CT: control target
= control target key end

     0   :  { %6 = vsyncpa [#allocation3], 0  ;;  %s127_s0 = inlined_call_operand.hbm [shape: f32[8,128], index: 0, kind: input, shape index: {}]   ;;  %s128_s1 = inlined_call_operand.hbm [shape: f32[8,128], index: 1, kind: output, shape index: {}]  }
   0x1   :  { %7 = vsyncpa [#allocation4], 0  ;;  %s91_s6 = smov [#allocation2]   ;;  %s43_s10 = scalar_lea.hbm %s127_s0, 128 }
   0x2   :  { %s14_s7 = sshll.u32 %s91_s6, 4  ;;  %p44_p0 = scmp.ne.s32.totalorder %s127_s0, %s43_s10  ;;  %s15_s7 = int_to_ptr.vmem [resolvable:$true] %s14_s7 }
   0x3   :  { %p47_p1 = scmp.lt.u32.totalorder %s43_s10, %s127_s0 }
   0x5   :  { %p49_p2 = pnand %p47_p1, %p44_p0 }
   0x7   :  { %52 = shalt.err (!%p49_p2)
}
   0x8   :  { %s53_s15 = scalar_lea.vmem %s15_s7, 128  ;;  %p58_p4 = scmp.lt.s32.totalorder %s15_s7, %s15_s7 }
   0x9   :  { %p54_p3 = scmp.ne.s32.totalorder %s15_s7, %s53_s15  ;;  %p59_p5 = scmp.lt.s32.totalorder %s53_s15, %s53_s15 }
   0xb   :  { %p60_p6 = por %p59_p5, %p58_p4 }
   0xd   :  { %p61_p7 = pnand %p60_p6, %p54_p3 }
   0xf   :  { %64 = shalt.err (!%p61_p7)
}
  0x10   :  { %17 = dma.hbm_to_vmem [thread:$0]  %s127_s0, 128, %s15_s7, [#allocation3]  }
  0x11   :  { %87 = dma.done.wait [#allocation3], 128  }
  0x12   :  { %88 = vsyncadd [#allocation3], 4294967168  ;;  %v21_v0 = vld [vmem:[#allocation2] sm:$0xff]  ;;  %s92_s18 = smov [#allocation5]  }
  0x13   :  { %41 = verf.f32 %v21_v0  ;;  %s30_s19 = sshll.u32 %s92_s18, 4  ;;  %s31_s19 = int_to_ptr.vmem [resolvable:$true] %s30_s19 }
  0x14   :  { %s65_s20 = scalar_lea.vmem %s31_s19, 128  ;;  %p70_p9 = scmp.lt.s32.totalorder %s31_s19, %s31_s19 }
  0x15   :  { %p66_p8 = scmp.ne.s32.totalorder %s31_s19, %s65_s20  ;;  %p71_p10 = scmp.lt.s32.totalorder %s65_s20, %s65_s20 }
  0x17   :  { %p72_p11 = por %p71_p10, %p70_p9 }
  0x19   :  { %p73_p12 = pnand %p72_p11, %p66_p8 }
  0x1d   :  { %v42_v1 = vpop.eup %41 }
  0x1e   :  { %23 = vst [vmem:[#allocation5] sm:$0xff] %v42_v1 }
  0x1f   :  { %76 = shalt.err (!%p73_p12)
}
  0x20   :  { %s77_s0 = scalar_lea.hbm %s128_s1, 128 }
  0x21   :  { %p78_p13 = scmp.ne.s32.totalorder %s128_s1, %s77_s0  ;;  %p81_p0 = scmp.lt.u32.totalorder %s77_s0, %s128_s1 }
  0x23   :  { %p83_p1 = pnand %p81_p0, %p78_p13 }
  0x25   :  { %86 = shalt.err (!%p83_p1)
}
  0x26   :  { %33 = dma.vmem_to_hbm [thread:$0]  %s31_s19, 128, %s128_s1, [#allocation4]  }
  0x27   :  { %89 = dma.done.wait [#allocation4], 128  }
  0x28   :  { %90 = vsyncadd [#allocation4], 4294967168 }
  0x29   :  { %37 = vsyncpa [#allocation3], 1 }
  0x2a   :  { %38 = vsyncpa [#allocation4], 1 }

// kernel: tpu_custom_call.1
= control target key start
LH: loop header
LB: loop body
LE: loop exit
PB: predicated region body
PF: predicated region fallthrough
CT: control target
= control target key end

     0   :  { %v7180_v0 = vmov 0   ;;  %v7273_v25 = vmov 0  ;;  %v7275_v27 = vmov 0  ;;  %v7277_v31 = vmov 0  ;;  %s7120_s1 = inlined_call_operand.vmem [shape: s32[32,1], index: 1, kind: input, shape index: {}]   ;;  %s7121_s2 = inlined_call_operand.vmem [shape: s32[32,1], index: 2, kind: input, shape index: {}]   ;;  %s7122_s0 = inlined_call_operand.vmem [shape: bf16[1,32,16], index: 0, kind: input, shape index: {}]   ;;  %s7123_s3 = inlined_call_operand.vmem [shape: bf16[400,32], index: 3, kind: input, shape index: {}]   ;;  %s7124_s5 = inlined_call_operand.vmem [shape: bf16[800,16], index: 5, kind: input, shape index: {}]   ;;  %s7125_s4 = inlined_call_operand.vmem [shape: f32[1,32], index: 4, kind: input, shape index: {}]   ;;  %s7126_s6 = inlined_call_operand.vmem [shape: f32[1,16], index: 6, kind: input, shape index: {}]   ;;  %s7127_s7 = inlined_call_operand.vmem [shape: f32[1,32,16], index: 7, kind: output, shape index: {}]  }
   0x1   :  { %5093 = vset.pattern.permute.xlu1 %v7180_v0  ;;  %5092 = vset.pattern.permute.xlu0 %v7180_v0  ;;  %v5208_v1 = vld [vmem:[%s7120_s1 + $0x10] sm:$0xff]  ;;  %v5213_v2 = vld [vmem:[%s7120_s1] sm:$0xff]  ;;  %v5218_v3 = vld [vmem:[%s7120_s1 + $0x18] sm:$0xff]  ;;  %v7279_v33 = vmov 0  ;;  %v7281_v37 = vmov 0  ;;  %v7283_v39 = vmov 0 }
   0x2   :  { %v39_v4 = vadd.s32 4294967294, %v5208_v1  ;;  %v37_v5 = vadd.s32 4294967294, %v5213_v2  ;;  %v40_v6 = vadd.s32 4294967294, %v5218_v3  ;;  %v5226_v7 = vld [vmem:[%s7120_s1 + $0x8] sm:$0xff]  ;;  %v33_v9 = vld [vmem:[%s7121_s2] sm:$0xff]  ;;  %v36_v13 = vld [vmem:[%s7121_s2 + $0x18] sm:$0xff] }
   0x3   :  { %v34_v8 = vld [vmem:[%s7121_s2 + $0x8] sm:$0xff]  ;;  %v38_v10 = vadd.s32 4294967294, %v5226_v7  ;;  %v69_v12 = vadd.s32 4294967295, %v33_v9  ;;  %v35_v15 = vld [vmem:[%s7121_s2 + $0x10] sm:$0xff]  ;;  %v72_v20 = vadd.s32 4294967295, %v36_v13  ;;  %v101_v29 = vadd.s32 1, %v33_v9 }
   0x4   :  { %v70_v11 = vadd.s32 4294967295, %v34_v8  ;;  %vm43_vm0 = vcmp.ge.s32.totalorder %v39_v4, 0  ;;  %vm47_vm1 = vcmp.lt.s32.totalorder %v39_v4, 8  ;;  %vm41_vm2 = vcmp.ge.s32.totalorder %v37_v5, 0  ;;  %v133_v40 = vld [vmem:[%s7122_s0] sm:$0xf] }
   0x5   :  { %vm45_vm3 = vcmp.lt.s32.totalorder %v37_v5, 8  ;;  %vm5238_vm4 = vmand %vm43_vm0, %vm47_vm1  ;;  %vm44_vm5 = vcmp.ge.s32.totalorder %v40_v6, 0  ;;  %vm48_vm6 = vcmp.lt.s32.totalorder %v40_v6, 8  ;;  %vm42_vm7 = vcmp.ge.s32.totalorder %v38_v10, 0  ;;  %v135_v43 = vld [vmem:[%s7122_s0 + $0x8] sm:$0xf] }
   0x6   :  { %vm46_vm8 = vcmp.lt.s32.totalorder %v38_v10, 8  ;;  %v237_v16 = vsel %vm5238_vm4, 1, %v7180_v0  ;;  %vm5248_vm9 = vmand %vm41_vm2, %vm45_vm3  ;;  %vm74_vm10 = vcmp.ge.s32.totalorder %v70_v11, 0  ;;  %vm78_vm11 = vcmp.lt.s32.totalorder %v70_v11, 2  ;;  %v134_v46 = vld [vmem:[%s7122_s0 + $0x4] sm:$0xf] }
   0x7   :  { %246 = vperm.xlu1 %5093, %v237_v16   ;;  %v235_v18 = vsel %vm5248_vm9, 1, %v7180_v0  ;;  %vm5255_vm12 = vmand %vm44_vm5, %vm48_vm6  ;;  %vm73_vm14 = vcmp.ge.s32.totalorder %v69_v12, 0  ;;  %vm77_vm15 = vcmp.lt.s32.totalorder %v69_v12, 2  ;;  %v71_v23 = vadd.s32 4294967295, %v35_v15  ;;  %v136_v47 = vld [vmem:[%s7122_s0 + $0xc] sm:$0xf] }
   0x8   :  { %240 = vperm.xlu0 %5092, %v235_v18   ;;  %v238_v21 = vsel %vm5255_vm12, 1, %v7180_v0  ;;  %vm5262_vm13 = vmand %vm42_vm7, %vm46_vm8  ;;  %vm76_vm2 = vcmp.ge.s32.totalorder %v72_v20, 0  ;;  %vm80_vm3 = vcmp.lt.s32.totalorder %v72_v20, 2  ;;  %v102_v26 = vadd.s32 1, %v34_v8  ;;  %v5094_v56 = vld [vmem:[%s7123_s3 + $0x10] sm:$0xff]  }
   0x9   :  { %v236_v24 = vsel %vm5262_vm13, 1, %v7180_v0  ;;  %vm5269_vm0 = vmand %vm74_vm10, %vm78_vm11  ;;  %vm75_vm7 = vcmp.ge.s32.totalorder %v71_v23, 0  ;;  %vm79_vm8 = vcmp.lt.s32.totalorder %v71_v23, 2  ;;  %v104_v32 = vadd.s32 1, %v36_v13  ;;  %4769 = vmatprep.subr.bf16.mxu0 %v5094_v56 }
   0xa   :  { %v7274_v25 = vsel %vm5269_vm0, 4294967295, %v7273_v25  ;;  %vm149_vm1 = vmand %vm5262_vm13, %vm5269_vm0  ;;  %v103_v35 = vadd.s32 1, %v35_v15  ;;  %v54_v38 = vadd.s32 4294967295, %v5226_v7  ;;  %v53_v42 = vadd.s32 4294967295, %v5213_v2  ;;  %4770 = vmatpush3.bf16.msra.mxu0 %v5094_v56 }
   0xb   :  { %249 = vperm.xlu1 %5093, %v238_v21   ;;  %vm5277_vm5 = vmand %vm73_vm14, %vm77_vm15  ;;  %v153_v28 = vsel %vm149_vm1, 1, %v7180_v0  ;;  %vm106_vm14 = vcmp.ge.s32.totalorder %v102_v26, 0  ;;  %vm110_vm15 = vcmp.lt.s32.totalorder %v102_v26, 2  ;;  %v7285_v45 = vmov 0 }
   0xc   :  { %v7276_v27 = vsel %vm5277_vm5, 4294967295, %v7275_v27  ;;  %243 = vperm.xlu0 %5092, %v236_v24   ;;  %vm148_vm6 = vmand %vm5248_vm9, %vm5277_vm5  ;;  %v56_v48 = vadd.s32 4294967295, %v5218_v3  ;;  %v7287_v49 = vmov 0  ;;  %v55_v51 = vadd.s32 4294967295, %v5208_v1 }
   0xd   :  { %v152_v30 = vsel %vm148_vm6, 1, %v7180_v0  ;;  %vm5287_vm10 = vmand %vm76_vm2, %vm80_vm3  ;;  %vm105_vm3 = vcmp.ge.s32.totalorder %v101_v29, 0  ;;  %vm109_vm6 = vcmp.lt.s32.totalorder %v101_v29, 2  ;;  %v87_v4 = vadd.s32 1, %v5208_v1 }
   0xe   :  { %v7278_v31 = vsel %vm5287_vm10, 4294967295, %v7277_v31  ;;  %vm151_vm11 = vmand %vm5255_vm12, %vm5287_vm10  ;;  %v118_v8 = vadd.s32 2, %v5226_v7  ;;  %v117_v9 = vadd.s32 2, %v5213_v2  ;;  %v120_v12 = vadd.s32 2, %v5218_v3 }
   0xf   :  { %160 = vperm.xlu1 %5093, %v153_v28   ;;  %vm5295_vm1 = vmand %vm75_vm7, %vm79_vm8  ;;  %v155_v34 = vsel %vm151_vm11, 1, %v7180_v0  ;;  %vm108_vm8 = vcmp.ge.s32.totalorder %v104_v32, 0  ;;  %vm112_vm11 = vcmp.lt.s32.totalorder %v104_v32, 2  ;;  %v7300_v13 = vmov 0 }
  0x10   :  { %v7280_v33 = vsel %vm5295_vm1, 4294967295, %v7279_v33  ;;  %157 = vperm.xlu0 %5092, %v152_v30   ;;  %vm150_vm2 = vmand %vm5238_vm4, %vm5295_vm1  ;;  %v119_v15 = vadd.s32 2, %v5208_v1  ;;  %v7302_v17 = vmov 0  ;;  %v7304_v18 = vmov 0  ;;  %v5458_v1 = vld [vmem:[%s7123_s3 + $0x8] sm:$0xff]  }
  0x11   :  { %v154_v36 = vsel %vm150_vm2, 1, %v7180_v0  ;;  %vm5305_vm10 = vmand %vm106_vm14, %vm110_vm15  ;;  %vm107_vm14 = vcmp.ge.s32.totalorder %v103_v35, 0  ;;  %vm111_vm15 = vcmp.lt.s32.totalorder %v103_v35, 2  ;;  %v1182_v19 = vsel %vm5269_vm0, 1, %v7180_v0  ;;  %4775 = vmatprep.subr.bf16.mxu0 %v5458_v1 }
  0x12   :  { %v7282_v37 = vsel %vm5305_vm10, 4294967295, %v7281_v37  ;;  %vm473_vm7 = vmand %vm5262_vm13, %vm5305_vm10  ;;  %v1181_v20 = vsel %vm5277_vm5, 1, %v7180_v0  ;;  %v7306_v21 = vmov 0  ;;  %v86_v22 = vadd.s32 1, %v5226_v7 }
  0x13   :  { %166 = vperm.xlu1 %5093, %v155_v34   ;;  %vm5314_vm1 = vmand %vm105_vm3, %vm109_vm6  ;;  %v477_v41 = vsel %vm473_vm7, 1, %v7180_v0  ;;  %vm58_vm3 = vcmp.ge.s32.totalorder %v54_v38, 0  ;;  %vm62_vm6 = vcmp.lt.s32.totalorder %v54_v38, 8  ;;  %v85_v23 = vadd.s32 1, %v5213_v2 }
  0x14   :  { %v7284_v39 = vsel %vm5314_vm1, 4294967295, %v7283_v39  ;;  %163 = vperm.xlu0 %5092, %v154_v36   ;;  %vm472_vm13 = vmand %vm5248_vm9, %vm5314_vm1  ;;  %v7308_v24 = vmov 0  ;;  %v88_v2 = vadd.s32 1, %v5218_v3  ;;  %v7341_v3 = vmov 0 }
  0x15   :  { %v476_v44 = vsel %vm472_vm13, 1, %v7180_v0  ;;  %vm5331_vm2 = vmand %vm108_vm8, %vm112_vm11  ;;  %vm137_vm8 = vcmask 125952   ;;  %vm57_vm13 = vcmp.ge.s32.totalorder %v53_v42, 0 }
  0x16   :  { %v7286_v45 = vsel %vm5331_vm2, 4294967295, %v7285_v45  ;;  %vm475_vm9 = vmand %vm5255_vm12, %vm5331_vm2  ;;  %vm61_vm12 = vcmp.lt.s32.totalorder %v53_v42, 8  ;;  %138 = vst.msk [vmem:[#allocation2 + $0x4] sm:$0xf] %vm137_vm8, %v133_v40 }
  0x17   :  { %484 = vperm.xlu1 %5093, %v477_v41   ;;  %vm5346_vm7 = vmand %vm107_vm14, %vm111_vm15  ;;  %v479_v50 = vsel %vm475_vm9, 1, %v7180_v0  ;;  %139 = vst.msk [vmem:[#allocation2 + $0x8] sm:$0xf] %vm137_vm8, %v134_v46  ;;  %vm60_vm15 = vcmp.ge.s32.totalorder %v56_v48, 0  ;;  %vm64_vm9 = vcmp.lt.s32.totalorder %v56_v48, 8 }
  0x18   :  { %v7288_v49 = vsel %vm5346_vm7, 4294967295, %v7287_v49  ;;  %481 = vperm.xlu0 %5092, %v476_v44   ;;  %vm474_vm11 = vmand %vm5238_vm4, %vm5346_vm7  ;;  %140 = vst.msk [vmem:[#allocation2 + $0xc] sm:$0xf] %vm137_vm8, %v135_v43 }
  0x19   :  { %141 = vst.msk [vmem:[#allocation2 + $0x10] sm:$0xf] %vm137_vm8, %v136_v47  ;;  %v478_v52 = vsel %vm474_vm11, 1, %v7180_v0  ;;  %vm5359_vm14 = vmand %vm58_vm3, %vm62_vm6  ;;  %vm59_vm6 = vcmp.ge.s32.totalorder %v55_v51, 0  ;;  %vm63_vm8 = vcmp.lt.s32.totalorder %v55_v51, 8 }
  0x1a   :  { %vm664_vm4 = vmand %vm5359_vm14, %vm5269_vm0  ;;  %v852_v62 = vsel %vm5359_vm14, 1, %v7180_v0 }
  0x1b   :  { %490 = vperm.xlu1 %5093, %v479_v50   ;;  %vm5367_vm7 = vmand %vm57_vm13, %vm61_vm12  ;;  %v668_v55 = vsel %vm664_vm4, 1, %v7180_v0  ;;  %vm7295_vm13 = vnez %v7278_v31 }
  0x1c   :  { %487 = vperm.xlu0 %5092, %v478_v52   ;;  %vm663_vm3 = vmand %vm5367_vm7, %vm5277_vm5  ;;  %v851_v63 = vsel %vm5367_vm7, 1, %v7180_v0  ;;  %v1184_v26 = vsel %vm7295_vm13, 1, %v7180_v0  ;;  %vm93_vm5 = vcmp.lt.s32.totalorder %v85_v23, 8 }
  0x1d   :  { %v667_v57 = vsel %vm663_vm3, 1, %v7180_v0  ;;  %vm5380_vm11 = vmand %vm60_vm15, %vm64_vm9  ;;  %vm7298_vm15 = vnez %v7280_v33 }
  0x1e   :  { %vm666_vm12 = vmand %vm5380_vm11, %vm7295_vm13  ;;  %v854_v5 = vsel %vm5380_vm11, 1, %v7180_v0  ;;  %vm89_vm13 = vcmp.ge.s32.totalorder %v85_v23, 0  ;;  %v5691_v35 = vld [vmem:[#allocation2 + $0x8] sm:$0xf] }
  0x1f   :  { %675 = vperm.xlu1 %5093, %v668_v55   ;;  %vm5388_vm4 = vmand %vm59_vm6, %vm63_vm8  ;;  %v670_v60 = vsel %vm666_vm12, 1, %v7180_v0  ;;  %vm91_vm8 = vcmp.ge.s32.totalorder %v87_v4, 0  ;;  %vm95_vm12 = vcmp.lt.s32.totalorder %v87_v4, 8 }
  0x20   :  { %672 = vperm.xlu0 %5092, %v667_v57   ;;  %vm665_vm9 = vmand %vm5388_vm4, %vm7298_vm15  ;;  %v853_v6 = vsel %vm5388_vm4, 1, %v7180_v0 }
  0x21   :  { %v669_v61 = vsel %vm665_vm9, 1, %v7180_v0  ;;  %vm991_vm3 = vmand %vm5359_vm14, %vm5305_vm10  ;;  %vm7299_vm9 = vnez %v7288_v49  ;;  %vm126_vm10 = vcmp.lt.s32.totalorder %v118_v8, 8 }
  0x22   :  { %vm990_vm6 = vmand %vm5367_vm7, %vm5314_vm1  ;;  %v995_v10 = vsel %vm991_vm3, 1, %v7180_v0  ;;  %vm122_vm1 = vcmp.ge.s32.totalorder %v118_v8, 0  ;;  %vm121_vm3 = vcmp.ge.s32.totalorder %v117_v9, 0  ;;  %v1448_v34 = vsel %vm7299_vm9, 1, %v7180_v0 }
  0x23   :  { %681 = vperm.xlu1 %5093, %v670_v60   ;;  %v994_v11 = vsel %vm990_vm6, 1, %v7180_v0  ;;  %vm993_vm14 = vmand %vm5380_vm11, %vm5331_vm2  ;;  %vm125_vm6 = vcmp.lt.s32.totalorder %v117_v9, 8  ;;  %vm7312_vm11 = vnez %v7284_v39 }
  0x24   :  { %678 = vperm.xlu0 %5092, %v669_v61   ;;  %vm992_vm7 = vmand %vm5388_vm4, %vm7299_vm9  ;;  %v997_v14 = vsel %vm993_vm14, 1, %v7180_v0  ;;  %vm128_vm14 = vcmp.lt.s32.totalorder %v120_v12, 8  ;;  %v1446_v29 = vsel %vm7312_vm11, 1, %v7180_v0 }
  0x25   :  { %vm5432_vm15 = vmand %vm91_vm8, %vm95_vm12  ;;  %v996_v16 = vsel %vm992_vm7, 1, %v7180_v0  ;;  %vm124_vm12 = vcmp.ge.s32.totalorder %v120_v12, 0  ;;  %vm127_vm7 = vcmp.lt.s32.totalorder %v119_v15, 8  ;;  %vm94_vm8 = vcmp.lt.s32.totalorder %v86_v22, 8 }
  0x26   :  { %v7301_v13 = vsel %vm5432_vm15, 4294967295, %v7300_v13  ;;  %vm5443_vm4 = vmand %vm122_vm1, %vm126_vm10  ;;  %vm123_vm1 = vcmp.ge.s32.totalorder %v119_v15, 0  ;;  %vm7321_vm15 = vnez %v7278_v31 }
  0x27   :  { %859 = vperm.xlu1 %5093, %v852_v62   ;;  %v7303_v17 = vsel %vm5443_vm4, 4294967295, %v7302_v17  ;;  %vm5451_vm2 = vmand %vm121_vm3, %vm125_vm6  ;;  %vm7311_vm6 = vnez %v7282_v37  ;;  %vm7323_vm4 = vnez %v7301_v13 }
  0x28   :  { %856 = vperm.xlu0 %5092, %v851_v63   ;;  %v7305_v18 = vsel %vm5451_vm2, 4294967295, %v7304_v18  ;;  %vm5470_vm3 = vmand %vm124_vm12, %vm128_vm14  ;;  %vm7310_vm12 = vnez %v7280_v33  ;;  %vm7313_vm14 = vnez %v7286_v45  ;;  %v1447_v28 = vsel %vm7311_vm6, 1, %v7180_v0 }
  0x29   :  { %v7307_v21 = vsel %vm5470_vm3, 4294967295, %v7306_v21  ;;  %vm5481_vm10 = vmand %vm123_vm1, %vm127_vm7  ;;  %v1183_v7 = vsel %vm7310_vm12, 1, %v7180_v0  ;;  %vm90_vm7 = vcmp.ge.s32.totalorder %v86_v22, 0  ;;  %vm92_vm12 = vcmp.ge.s32.totalorder %v88_v2, 0 }
  0x2a   :  { %v7309_v24 = vsel %vm5481_vm10, 4294967295, %v7308_v24  ;;  %vm5518_vm1 = vmand %vm90_vm7, %vm94_vm8  ;;  %vm96_vm3 = vcmp.lt.s32.totalorder %v88_v2, 8  ;;  %v1449_v32 = vsel %vm7313_vm14, 1, %v7180_v0  ;;  %v1803_v46 = vsel %vm7323_vm4, 1, %v7180_v0 }
  0x2b   :  { %865 = vperm.xlu1 %5093, %v854_v5   ;;  %vm5522_vm2 = vmand %vm89_vm13, %vm93_vm5  ;;  %vm7318_vm5 = vnez %v7276_v27  ;;  %v1802_v42 = vsel %vm5518_vm1, 1, %v7180_v0 }
  0x2c   :  { %862 = vperm.xlu0 %5092, %v853_v6   ;;  %vm1624_vm8 = vmand %vm5518_vm1, %vm5269_vm0  ;;  %vm7322_vm0 = vnez %v7280_v33  ;;  %v1801_v43 = vsel %vm5522_vm2, 1, %v7180_v0 }
  0x2d   :  { %vm1623_vm13 = vmand %vm5522_vm2, %vm7318_vm5  ;;  %v1628_v36 = vsel %vm1624_vm8, 1, %v7180_v0  ;;  %vm7326_vm8 = vnez %v7274_v25 }
  0x2e   :  { %vm5540_vm7 = vmand %vm92_vm12, %vm96_vm3  ;;  %v1627_v38 = vsel %vm1623_vm13, 1, %v7180_v0  ;;  %vm7328_vm13 = vnez %v7305_v18  ;;  %v5659_v18 = vld [vmem:[#allocation2 + $0x10] sm:$0x3] }
  0x2f   :  { %1002 = vperm.xlu1 %5093, %v995_v10   ;;  %vm1626_vm10 = vmand %vm5540_vm7, %vm7321_vm15  ;;  %v1804_v44 = vsel %vm5540_vm7, 1, %v7180_v0  ;;  %v2315_v55 = vsel %vm7328_vm13, 1, %v7180_v0 }
  0x30   :  { %999 = vperm.xlu0 %5092, %v994_v11   ;;  %vm1625_vm5 = vmand %vm7323_vm4, %vm7322_vm0  ;;  %v1630_v40 = vsel %vm1626_vm10, 1, %v7180_v0 }
  0x31   :  { %v1629_v41 = vsel %vm1625_vm5, 1, %v7180_v0  ;;  %vm1941_vm10 = vmand %vm5518_vm1, %vm7311_vm6  ;;  %vm7325_vm1 = vnez %v7303_v17 }
  0x32   :  { %vm1940_vm3 = vmand %vm5522_vm2, %vm7312_vm11  ;;  %v1945_v47 = vsel %vm1941_vm10, 1, %v7180_v0 }
  0x33   :  { %1008 = vperm.xlu1 %5093, %v997_v14   ;;  %v1944_v48 = vsel %vm1940_vm3, 1, %v7180_v0  ;;  %vm1943_vm12 = vmand %vm5540_vm7, %vm7313_vm14  ;;  %vm7329_vm7 = vnez %v7276_v27  ;;  %v2316_v27 = vsel %vm7325_vm1, 1, %v7180_v0 }
  0x34   :  { %1005 = vperm.xlu0 %5092, %v996_v16   ;;  %v1947_v50 = vsel %vm1943_vm12, 1, %v7180_v0  ;;  %vm7324_vm2 = vmand %vm7323_vm4, %vm7299_vm9  ;;  %vm7331_vm4 = vnez %v7307_v21  ;;  %vm7333_vm12 = vnez %v7309_v24 }
  0x35   :  { %v1946_v51 = vsel %vm7324_vm2, 1, %v7180_v0  ;;  %vm7327_vm5 = vmand %vm7325_vm1, %vm7326_vm8  ;;  %v2318_v31 = vsel %vm7331_vm4, 1, %v7180_v0  ;;  %v2317_v33 = vsel %vm7333_vm12, 1, %v7180_v0 }
  0x36   :  { %v2132_v52 = vsel %vm7327_vm5, 1, %v7180_v0  ;;  %vm7330_vm10 = vmand %vm7328_vm13, %vm7329_vm7 }
  0x37   :  { %1189 = vperm.xlu1 %5093, %v1182_v19   ;;  %v2131_v53 = vsel %vm7330_vm10, 1, %v7180_v0  ;;  %vm7332_vm3 = vmand %vm7331_vm4, %vm7321_vm15 }
  0x38   :  { %1186 = vperm.xlu0 %5092, %v1181_v20   ;;  %v2134_v54 = vsel %vm7332_vm3, 1, %v7180_v0  ;;  %vm7334_vm2 = vmand %vm7333_vm12, %vm7322_vm0 }
  0x39   :  { %v2133_v25 = vsel %vm7334_vm2, 1, %v7180_v0  ;;  %vm7335_vm0 = vmand %vm7325_vm1, %vm7311_vm6 }
  0x3a   :  { %v2455_v56 = vsel %vm7335_vm0, 1, %v7180_v0  ;;  %vm7336_vm15 = vmand %vm7328_vm13, %vm7312_vm11 }
  0x3b   :  { %1195 = vperm.xlu1 %5093, %v1184_v26   ;;  %v2454_v57 = vsel %vm7336_vm15, 1, %v7180_v0  ;;  %vm7337_vm8 = vmand %vm7331_vm4, %vm7313_vm14 }
  0x3c   :  { %1192 = vperm.xlu0 %5092, %v1183_v7   ;;  %v2457_v58 = vsel %vm7337_vm8, 1, %v7180_v0  ;;  %vm7338_vm6 = vmand %vm7333_vm12, %vm7299_vm9  ;;  %vm263_vm9 = vcmask 1041408   ;;  %vm264_vm12 = vcmask 1045508   ;;  %v5679_v7 = vld [vmem:[#allocation2 + $0x4] sm:$0xf] }
  0x3d   :  { %v2456_v37 = vsel %vm7338_vm6, 1, %v7180_v0  ;;  %vm5655_vm0 = vmor %vm263_vm9, %vm264_vm12 }
  0x3f   :  { %1454 = vperm.xlu1 %5093, %v1447_v28  }
  0x40   :  { %1451 = vperm.xlu0 %5092, %v1446_v29   ;;  %v5682_v29 = vld [vmem:[#allocation2] sm:$0xc] }
  0x43   :  { %1460 = vperm.xlu1 %5093, %v1449_v32  }
  0x44   :  { %1457 = vperm.xlu0 %5092, %v1448_v34  }
  0x47   :  { %1635 = vperm.xlu1 %5093, %v1628_v36  }
  0x48   :  { %1632 = vperm.xlu0 %5092, %v1627_v38  }
  0x4b   :  { %1641 = vperm.xlu1 %5093, %v1630_v40  }
  0x4c   :  { %1638 = vperm.xlu0 %5092, %v1629_v41  }
  0x4f   :  { %1809 = vperm.xlu1 %5093, %v1802_v42  }
  0x50   :  { %1806 = vperm.xlu0 %5092, %v1801_v43  }
  0x53   :  { %1815 = vperm.xlu1 %5093, %v1804_v44   ;;  %v5697_v44 = vld [vmem:[#allocation2 + $0xc] sm:$0xf] }
  0x54   :  { %1812 = vperm.xlu0 %5092, %v1803_v46  }
  0x57   :  { %1952 = vperm.xlu1 %5093, %v1945_v47  }
  0x58   :  { %1949 = vperm.xlu0 %5092, %v1944_v48  }
  0x5b   :  { %1958 = vperm.xlu1 %5093, %v1947_v50  }
  0x5c   :  { %1955 = vperm.xlu0 %5092, %v1946_v51  }
  0x5f   :  { %2139 = vperm.xlu1 %5093, %v2132_v52  }
  0x60   :  { %2136 = vperm.xlu0 %5092, %v2131_v53  }
  0x63   :  { %2145 = vperm.xlu1 %5093, %v2134_v54  }
  0x64   :  { %2142 = vperm.xlu0 %5092, %v2133_v25  }
  0x67   :  { %2323 = vperm.xlu1 %5093, %v2316_v27  }
  0x68   :  { %2320 = vperm.xlu0 %5092, %v2315_v55  }
  0x6b   :  { %2329 = vperm.xlu1 %5093, %v2318_v31  }
  0x6c   :  { %2326 = vperm.xlu0 %5092, %v2317_v33  }
  0x6f   :  { %2462 = vperm.xlu1 %5093, %v2455_v56  }
  0x70   :  { %2459 = vperm.xlu0 %5092, %v2454_v57  }
  0x73   :  { %2468 = vperm.xlu1 %5093, %v2457_v58  }
  0x74   :  { %2465 = vperm.xlu0 %5092, %v2456_v37  }
  0x86   :  { %v247_v39 = vpop.permute.xlu1 %246 }
  0x87   :  { %v241_v59 = vpop.permute.xlu0 %240  ;;  %vm253_vm1 = vcmp.eq.s32.totalorder %v247_v39, 1 }
  0x88   :  { %vm251_vm5 = vcmp.eq.s32.totalorder %v241_v59, 1  ;;  %vm257_vm14 = vmpackc.low %vm253_vm1, %vm253_vm1 }
  0x89   :  { %vm255_vm10 = vmpackc.low %vm251_vm5, %vm251_vm5  ;;  %v261_v4 = vsel %vm257_vm14, 65537, %v7180_v0 }
  0x8a   :  { %v250_v60 = vpop.permute.xlu1 %249  ;;  %v259_v5 = vsel %vm255_vm10, 65537, %v7180_v0  ;;  %v271_v9 = vrot.slane %v261_v4, 6 }
  0x8b   :  { %vm254_vm11 = vcmp.eq.s32.totalorder %v250_v60, 1  ;;  %v244_v61 = vpop.permute.xlu0 %243  ;;  %v266_v10 = vrot.slane %v259_v5, 6 }
  0x8c   :  { %vm258_vm13 = vmpackc.low %vm254_vm11, %vm254_vm11  ;;  %vm252_vm7 = vcmp.eq.s32.totalorder %v244_v61, 1  ;;  %v273_v15 = vrot.slane %v271_v9, 4 }
  0x8d   :  { %v262_v62 = vsel %vm258_vm13, 65537, %v7180_v0  ;;  %vm256_vm4 = vmpackc.low %vm252_vm7, %vm252_vm7  ;;  %v267_v16 = vrot.slane %v266_v10, 4  ;;  %vm5684_vm14 = vcmp.ne.s16.totalorder %v266_v10, 0 }
  0x8e   :  { %v161_v45 = vpop.permute.xlu1 %160  ;;  %v274_v6 = vrot.slane %v262_v62, 6  ;;  %v260_v8 = vsel %vm256_vm4, 65537, %v7180_v0  ;;  %v7342_v3 = vsel %vm5684_vm14, 4294967295, %v7341_v3  ;;  %v282_v50 = vsel %vm5684_vm14, %v5682_v29, 0 }
  0x8f   :  { %v158_v49 = vpop.permute.xlu0 %157  ;;  %v268_v11 = vrot.slane %v260_v8, 6  ;;  %vm169_vm11 = vcmp.eq.s32.totalorder %v161_v45, 1 }
  0x90   :  { %v5653_v12 = vrot.slane %v274_v6, 4  ;;  %vm168_vm15 = vcmp.eq.s32.totalorder %v158_v49, 1  ;;  %v5669_v22 = vsel %vm5655_vm0, %v273_v15, %v274_v6  ;;  %vm173_vm13 = vmpackc.low %vm169_vm11, %vm169_vm11  ;;  %vm181_vm11 = vsmask.f32 5392 }
  0x91   :  { %v270_v17 = vrot.slane %v268_v11, 4  ;;  %v5665_v20 = vsel %vm5655_vm0, %v267_v16, %v268_v11  ;;  %vm172_vm1 = vmpackc.low %vm168_vm15, %vm168_vm15  ;;  %vm7157_vm10 = vcmp.ne.s16.totalorder %v5669_v22, 0  ;;  %v177_v34 = vsel %vm173_vm13, 65537, %v7180_v0 }
  0x92   :  { %v167_v63 = vpop.permute.xlu1 %166  ;;  %vm7156_vm6 = vcmp.ne.s16.totalorder %v5653_v12, 0  ;;  %vm7160_vm7 = vcmp.ne.s16.totalorder %v5665_v20, 0  ;;  %v176_v2 = vsel %vm172_vm1, 65537, %v7180_v0  ;;  %v193_v53 = vshrl.u32 %v177_v34, 16 }
  0x93   :  { %vm171_vm3 = vcmp.eq.s32.totalorder %v167_v63, 1  ;;  %v164_v13 = vpop.permute.xlu0 %163  ;;  %v286_v23 = vsel %vm7156_vm6, %v5659_v18, 0  ;;  %v5676_v26 = vsel %vm5655_vm0, %v270_v17, %v271_v9  ;;  %v184_v38 = vshrl.u32 %v176_v2, 16  ;;  %v5721_v9 = vld [vmem:[%s7123_s3 + $0x18] sm:$0xff]  }
  0x94   :  { %vm175_vm2 = vmpackc.low %vm171_vm3, %vm171_vm3  ;;  %vm170_vm8 = vcmp.eq.s32.totalorder %v164_v13, 1  ;;  %v4463_v32 = vcombine.low %v286_v23, %v286_v23  ;;  %vm7155_vm4 = vcmp.ne.s16.totalorder %v5676_v26, 0  ;;  %v187_v40 = vshll.u32 %v176_v2, 16 }
  0x95   :  { %v179_v19 = vsel %vm175_vm2, 65537, %v7180_v0  ;;  %vm174_vm5 = vmpackc.low %vm170_vm8, %vm170_vm8  ;;  %v283_v42 = vsel %vm7160_vm7, %v5679_v7, 0  ;;  %v284_v51 = vsel %vm7155_vm4, %v5691_v35, 0  ;;  %v196_v54 = vshll.u32 %v177_v34, 16 }
  0x96   :  { %v213_v24 = vshrl.u32 %v179_v19, 16  ;;  %v216_v28 = vshll.u32 %v179_v19, 16  ;;  %v178_v30 = vsel %vm174_vm5, 65537, %v7180_v0  ;;  %v485_v36 = vpop.permute.xlu1 %484  ;;  %v306_v52 = vrot.slane %v4463_v32, 2 }
  0x97   :  { %v482_v21 = vpop.permute.xlu0 %481  ;;  %v203_v46 = vshrl.u32 %v178_v30, 16  ;;  %v206_v47 = vshll.u32 %v178_v30, 16  ;;  %vm493_vm3 = vcmp.eq.s32.totalorder %v485_v36, 1  ;;  %v4461_v25 = vcombine.low %v282_v50, %v283_v42 }
  0x98   :  { %v215_v41 = vrot.slane %v213_v24, 6  ;;  %v218_v43 = vrot.slane %v216_v28, 7  ;;  %vm492_vm9 = vcmp.eq.s32.totalorder %v482_v21, 1  ;;  %v186_v27 = vrot.slane %v184_v38, 6  ;;  %vm497_vm15 = vmpackc.low %vm493_vm3, %vm493_vm3 }
  0x99   :  { %v189_v55 = vrot.slane %v187_v40, 7  ;;  %vm496_vm12 = vmpackc.low %vm492_vm9, %vm492_vm9  ;;  %v285_v31 = vsel %vm7157_vm10, %v5697_v44, 0  ;;  %v205_v56 = vrot.slane %v203_v46, 6  ;;  %v208_v57 = vrot.slane %v206_v47, 7 }
  0x9a   :  { %v219_v33 = vor.u32 %v218_v43, %v215_v41  ;;  %v4462_v58 = vcombine.low %v284_v51, %v285_v31  ;;  %vm180_vm8 = vsmask.f32 1280  ;;  %vm7167_vm1 = vcmask 1045504   ;;  %v491_v39 = vpop.permute.xlu1 %490 }
  0x9b   :  { %v488_v48 = vpop.permute.xlu0 %487  ;;  %v500_v37 = vsel %vm496_vm12, 65537, %v7180_v0  ;;  %v303_v60 = vrot.slane %v4461_v25, 2  ;;  %vm7171_vm13 = vcmask 130048   ;;  %v195_v45 = vrot.slane %v193_v53, 6  ;;  %vm5730_vm3 = vmor %vm180_vm8, %vm181_vm11 }
  0x9c   :  { %vm494_vm2 = vcmp.eq.s32.totalorder %v488_v48, 1  ;;  %v304_v61 = vrot.slane %v4462_v58, 2  ;;  %v198_v62 = vrot.slane %v196_v54, 7  ;;  %v5713_v49 = vor.u32 %v189_v55, %v186_v27  ;;  %v143_v27 = vld [vmem:[#allocation2] sm:$0xe] }
  0x9d   :  { %vm5709_vm5 = vmpackc.low %vm494_vm2, %vm494_vm2  ;;  %v501_v63 = vsel %vm497_vm15, 65537, %v7180_v0  ;;  %v221_v4 = vrot.slane %v219_v33, 4  ;;  %v209_v5 = vor.u32 %v208_v57, %v205_v56  ;;  %v508_v10 = vshrl.u32 %v500_v37, 16 }
  0x9e   :  { %v305_v6 = vsel %vm7167_vm1, %v303_v60, %v304_v61  ;;  %v307_v8 = vsel %vm7167_vm1, %v304_v61, %v306_v52  ;;  %v511_v11 = vshll.u32 %v500_v37, 16  ;;  %vm495_vm9 = vcmp.eq.s32.totalorder %v491_v39, 1 }
  0x9f   :  { %v502_v13 = vsel %vm5709_vm5, 65537, %v7180_v0  ;;  %4771 = vmatprep.mubr.msk.bf16.mxu0 %vm7171_vm13, %v305_v6  ;;  %v191_v16 = vrot.slane %v5713_v49, 4  ;;  %v199_v17 = vor.u32 %v198_v62, %v195_v45  ;;  %v517_v19 = vshrl.u32 %v501_v63, 16  ;;  %vm499_vm12 = vmpackc.low %vm495_vm9, %vm495_vm9  ;;  %v673_v34 = vpop.permute.xlu0 %672 }
  0xa0   :  { %4772 = vmatmul.mubr.msk.bf16.vlgmr.msra.gmra.mrb[0].mxu0 %vm7171_vm13, %v307_v8  ;;  %v527_v21 = vshrl.u32 %v502_v13, 16  ;;  %v530_v23 = vshll.u32 %v502_v13, 16  ;;  %vm5737_vm2 = vcmp.ne.s16.totalorder %v221_v4, 0  ;;  %v7347_v24 = vmov 0 }
  0xa1   :  { %4776 = vmatpush3.bf16.msra.mxu0 %v5458_v1  ;;  %v7348_v24 = vsel %vm5737_vm2, 4294967295, %v7347_v24  ;;  %v211_v2 = vrot.slane %v209_v5, 4  ;;  %v510_v28 = vrot.slane %v508_v10, 5  ;;  %v513_v30 = vrot.slane %v511_v11, 6 }
  0xa2   :  { %4781 = vmatprep.subr.bf16.mxu0 %v5721_v9  ;;  %v520_v32 = vshll.u32 %v501_v63, 16  ;;  %v5743_v36 = vsel %vm5730_vm3, %v191_v16, %v199_v17  ;;  %v503_v1 = vsel %vm499_vm12, 65537, %v7180_v0  ;;  %v231_v38 = vsel %vm5737_vm2, %v5659_v18, 0  ;;  %v676_v18 = vpop.permute.xlu1 %675 }
  0xa3   :  { %v529_v40 = vrot.slane %v527_v21, 5  ;;  %v532_v41 = vrot.slane %v530_v23, 6  ;;  %v201_v42 = vrot.slane %v199_v17, 4  ;;  %v5751_v43 = vsel %vm5730_vm3, %v211_v2, %v219_v33  ;;  %v679_v25 = vpop.permute.xlu0 %678 }
  0xa4   :  { %v519_v46 = vrot.slane %v517_v19, 5  ;;  %v5753_v47 = vor.u32 %v513_v30, %v510_v28  ;;  %vm7158_vm15 = vcmp.ne.s16.totalorder %v5743_v36, 0  ;;  %v522_v48 = vrot.slane %v520_v32, 6 }
  0xa5   :  { %v537_v50 = vshrl.u32 %v503_v1, 16  ;;  %v540_v51 = vshll.u32 %v503_v1, 16  ;;  %v4469_v52 = vcombine.low %v231_v38, %v231_v38  ;;  %v5758_v53 = vsel %vm5730_vm3, %v201_v42, %v209_v5 }
  0xa6   :  { %vm504_vm8 = vsmask.f32 2304  ;;  %vm505_vm11 = vsmask.f32 6416  ;;  %vm7159_vm5 = vcmp.ne.s16.totalorder %v5751_v43, 0  ;;  %v533_v54 = vor.u32 %v532_v41, %v529_v40  ;;  %v682_v4 = vpop.permute.xlu1 %681 }
  0xa7   :  { %vm7162_vm9 = vcmp.ne.s16.totalorder %v5713_v49, 0  ;;  %v228_v55 = vsel %vm7158_vm15, %v5679_v7, 0  ;;  %v515_v31 = vrot.slane %v5753_v47, 4  ;;  %vm683_vm12 = vcmp.eq.s32.totalorder %v673_v34, 1  ;;  %vm5767_vm6 = vmor %vm504_vm8, %vm505_vm11 }
  0xa8   :  { %vm7161_vm4 = vcmp.ne.s16.totalorder %v5758_v53, 0  ;;  %v523_v33 = vor.u32 %v522_v48, %v519_v46  ;;  %v539_v57 = vrot.slane %v537_v50, 5  ;;  %v542_v58 = vrot.slane %v540_v51, 6  ;;  %vm687_vm15 = vmpackc.low %vm683_vm12, %vm683_vm12 }
  0xa9   :  { %v402_v37 = vshrl.u32 %v4469_v52, 16  ;;  %v405_v39 = vshll.u32 %v4469_v52, 16  ;;  %v230_v59 = vsel %vm7159_vm5, %v5697_v44, 0  ;;  %vm685_vm10 = vcmp.eq.s32.totalorder %v679_v25, 1 }
  0xaa   :  { %v227_v60 = vsel %vm7162_vm9, %v143_v27, 0  ;;  %v535_v61 = vrot.slane %v533_v54, 4  ;;  %v229_v62 = vsel %vm7161_vm4, %v5691_v35, 0  ;;  %v5781_v63 = vsel %vm5767_vm6, %v515_v31, %v523_v33  ;;  %vm689_vm11 = vmpackc.low %vm685_vm10, %vm685_vm10 }
  0xab   :  { %v4467_v45 = vcombine.low %v227_v60, %v228_v55  ;;  %vm684_vm8 = vcmp.eq.s32.totalorder %v676_v18, 1  ;;  %v4468_v5 = vcombine.low %v229_v62, %v230_v59  ;;  %v543_v6 = vor.u32 %v542_v58, %v539_v57  ;;  %v5818_v62 = vld [vmem:[%s7123_s3 + $0x30] sm:$0xff]  }
  0xac   :  { %vm7169_vm5 = vsmask.f32 6400  ;;  %v404_v8 = vrot.slane %v402_v37, 1  ;;  %v407_v10 = vrot.slane %v405_v39, 2  ;;  %v525_v11 = vrot.slane %v523_v33, 4  ;;  %vm688_vm4 = vmpackc.low %vm684_vm8, %vm684_vm8 }
  0xad   :  { %v691_v13 = vsel %vm687_vm15, 65537, %v7180_v0  ;;  %vm7166_vm12 = vcmp.ne.s16.totalorder %v5753_v47, 0  ;;  %vm7163_vm7 = vcmp.ne.s16.totalorder %v5781_v63, 0  ;;  %v5788_v16 = vsel %vm5767_vm6, %v535_v61, %v543_v6 }
  0xae   :  { %vm686_vm9 = vcmp.eq.s32.totalorder %v682_v4, 1  ;;  %v5792_v17 = vsel %vm5767_vm6, %v525_v11, %v533_v54  ;;  %v693_v19 = vsel %vm689_vm11, 65537, %v7180_v0  ;;  %v385_v21 = vshrl.u32 %v4467_v45, 16 }
  0xaf   :  { %v388_v23 = vshll.u32 %v4467_v45, 16  ;;  %v696_v2 = vshrl.u32 %v691_v13, 16  ;;  %v699_v28 = vshll.u32 %v691_v13, 16  ;;  %v393_v30 = vshrl.u32 %v4468_v5, 16  ;;  %vm690_vm8 = vmpackc.low %vm686_vm9, %vm686_vm9 }
  0xb0   :  { %v396_v32 = vshll.u32 %v4468_v5, 16  ;;  %v552_v34 = vsel %vm7163_vm7, %v5679_v7, 0  ;;  %vm7164_vm10 = vcmp.ne.s16.totalorder %v5788_v16, 0  ;;  %v692_v1 = vsel %vm688_vm4, 65537, %v7180_v0 }
  0xb1   :  { %v387_v38 = vrot.slane %v385_v21, 1  ;;  %v715_v40 = vshrl.u32 %v693_v19, 16  ;;  %v718_v41 = vshll.u32 %v693_v19, 16  ;;  %v390_v42 = vrot.slane %v388_v23, 2  ;;  %v5829_v19 = vld [vmem:[#allocation2 + $0x10] sm:$0x7] }
  0xb2   :  { %v395_v46 = vrot.slane %v393_v30, 1  ;;  %v551_v48 = vsel %vm7166_vm12, %v5682_v29, 0  ;;  %vm7165_vm15 = vcmp.ne.s16.totalorder %v5792_v17, 0  ;;  %v398_v50 = vrot.slane %v396_v32, 2  ;;  %v857_v30 = vpop.permute.xlu0 %856 }
  0xb3   :  { %v408_v51 = vor.u32 %v407_v10, %v404_v8  ;;  %v4473_v52 = vcombine.low %v551_v48, %v552_v34  ;;  %v554_v18 = vsel %vm7164_vm10, %v5697_v44, 0  ;;  %v698_v54 = vrot.slane %v696_v2, 5 }
  0xb4   :  { %v701_v25 = vrot.slane %v699_v28, 6  ;;  %v705_v27 = vshrl.u32 %v692_v1, 16  ;;  %v708_v55 = vshll.u32 %v692_v1, 16  ;;  %v391_v31 = vor.u32 %v390_v42, %v387_v38 }
  0xb5   :  { %v399_v33 = vor.u32 %v398_v50, %v395_v46  ;;  %v553_v57 = vsel %vm7165_vm15, %v5691_v35, 0  ;;  %v694_v58 = vsel %vm690_vm8, 65537, %v7180_v0  ;;  %v717_v37 = vrot.slane %v715_v40, 5  ;;  %v860_v40 = vpop.permute.xlu1 %859 }
  0xb6   :  { %v720_v39 = vrot.slane %v718_v41, 6  ;;  %v545_v59 = vrot.slane %v543_v6, 4  ;;  %v4474_v60 = vcombine.low %v553_v57, %v554_v18  ;;  %v5820_v4 = vor.u32 %v701_v25, %v698_v54  ;;  %v863_v25 = vpop.permute.xlu0 %862 }
  0xb7   :  { %v400_v61 = vsel %vm7169_vm5, %v391_v31, %v399_v33  ;;  %v409_v45 = vsel %vm7169_vm5, %v399_v33, %v408_v51  ;;  %v725_v5 = vshrl.u32 %v694_v58, 16  ;;  %v728_v8 = vshll.u32 %v694_v58, 16 }
  0xb8   :  { %7351 = vst [vmem:[#allocation4_spill] sm:$0xff] %v5820_v4  ;;  %4777 = vmatprep.mubr.msk.bf16.mxu0 %vm7171_vm13, %v400_v61  ;;  %v707_v10 = vrot.slane %v705_v27, 5  ;;  %v710_v6 = vrot.slane %v708_v55, 6  ;;  %v721_v11 = vor.u32 %v720_v39, %v717_v37  ;;  %vm5825_vm4 = vcmp.ne.s16.totalorder %v545_v59, 0 }
  0xb9   :  { %4778 = vmatmul.mubr.msk.bf16.vlgmr.msra.gmra.mrb[0].mxu0 %vm7171_vm13, %v409_v45  ;;  %v7352_v13 = vmov 0  ;;  %v573_v21 = vshrl.u32 %v4473_v52, 16  ;;  %v576_v23 = vshll.u32 %v4473_v52, 16  ;;  %v581_v2 = vshrl.u32 %v4474_v60, 16  ;;  %v866_v33 = vpop.permute.xlu1 %865 }
  0xba   :  { %4782 = vmatpush3.bf16.msra.mxu0 %v5721_v9  ;;  %v7353_v13 = vsel %vm5825_vm4, 4294967295, %v7352_v13  ;;  %v703_v28 = vrot.slane %v5820_v4, 4  ;;  %v727_v32 = vrot.slane %v725_v5, 5  ;;  %v730_v34 = vrot.slane %v728_v8, 6  ;;  %v1000_v61 = vpop.permute.xlu0 %999 }
  0xbb   :  { %7354 = vst [vmem:[#allocation5_spill] sm:$0xff] %v7353_v13  ;;  %4787 = vmatprep.subr.bf16.mxu0 %v5818_v62  ;;  %v711_v1 = vor.u32 %v710_v6, %v707_v10  ;;  %v723_v38 = vrot.slane %v721_v11, 4  ;;  %v555_v9 = vsel %vm5825_vm4, %v5829_v19, 0  ;;  %v575_v41 = vrot.slane %v573_v21, 2 }
  0xbc   :  { %v578_v42 = vrot.slane %v576_v23, 3  ;;  %v583_v46 = vrot.slane %v581_v2, 2  ;;  %v584_v48 = vshll.u32 %v4474_v60, 16  ;;  %v731_v51 = vor.u32 %v730_v34, %v727_v32 }
  0xbd   :  { %v5838_v50 = vsel %vm5767_vm6, %v703_v28, %v711_v1  ;;  %v713_v18 = vrot.slane %v711_v1, 4  ;;  %vm867_vm9 = vcmp.eq.s32.totalorder %v857_v30, 1  ;;  %v4475_v54 = vcombine.low %v555_v9, %v555_v9  ;;  %v1003_v10 = vpop.permute.xlu1 %1002  ;;  %v5871_v1 = vld [vmem:[%s7123_s3 + $0x38] sm:$0xff]  }
  0xbe   :  { %7355 = vst [vmem:[#allocation6_spill] sm:$0xff] %v5838_v50  ;;  %v586_v52 = vrot.slane %v584_v48, 3  ;;  %vm7179_vm11 = vsmask.f32 5376  ;;  %vm7168_vm8 = vcmp.ne.s16.totalorder %v5838_v50, 0  ;;  %v5843_v27 = vsel %vm5767_vm6, %v723_v38, %v731_v51  ;;  %vm871_vm15 = vmpackc.low %vm867_vm9, %vm867_vm9  ;;  %v1006_v38 = vpop.permute.xlu0 %1005 }
  0xbf   :  { %7356 = vst [vmem:[#allocation7_spill] sm:$0xff] %v5843_v27  ;;  %v579_v55 = vor.u32 %v578_v42, %v575_v41  ;;  %vm7170_vm7 = vcmp.ne.s16.totalorder %v5820_v4, 0  ;;  %v5848_v57 = vsel %vm5767_vm6, %v713_v18, %v721_v11  ;;  %v740_v37 = vsel %vm7168_vm8, %v5679_v7, 0 }
  0xc0   :  { %v587_v31 = vor.u32 %v586_v52, %v583_v46  ;;  %7357 = vst [vmem:[#allocation8_spill] sm:$0xff] %v5848_v57  ;;  %vm7172_vm10 = vcmp.ne.s16.totalorder %v5843_v27, 0  ;;  %v590_v39 = vshrl.u32 %v4475_v54, 16  ;;  %v593_v59 = vshll.u32 %v4475_v54, 16 }
  0xc1   :  { %vm869_vm12 = vcmp.eq.s32.totalorder %v863_v25, 1  ;;  %v739_v60 = vsel %vm7170_vm7, %v5682_v29, 0  ;;  %vm7173_vm1 = vcmp.ne.s16.totalorder %v5848_v57, 0  ;;  %v742_v5 = vsel %vm7172_vm10, %v5697_v44, 0 }
  0xc2   :  { %v588_v58 = vsel %vm7179_vm11, %v579_v55, %v587_v31  ;;  %v4479_v45 = vcombine.low %v739_v60, %v740_v37  ;;  %vm868_vm8 = vcmp.eq.s32.totalorder %v860_v40, 1  ;;  %v875_v8 = vsel %vm871_vm15, 65537, %v7180_v0  ;;  %vm873_vm5 = vmpackc.low %vm869_vm12, %vm869_vm12 }
  0xc3   :  { %4783 = vmatprep.mubr.msk.bf16.mxu0 %vm7171_vm13, %v588_v58  ;;  %vm870_vm9 = vcmp.eq.s32.totalorder %v866_v33, 1  ;;  %v592_v6 = vrot.slane %v590_v39, 2  ;;  %v595_v11 = vrot.slane %v593_v59, 3  ;;  %v733_v21 = vrot.slane %v731_v51, 4  ;;  %vm872_vm7 = vmpackc.low %vm868_vm8, %vm868_vm8  ;;  %v1009_v51 = vpop.permute.xlu1 %1008 }
  0xc4   :  { %v741_v29 = vsel %vm7173_vm1, %v5691_v35, 0  ;;  %v882_v2 = vrot.slane %v875_v8, 5  ;;  %vm874_vm13 = vmpackc.low %vm870_vm9, %vm870_vm9  ;;  %v877_v30 = vsel %vm873_vm5, 65537, %v7180_v0  ;;  %vm1010_vm10 = vcmp.eq.s32.totalorder %v1000_v61, 1 }
  0xc5   :  { %v4480_v23 = vcombine.low %v741_v29, %v742_v5  ;;  %v596_v28 = vor.u32 %v595_v11, %v592_v6  ;;  %v760_v32 = vshrl.u32 %v4479_v45, 16  ;;  %v763_v34 = vshll.u32 %v4479_v45, 16  ;;  %vm1014_vm9 = vmpackc.low %vm1010_vm10, %vm1010_vm10  ;;  %v1187_v29 = vpop.permute.xlu0 %1186 }
  0xc6   :  { %vm5874_vm12 = vcmp.ne.s16.totalorder %v733_v21, 0  ;;  %v7358_v9 = vmov 0  ;;  %v876_v41 = vsel %vm872_vm7, 65537, %v7180_v0  ;;  %vm879_vm15 = vcmask 1042432  }
  0xc7   :  { %v597_v40 = vsel %vm7179_vm11, %v587_v31, %v596_v28  ;;  %v7359_v9 = vsel %vm5874_vm12, 4294967295, %v7358_v9  ;;  %vm880_vm8 = vcmask 1046532   ;;  %vm7361_vm5 = vcmask 130048  }
  0xc8   :  { %7360 = vst [vmem:[#allocation9_spill] sm:$0xff] %v7359_v9  ;;  %4784 = vmatmul.mubr.msk.bf16.vlgmr.msra.gmra.mrb[0].mxu0 %vm7361_vm5, %v597_v40  ;;  %v883_v42 = vrot.slane %v882_v2, 4  ;;  %v878_v46 = vsel %vm874_vm13, 65537, %v7180_v0  ;;  %v887_v48 = vrot.slane %v877_v30, 5  ;;  %v768_v52 = vshrl.u32 %v4480_v23, 16  ;;  %vm5885_vm7 = vmor %vm879_vm15, %vm880_vm8 }
  0xc9   :  { %4788 = vmatpush3.bf16.msra.mxu0 %v5818_v62  ;;  %vm1012_vm1 = vcmp.eq.s32.totalorder %v1006_v38, 1  ;;  %v762_v18 = vrot.slane %v760_v32, 2  ;;  %v765_v54 = vrot.slane %v763_v34, 3  ;;  %v771_v25 = vshll.u32 %v4480_v23, 16  ;;  %v5911_v32 = vld [vmem:[#allocation2] sm:$0x8] }
  0xca   :  { %4793 = vmatprep.subr.bf16.mxu0 %v5871_v1  ;;  %v884_v55 = vrot.slane %v876_v41, 5  ;;  %v743_v33 = vsel %vm5874_vm12, %v5829_v19, 0  ;;  %vm1011_vm13 = vcmp.eq.s32.totalorder %v1003_v10, 1  ;;  %v770_v62 = vrot.slane %v768_v52, 2  ;;  %vm1016_vm5 = vmpackc.low %vm1012_vm1, %vm1012_vm1 }
  0xcb   :  { %v1018_v58 = vsel %vm1014_vm9, 65537, %v7180_v0  ;;  %vm1013_vm10 = vcmp.eq.s32.totalorder %v1009_v51, 1  ;;  %v773_v37 = vrot.slane %v771_v25, 3  ;;  %v890_v39 = vrot.slane %v878_v46, 5  ;;  %vm5897_vm15 = vmpackc.low %vm1011_vm13, %vm1011_vm13  ;;  %v1190_v25 = vpop.permute.xlu1 %1189 }
  0xcc   :  { %v889_v59 = vrot.slane %v887_v48, 4  ;;  %v5895_v60 = vsel %vm5885_vm7, %v883_v42, %v884_v55  ;;  %v4481_v61 = vcombine.low %v743_v33, %v743_v33  ;;  %v766_v5 = vor.u32 %v765_v54, %v762_v18  ;;  %vm5901_vm8 = vmpackc.low %vm1013_vm10, %vm1013_vm10 }
  0xcd   :  { %7364 = vst [vmem:[#allocation10_spill] sm:$0xff] %v5895_v60  ;;  %v774_v8 = vor.u32 %v773_v37, %v770_v62  ;;  %v886_v10 = vrot.slane %v884_v55, 4  ;;  %v1026_v6 = vshll.u32 %v1018_v58, 16  ;;  %v1029_v11 = vshrl.u32 %v1018_v58, 16  ;;  %v1193_v62 = vpop.permute.xlu0 %1192 }
  0xce   :  { %vm5905_vm1 = vcmp.ne.s16.totalorder %v882_v2, 0  ;;  %v7369_v23 = vmov 0  ;;  %v1020_v28 = vsel %vm1016_vm5, 65537, %v7180_v0  ;;  %vm7175_vm9 = vcmp.ne.s16.totalorder %v5895_v60, 0 }
  0xcf   :  { %v7370_v23 = vsel %vm5905_vm1, 4294967295, %v7369_v23  ;;  %v775_v30 = vsel %vm7179_vm11, %v766_v5, %v774_v8  ;;  %v5914_v34 = vrot.slane %v890_v39, 4  ;;  %v5918_v38 = vsel %vm5885_vm7, %v886_v10, %v887_v48 }
  0xd0   :  { %7371 = vst [vmem:[#allocation11_spill] sm:$0xff] %v7370_v23  ;;  %7373 = vst [vmem:[#allocation13_spill] sm:$0xff] %v5918_v38  ;;  %v5922_v2 = vsel %vm5885_vm7, %v889_v59, %v890_v39  ;;  %vm1022_vm13 = vsmask.f32 3328  ;;  %vm1023_vm10 = vsmask.f32 7440 }
  0xd1   :  { %7372 = vst [vmem:[#allocation12_spill] sm:$0xff] %v5914_v34  ;;  %7374 = vst [vmem:[#allocation14_spill] sm:$0xff] %v5922_v2  ;;  %vm7375_vm12 = vcmask 130048   ;;  %v777_v40 = vshrl.u32 %v4481_v61, 16  ;;  %v780_v41 = vshll.u32 %v4481_v61, 16  ;;  %v1019_v42 = vsel %vm5897_vm15, 65537, %v7180_v0 }
  0xd2   :  { %4789 = vmatprep.mubr.msk.bf16.mxu0 %vm7375_vm12, %v775_v30  ;;  %v1021_v46 = vsel %vm5901_vm8, 65537, %v7180_v0  ;;  %v5931_v48 = vrot.slane %v1026_v6, 5  ;;  %v1031_v51 = vrot.slane %v1029_v11, 4  ;;  %v1045_v52 = vshll.u32 %v1020_v28, 16  ;;  %v6124_v23 = vld [vmem:[#allocation2 + $0x4] sm:$0xf] }
  0xd3   :  { %vm1197_vm7 = vcmp.eq.s32.totalorder %v1187_v29, 1  ;;  %v898_v18 = vsel %vm5905_vm1, %v5911_v32, 0  ;;  %vm7177_vm12 = vcmp.ne.s16.totalorder %v5918_v38, 0  ;;  %vm7176_vm5 = vcmp.ne.s16.totalorder %v5922_v2, 0  ;;  %v6170_v2 = vld [vmem:[#allocation2 + $0xc] sm:$0xf] }
  0xd4   :  { %7376 = vst [vmem:[#allocation15_spill] sm:$0xff] %v5931_v48  ;;  %v1049_v54 = vshrl.u32 %v1020_v28, 16  ;;  %v899_v55 = vsel %vm7175_vm9, %v5679_v7, 0  ;;  %vm7178_vm15 = vcmp.ne.s16.totalorder %v5914_v34, 0  ;;  %v1035_v31 = vshll.u32 %v1019_v42, 16  ;;  %vm1201_vm8 = vmpackc.low %vm1197_vm7, %vm1197_vm7 }
  0xd5   :  { %v1039_v33 = vshrl.u32 %v1019_v42, 16  ;;  %v1055_v58 = vshll.u32 %v1021_v46, 16  ;;  %v1059_v37 = vshrl.u32 %v1021_v46, 16  ;;  %v779_v39 = vrot.slane %v777_v40, 2  ;;  %v1196_v46 = vpop.permute.xlu1 %1195 }
  0xd6   :  { %v782_v59 = vrot.slane %v780_v41, 3  ;;  %v900_v61 = vsel %vm7177_vm12, %v5691_v35, 0  ;;  %v1032_v45 = vor.u32 %v1031_v51, %v5931_v48  ;;  %v5946_v5 = vrot.slane %v1045_v52, 5  ;;  %v5100_v51 = vld [vmem:[%s7123_s3 + $0x40] sm:$0xff]  }
  0xd7   :  { %v901_v10 = vsel %vm7176_vm5, %v5697_v44, 0  ;;  %v1051_v6 = vrot.slane %v1049_v54, 4  ;;  %vm1199_vm9 = vcmp.eq.s32.totalorder %v1193_v62, 1  ;;  %v4485_v29 = vcombine.low %v898_v18, %v899_v55 }
  0xd8   :  { %v783_v11 = vor.u32 %v782_v59, %v779_v39  ;;  %v4486_v21 = vcombine.low %v900_v61, %v901_v10  ;;  %v1037_v28 = vrot.slane %v1035_v31, 5  ;;  %v1041_v30 = vrot.slane %v1039_v33, 4  ;;  %vm5958_vm5 = vmpackc.low %vm1199_vm9, %vm1199_vm9 }
  0xd9   :  { %v1205_v40 = vsel %vm1201_vm8, 65537, %v7180_v0  ;;  %v1057_v41 = vrot.slane %v1055_v58, 5  ;;  %v1061_v42 = vrot.slane %v1059_v37, 4  ;;  %vm1198_vm7 = vcmp.eq.s32.totalorder %v1190_v25, 1  ;;  %vm5965_vm8 = vmor %vm1022_vm13, %vm1023_vm10 }
  0xda   :  { %v902_v52 = vsel %vm7178_vm15, %v5829_v19, 0  ;;  %v1033_v54 = vrot.slane %v1032_v45, 4  ;;  %v784_v18 = vsel %vm7179_vm11, %v774_v8, %v783_v11  ;;  %v920_v55 = vrot.slane %v4486_v21, 3  ;;  %vm1202_vm9 = vmpackc.low %vm1198_vm7, %vm1198_vm7 }
  0xdb   :  { %v1052_v33 = vor.u32 %v1051_v6, %v5946_v5  ;;  %v1210_v58 = vshll.u32 %v1205_v40, 16  ;;  %v1213_v37 = vshrl.u32 %v1205_v40, 16  ;;  %vm7381_vm12 = vcmask 130048  }
  0xdc   :  { %4790 = vmatmul.mubr.msk.bf16.vlgmr.msra.gmra.mrb[0].mxu0 %vm7381_vm12, %v784_v18  ;;  %vm7187_vm15 = vcmask 1044480   ;;  %v919_v19 = vrot.slane %v4485_v29, 3  ;;  %v1042_v39 = vor.u32 %v1041_v30, %v1037_v28  ;;  %vm1200_vm11 = vcmp.eq.s32.totalorder %v1196_v46, 1  ;;  %vm7383_vm10 = vmmov %vm7381_vm12 }
  0xdd   :  { %4794 = vmatpush3.bf16.msra.mxu0 %v5871_v1  ;;  %v4487_v8 = vcombine.low %v902_v52, %v902_v52  ;;  %v1062_v59 = vor.u32 %v1061_v42, %v1057_v41  ;;  %v1207_v61 = vsel %vm5958_vm5, 65537, %v7180_v0  ;;  %v1038_v45 = vsel %vm5965_vm8, %v1033_v54, %v1037_v28  ;;  %vm1204_vm13 = vmpackc.low %vm1200_vm11, %vm1200_vm11 }
  0xde   :  { %4799 = vmatprep.subr.bf16.mxu0 %v5100_v51  ;;  %v921_v10 = vsel %vm7187_vm15, %v919_v19, %v920_v55  ;;  %v1053_v6 = vrot.slane %v1052_v33, 4  ;;  %v1206_v25 = vsel %vm1202_vm9, 65537, %v7180_v0  ;;  %v5981_v11 = vrot.slane %v1210_v58, 5  ;;  %v5998_v58 = vld [vmem:[#allocation2 + $0x10] sm:$0xf] }
  0xdf   :  { %v1215_v21 = vrot.slane %v1213_v37, 4  ;;  %4795 = vmatprep.mubr.msk.bf16.mxu0 %vm7383_vm10, %v921_v10  ;;  %v1043_v1 = vrot.slane %v1042_v39, 4  ;;  %v1229_v29 = vshll.u32 %v1207_v61, 16  ;;  %v1233_v30 = vshrl.u32 %v1207_v61, 16  ;;  %v1452_v61 = vpop.permute.xlu0 %1451 }
  0xe0   :  { %7382 = vst [vmem:[#allocation16_spill] sm:$0xff] %v5981_v11  ;;  %v922_v40 = vrot.slane %v4487_v8, 3  ;;  %vm5984_vm12 = vcmp.ne.s16.totalorder %v1038_v45, 0  ;;  %v7384_v42 = vmov 0  ;;  %v5988_v28 = vrot.slane %v1062_v59, 4  ;;  %v6012_v45 = vld [vmem:[%s7123_s3 + $0x58] sm:$0xff]  }
  0xe1   :  { %v7385_v42 = vsel %vm5984_vm12, 4294967295, %v7384_v42  ;;  %vm7188_vm5 = vcmp.ne.s16.totalorder %v5931_v48, 0  ;;  %v1219_v46 = vshll.u32 %v1206_v25, 16  ;;  %v1223_v52 = vshrl.u32 %v1206_v25, 16 }
  0xe2   :  { %7386 = vst [vmem:[#allocation17_spill] sm:$0xff] %v7385_v42  ;;  %7387 = vst [vmem:[#allocation18_spill] sm:$0xff] %v5988_v28  ;;  %v1208_v54 = vsel %vm1204_vm13, 65537, %v7180_v0  ;;  %v1058_v62 = vsel %vm5965_vm8, %v1053_v6, %v1057_v41  ;;  %v1216_v18 = vor.u32 %v1215_v21, %v5981_v11  ;;  %v1070_v33 = vsel %vm5984_vm12, %v5679_v7, 0 }
  0xe3   :  { %v1048_v37 = vsel %vm5965_vm8, %v1043_v1, %v5946_v5  ;;  %v6003_v19 = vrot.slane %v1229_v29, 5  ;;  %v1235_v39 = vrot.slane %v1233_v30, 4  ;;  %v1069_v8 = vsel %vm7188_vm5, %v5911_v32, 0  ;;  %vm7394_vm13 = vmmov %vm7383_vm10 }
  0xe4   :  { %vm7183_vm11 = vcmp.ne.s16.totalorder %v5988_v28, 0  ;;  %v1239_v41 = vshll.u32 %v1208_v54, 16  ;;  %v1243_v59 = vshrl.u32 %v1208_v54, 16  ;;  %vm6014_vm7 = vcmp.ne.s16.totalorder %v1058_v62, 0  ;;  %v1455_v62 = vpop.permute.xlu1 %1454 }
  0xe5   :  { %v7388_v10 = vmov 0  ;;  %v1221_v5 = vrot.slane %v1219_v46, 5  ;;  %v1225_v6 = vrot.slane %v1223_v52, 4  ;;  %v923_v25 = vsel %vm7187_vm15, %v920_v55, %v922_v40 }
  0xe6   :  { %v7389_v10 = vsel %vm6014_vm7, 4294967295, %v7388_v10  ;;  %v4491_v21 = vcombine.low %v1069_v8, %v1070_v33  ;;  %vm6019_vm9 = vcmp.ne.s16.totalorder %v1048_v37, 0  ;;  %v7391_v1 = vmov 0 }
  0xe7   :  { %7390 = vst [vmem:[#allocation19_spill] sm:$0xff] %v7389_v10  ;;  %v7392_v1 = vsel %vm6019_vm9, 4294967295, %v7391_v1  ;;  %v1217_v29 = vrot.slane %v1216_v18, 4  ;;  %v1073_v30 = vsel %vm7183_vm11, %v5998_v58, 0  ;;  %v1236_v54 = vor.u32 %v1235_v39, %v6003_v19 }
  0xe8   :  { %7393 = vst [vmem:[#allocation20_spill] sm:$0xff] %v7392_v1  ;;  %4796 = vmatmul.mubr.msk.bf16.vlgmr.msra.gmra.mrb[0].mxu0 %vm7394_vm13, %v923_v25  ;;  %v1072_v55 = vsel %vm6014_vm7, %v5697_v44, 0  ;;  %v1241_v40 = vrot.slane %v1239_v41, 5  ;;  %v1245_v46 = vrot.slane %v1243_v59, 4  ;;  %v1071_v52 = vsel %vm6019_vm9, %v5691_v35, 0  ;;  %v1461_v34 = vpop.permute.xlu1 %1460 }
  0xe9   :  { %4800 = vmatpush3.bf16.msra.mxu0 %v5100_v51  ;;  %v1226_v18 = vor.u32 %v1225_v6, %v1221_v5  ;;  %v1091_v33 = vshrl.u32 %v4491_v21, 16  ;;  %v1094_v37 = vshll.u32 %v4491_v21, 16  ;;  %v4493_v8 = vcombine.low %v1073_v30, %v1073_v30  ;;  %v1458_v51 = vpop.permute.xlu0 %1457 }
  0xea   :  { %4805 = vmatprep.subr.bf16.mxu0 %v6012_v45  ;;  %v1222_v39 = vsel %vm5965_vm8, %v1217_v29, %v1221_v5  ;;  %v4492_v25 = vcombine.low %v1071_v52, %v1072_v55  ;;  %v1237_v0 = vrot.slane %v1236_v54, 4  ;;  %vm1463_vm10 = vcmp.eq.s32.totalorder %v1455_v62, 1 }
  0xeb   :  { %v1246_v28 = vor.u32 %v1245_v46, %v1241_v40  ;;  %vm1462_vm13 = vcmp.eq.s32.totalorder %v1452_v61, 1  ;;  %v1227_v41 = vrot.slane %v1226_v18, 4  ;;  %vm6037_vm11 = vcmp.ne.s16.totalorder %v1222_v39, 0  ;;  %vm1467_vm15 = vmpackc.low %vm1463_vm10, %vm1463_vm10 }
  0xec   :  { %v7395_v59 = vmov 0  ;;  %v1093_v48 = vrot.slane %v1091_v33, 3  ;;  %v1096_v6 = vrot.slane %v1094_v37, 4  ;;  %v1108_v10 = vshrl.u32 %v4493_v8, 16  ;;  %vm1466_vm7 = vmpackc.low %vm1462_vm13, %vm1462_vm13  ;;  %v1636_v31 = vpop.permute.xlu1 %1635 }
  0xed   :  { %v7396_v59 = vsel %vm6037_vm11, 4294967295, %v7395_v59  ;;  %v1111_v21 = vshll.u32 %v4493_v8, 16  ;;  %vm7192_vm5 = vcmp.ne.s16.totalorder %v5981_v11, 0  ;;  %v1242_v5 = vsel %vm5965_vm8, %v1237_v0, %v1241_v40  ;;  %v1633_v62 = vpop.permute.xlu0 %1632 }
  0xee   :  { %7397 = vst [vmem:[#allocation21_spill] sm:$0xff] %v7396_v59  ;;  %v1099_v29 = vshrl.u32 %v4492_v25, 16  ;;  %v1102_v30 = vshll.u32 %v4492_v25, 16  ;;  %v1254_v61 = vsel %vm6037_vm11, %v5679_v7, 0  ;;  %v6047_v54 = vrot.slane %v1246_v28, 4 }
  0xef   :  { %vm1465_vm12 = vcmp.eq.s32.totalorder %v1461_v34, 1  ;;  %vm7193_vm1 = vsmask.f32 4352  ;;  %v1232_v55 = vsel %vm5965_vm8, %v1227_v41, %v6003_v19  ;;  %v7399_v46 = vmov 0  }
  0xf0   :  { %7398 = vst [vmem:[#allocation22_spill] sm:$0xff] %v6047_v54  ;;  %v1471_v52 = vsel %vm1467_vm15, 65537, %v7399_v46  ;;  %v1101_v18 = vrot.slane %v1099_v29, 3  ;;  %v1104_v0 = vrot.slane %v1102_v30, 4  ;;  %v1110_v40 = vrot.slane %v1108_v10, 3  ;;  %vm1469_vm13 = vmpackc.low %vm1465_vm12, %vm1465_vm12 }
  0xf1   :  { %v1253_v33 = vsel %vm7192_vm5, %v5911_v32, 0  ;;  %vm6056_vm10 = vcmp.ne.s16.totalorder %v1242_v5, 0  ;;  %v7400_v7 = vmov 0  ;;  %v1470_v34 = vsel %vm1466_vm7, 65537, %v7399_v46 }
  0xf2   :  { %v7401_v7 = vsel %vm6056_vm10, 4294967295, %v7400_v7  ;;  %v1113_v28 = vrot.slane %v1111_v21, 4  ;;  %v4497_v37 = vcombine.low %v1253_v33, %v1254_v61  ;;  %v1097_v19 = vor.u32 %v1096_v6, %v1093_v48  ;;  %v1639_v48 = vpop.permute.xlu0 %1638 }
  0xf3   :  { %7402 = vst [vmem:[#allocation23_spill] sm:$0xff] %v7401_v7  ;;  %v1105_v8 = vor.u32 %v1104_v0, %v1101_v18  ;;  %vm7194_vm15 = vcmp.ne.s16.totalorder %v6047_v54, 0  ;;  %vm6062_vm8 = vcmp.ne.s16.totalorder %v1232_v55, 0  ;;  %v7403_v10 = vmov 0  ;;  %v1642_v18 = vpop.permute.xlu1 %1641 }
  0xf4   :  { %v7404_v10 = vsel %vm6062_vm8, 4294967295, %v7403_v10  ;;  %v1486_v39 = vshrl.u32 %v1471_v52, 16  ;;  %vm1464_vm5 = vcmp.eq.s32.totalorder %v1458_v51, 1  ;;  %v1256_v32 = vsel %vm6056_vm10, %v5697_v44, 0 }
  0xf5   :  { %7405 = vst [vmem:[#allocation24_spill] sm:$0xff] %v7404_v10  ;;  %v1478_v25 = vshrl.u32 %v1470_v34, 16  ;;  %v1106_v41 = vsel %vm7193_vm1, %v1097_v19, %v1105_v8  ;;  %v6071_v21 = vsel %vm1469_vm13, 65537, %v7399_v46  ;;  %vm7406_vm12 = vcmask 130048   ;;  %vm1468_vm7 = vmpackc.low %vm1464_vm5, %vm1464_vm5 }
  0xf6   :  { %4801 = vmatprep.mubr.msk.bf16.mxu0 %vm7406_vm12, %v1106_v41  ;;  %v1274_v6 = vshrl.u32 %v4497_v37, 16  ;;  %v1257_v5 = vsel %vm7194_vm15, %v5998_v58, 0  ;;  %v1255_v51 = vsel %vm6062_vm8, %v5691_v35, 0  ;;  %v6080_v29 = vrot.slane %v1486_v39, 7 }
  0xf7   :  { %v4498_v44 = vcombine.low %v1255_v51, %v1256_v32  ;;  %vm1644_vm1 = vcmp.eq.s32.totalorder %v1636_v31, 1  ;;  %v1114_v30 = vor.u32 %v1113_v28, %v1110_v40  ;;  %v1480_v61 = vrot.slane %v1478_v25, 7  ;;  %v6091_v40 = vld [vmem:[%s7123_s3 + $0x60] sm:$0xff]  }
  0xf8   :  { %v1504_v55 = vshrl.u32 %v6071_v21, 16  ;;  %vm1643_vm13 = vcmp.eq.s32.totalorder %v1633_v62, 1  ;;  %v1277_v0 = vshll.u32 %v4497_v37, 16  ;;  %v1489_v33 = vshll.u32 %v1471_v52, 16  ;;  %vm6084_vm10 = vmpackc.low %vm1644_vm1, %vm1644_vm1  ;;  %v1807_v52 = vpop.permute.xlu0 %1806 }
  0xf9   :  { %v1472_v19 = vsel %vm1468_vm7, 65537, %v7399_v46  ;;  %v4499_v41 = vcombine.low %v1257_v5, %v1257_v5  ;;  %vm1475_vm15 = vsmask.f32 4368  ;;  %v1276_v28 = vrot.slane %v1274_v6, 3  ;;  %vm6094_vm5 = vmpackc.low %vm1643_vm13, %vm1643_vm13 }
  0xfa   :  { %v1491_v62 = vor.u32 %v1489_v33, %v6080_v29  ;;  %vm7411_vm7 = vsmask.f32 4352  ;;  %v1282_v39 = vshrl.u32 %v4498_v44, 16  ;;  %v1484_v32 = vrot.slane %v1480_v61, 4 }
  0xfb   :  { %v1115_v31 = vsel %vm7411_vm7, %v1105_v8, %v1114_v30  ;;  %v1506_v25 = vrot.slane %v1504_v55, 7  ;;  %v1495_v5 = vshrl.u32 %v1472_v19, 16  ;;  %vm1646_vm1 = vcmp.eq.s32.totalorder %v1642_v18, 1  ;;  %v6113_v18 = vpop.permute.xlu1 %1809 }
  0xfc   :  { %4802 = vmatmul.mubr.msk.bf16.vlgmr.msra.gmra.mrb[0].mxu0 %vm7406_vm12, %v1115_v31  ;;  %v1279_v51 = vrot.slane %v1277_v0, 4  ;;  %vm7412_vm11 = vsmask.f32 256  ;;  %v1481_v33 = vshll.u32 %v1470_v34, 16  ;;  %v1284_v54 = vrot.slane %v1282_v39, 3  ;;  %v6122_v37 = vpop.permute.xlu0 %1812  ;;  %vm7419_vm12 = vmmov %vm7411_vm7 }
  0xfd   :  { %vm6102_vm8 = vmor %vm7412_vm11, %vm1475_vm15  ;;  %4806 = vmatpush3.bf16.msra.mxu0 %v6012_v45  ;;  %v1285_v11 = vshll.u32 %v4498_v44, 16  ;;  %v1291_v8 = vshrl.u32 %v4499_v41, 16  ;;  %v1652_v30 = vsel %vm6084_vm10, 65537, %v7399_v46  ;;  %v1651_v55 = vsel %vm6094_vm5, 65537, %v7399_v46 }
  0xfe   :  { %4811 = vmatprep.subr.bf16.mxu0 %v6091_v40  ;;  %v1294_v0 = vshll.u32 %v4499_v41, 16  ;;  %v6116_v31 = vor.u32 %v1481_v33, %v1480_v61  ;;  %vm1650_vm11 = vmpackc.low %vm1646_vm1, %vm1646_vm1  ;;  %vm1645_vm15 = vcmp.eq.s32.totalorder %v1639_v48, 1  ;;  %v6120_v34 = vsel %vm6102_vm8, %v1484_v32, %v1491_v62  ;;  %v6133_v62 = vld [vmem:[#allocation2 + $0x8] sm:$0xf] }
  0xff   :  { %v1287_v45 = vrot.slane %v1285_v11, 4  ;;  %7416 = vst [vmem:[#allocation26_spill] sm:$0xff] %v6120_v34  ;;  %v1511_v44 = vrot.slane %v1506_v25, 4  ;;  %v1497_v35 = vrot.slane %v1495_v5, 7  ;;  %v1664_v39 = vshrl.u32 %v1652_v30, 16  ;;  %vm6129_vm10 = vmpackc.low %vm1645_vm15, %vm1645_vm15 }
 0x100   :  { %7415 = vst [vmem:[#allocation25_spill] sm:$0xff] %v6116_v31  ;;  %v1656_v7 = vshrl.u32 %v1651_v55, 16  ;;  %v1280_v59 = vor.u32 %v1279_v51, %v1276_v28  ;;  %v1293_v42 = vrot.slane %v1291_v8, 3  ;;  %v1498_v61 = vshll.u32 %v1472_v19, 16  ;;  %v6139_v28 = vld [vmem:[#allocation2 + $0x14] sm:$0x1]  ;;  %v6145_v51 = vpop.permute.xlu1 %1815  ;;  %v1950_v11 = vpop.permute.xlu0 %1949 }
 0x101   :  { %v1288_v10 = vor.u32 %v1287_v45, %v1284_v54  ;;  %v6127_v41 = vsel %vm1650_vm11, 65537, %v7399_v46  ;;  %v1296_v48 = vrot.slane %v1294_v0, 4  ;;  %vm7210_vm13 = vcmp.ne.s16.totalorder %v6116_v31, 0 }
 0x102   :  { %v1507_v32 = vshll.u32 %v6071_v21, 16  ;;  %vm7211_vm5 = vcmp.ne.s16.totalorder %v6120_v34, 0  ;;  %vm6141_vm7 = vcmp.ne.s16.totalorder %v1511_v44, 0  ;;  %v7420_v19 = vmov 0 }
 0x103   :  { %v1289_v54 = vsel %vm7419_vm12, %v1280_v59, %v1288_v10  ;;  %v7421_v19 = vsel %vm6141_vm7, 4294967295, %v7420_v19  ;;  %v1500_v5 = vor.u32 %v1498_v61, %v1497_v35  ;;  %vm1817_vm1 = vcmp.eq.s32.totalorder %v1807_v52, 1 }
 0x104   :  { %7422 = vst [vmem:[#allocation27_spill] sm:$0xff] %v7421_v19  ;;  %vm7423_vm11 = vcmask 130048   ;;  %v6148_v33 = vrot.slane %v1664_v39, 7  ;;  %v1658_v8 = vrot.slane %v1656_v7, 7  ;;  %v1682_v21 = vshrl.u32 %v6127_v41, 16  ;;  %vm1821_vm15 = vmpackc.low %vm1817_vm1, %vm1817_vm1 }
 0x105   :  { %4807 = vmatprep.mubr.msk.bf16.mxu0 %vm7423_vm11, %v1289_v54  ;;  %v1653_v59 = vsel %vm6129_vm10, 65537, %v7399_v46  ;;  %v1493_v0 = vrot.slane %v6080_v29, 4  ;;  %v1517_v45 = vsel %vm7210_vm13, %v6124_v23, 0  ;;  %v1509_v52 = vor.u32 %v1507_v32, %v1506_v25  ;;  %vm7428_vm13 = vmmov %vm7419_vm12 }
 0x106   :  { %v1518_v44 = vsel %vm7211_vm5, %v6133_v62, 0  ;;  %v1521_v7 = vsel %vm6141_vm7, %v6139_v28, 0  ;;  %v1502_v39 = vrot.slane %v1497_v35, 4  ;;  %v1667_v61 = vshll.u32 %v1652_v30, 16 }
 0x107   :  { %v6166_v29 = vsel %vm6102_vm8, %v1493_v0, %v1500_v5  ;;  %v1659_v54 = vshll.u32 %v1651_v55, 16  ;;  %v1673_v31 = vshrl.u32 %v1653_v59, 16  ;;  %vm1818_vm10 = vcmp.eq.s32.totalorder %v6113_v18, 1  ;;  %v1953_v5 = vpop.permute.xlu1 %1952 }
 0x108   :  { %7424 = vst [vmem:[#allocation28_spill] sm:$0xff] %v6166_v29  ;;  %v1669_v25 = vor.u32 %v1667_v61, %v6148_v33  ;;  %v1662_v32 = vrot.slane %v1658_v8, 4  ;;  %v1684_v34 = vrot.slane %v1682_v21, 7  ;;  %v1297_v1 = vor.u32 %v1296_v48, %v1293_v42 }
 0x109   :  { %v6174_v35 = vcombine.low %v1517_v45, %v1518_v44  ;;  %v6177_v19 = vsel %vm1821_vm15, 65537, %v7399_v46  ;;  %v6181_v55 = vsel %vm6102_vm8, %v1502_v39, %v1509_v52  ;;  %v6183_v0 = vor.u32 %v1659_v54, %v1658_v8  ;;  %vm1822_vm15 = vmpackc.low %vm1818_vm10, %vm1818_vm10  ;;  %v6193_v45 = vld [vmem:[%s7123_s3 + $0x68] sm:$0xff]  }
 0x10a   :  { %7425 = vst [vmem:[#allocation29_spill] sm:$0xff] %v6181_v55  ;;  %v4510_v42 = vcombine.low %v1521_v7, %v1521_v7  ;;  %v1685_v48 = vshll.u32 %v6127_v41, 16  ;;  %v1675_v21 = vrot.slane %v1673_v31, 7  ;;  %v6197_v8 = vsel %vm6102_vm8, %v1662_v32, %v1669_v25  ;;  %v1956_v7 = vpop.permute.xlu0 %1955  ;;  %v6205_v39 = vld [vmem:[#allocation2 + $0xc] sm:$0xf] }
 0x10b   :  { %7426 = vst [vmem:[#allocation30_spill] sm:$0xff] %v6183_v0  ;;  %7427 = vst [vmem:[#allocation31_spill] sm:$0xff] %v6197_v8  ;;  %v1689_v52 = vrot.slane %v1684_v34, 4  ;;  %v7217_v44 = vrot.slane %v6177_v19, 7  ;;  %v1298_v41 = vsel %vm7428_vm13, %v1288_v10, %v1297_v1  ;;  %v1541_v31 = vshll.u32 %v6174_v35, 16  ;;  %v1959_v32 = vpop.permute.xlu1 %1958 }
 0x10c   :  { %v1676_v18 = vshll.u32 %v1653_v59, 16  ;;  %4808 = vmatmul.mubr.msk.bf16.vlgmr.msra.gmra.mrb[0].mxu0 %vm7423_vm11, %v1298_v41  ;;  %v1687_v61 = vor.u32 %v1685_v48, %v1684_v34  ;;  %v1826_v54 = vsel %vm1822_vm15, 65537, %v7399_v46  ;;  %vm1960_vm1 = vcmp.eq.s32.totalorder %v1950_v11, 1  ;;  %v6210_v1 = vld [vmem:[#allocation2 + $0x10] sm:$0xf] }
 0x10d   :  { %4812 = vmatpush3.bf16.msra.mxu0 %v6091_v40  ;;  %v1680_v59 = vrot.slane %v1675_v21, 4  ;;  %vm7429_vm5 = vcmask 1044484   ;;  %vm7430_vm10 = vcmask 1040384   ;;  %v6220_v34 = vshll.u32 %v4510_v42, 16  ;;  %vm1964_vm12 = vmpackc.low %vm1960_vm1, %vm1960_vm1 }
 0x10e   :  { %v1678_v10 = vor.u32 %v1676_v18, %v1675_v21  ;;  %vm6215_vm7 = vmor %vm7430_vm10, %vm7429_vm5  ;;  %4817 = vmatprep.subr.bf16.mxu0 %v6193_v45  ;;  %vm6222_vm15 = vcmp.ne.s16.totalorder %v1689_v52, 0  ;;  %v7433_v40 = vmov 0  ;;  %v1833_v48 = vrot.slane %v7217_v44, 4  ;;  %v2137_v41 = vpop.permute.xlu0 %2136 }
 0x10f   :  { %v7434_v40 = vsel %vm6222_vm15, 4294967295, %v7433_v40  ;;  %vm7436_vm13 = vcmp.eq.s32.totalorder %v6122_v37, 1  ;;  %vm1961_vm10 = vcmp.eq.s32.totalorder %v1953_v5, 1  ;;  %v1671_v42 = vrot.slane %v6148_v33, 4 }
 0x110   :  { %7435 = vst [vmem:[#allocation32_spill] sm:$0xff] %v7434_v40  ;;  %vm6231_vm5 = vmpackc.low %vm7436_vm13, %vm7436_vm13  ;;  %v1834_v18 = vrot.slane %v1826_v54, 7  ;;  %vm1820_vm11 = vcmp.eq.s32.totalorder %v6145_v51, 1  ;;  %vm7439_vm9 = vcmp.ne.s16.totalorder %v6166_v29, 0  ;;  %vm7440_vm13 = vcmp.ne.s16.totalorder %v6181_v55, 0 }
 0x111   :  { %v6243_v37 = vsel %vm7439_vm9, %v6205_v39, 0  ;;  %v6248_v52 = vsel %vm7440_vm13, %v6210_v1, 0  ;;  %vm7441_vm4 = vcmp.ne.s16.totalorder %v6183_v0, 0  ;;  %vm7442_vm2 = vcmp.ne.s16.totalorder %v6197_v8, 0  ;;  %v5160_v40 = vld [vmem:[#allocation2 + $0x4] sm:$0xf] }
 0x112   :  { %v1695_v33 = vsel %vm7441_vm4, %v6124_v23, 0  ;;  %v1696_v51 = vsel %vm7442_vm2, %v6133_v62, 0  ;;  %vm7443_vm14 = vcmp.eq.s32.totalorder %v1956_v7, 1  ;;  %v6258_v11 = vrot.slane %v1541_v31, 1  ;;  %vm1965_vm4 = vmpackc.low %vm1961_vm10, %vm1961_vm10  ;;  %v5161_v0 = vld [vmem:[#allocation2 + $0x8] sm:$0xf]  ;;  %v2143_v9 = vpop.permute.xlu0 %2142 }
 0x113   :  { %vm1966_vm1 = vmpackc.low %vm7443_vm14, %vm7443_vm14  ;;  %v1699_v5 = vsel %vm6222_vm15, %v6139_v28, 0  ;;  %v6265_v54 = vsel %vm6102_vm8, %v1671_v42, %v1678_v10  ;;  %v6269_v23 = vsel %vm6102_vm8, %v1680_v59, %v1687_v61  ;;  %v6274_v31 = vsel %vm6215_vm7, %v1833_v48, %v1834_v18  ;;  %v2140_v59 = vpop.permute.xlu1 %2139 }
 0x114   :  { %7444 = vst [vmem:[#allocation33_spill] sm:$0xff] %v6265_v54  ;;  %7445 = vst [vmem:[#allocation34_spill] sm:$0xff] %v6269_v23  ;;  %v1968_v30 = vsel %vm1964_vm12, 65537, %v7399_v46  ;;  %vm1963_vm2 = vcmp.eq.s32.totalorder %v1959_v32, 1  ;;  %v6277_v44 = vcombine.low %v1695_v33, %v1696_v51  ;;  %v6279_v10 = vrot.slane %v1834_v18, 4 }
 0x115   :  { %7446 = vst [vmem:[#allocation35_spill] sm:$0xff] %v6274_v31  ;;  %vm1824_vm14 = vmpackc.low %vm1820_vm11, %vm1820_vm11  ;;  %v6284_v6 = vsel %vm6231_vm5, 65537, %v7399_v46  ;;  %v1970_v61 = vsel %vm1966_vm1, 65537, %v7399_v46  ;;  %v4516_v42 = vcombine.low %v1699_v5, %v1699_v5  ;;  %vm7237_vm9 = vcmp.ne.s16.totalorder %v6265_v54, 0 }
 0x116   :  { %vm7245_vm8 = vcmp.ne.s16.totalorder %v6269_v23, 0  ;;  %v1969_v48 = vsel %vm1965_vm4, 65537, %v7399_v46  ;;  %vm7236_vm12 = vcmp.ne.s16.totalorder %v6274_v31, 0  ;;  %v1828_v32 = vsel %vm1824_vm14, 65537, %v7399_v46  ;;  %vm6292_vm11 = vmpackc.low %vm1963_vm2, %vm1963_vm2 }
 0x117   :  { %v1973_v18 = vshrl.u32 %v1968_v30, 16  ;;  %v1976_v33 = vshll.u32 %v1968_v30, 16  ;;  %v1837_v51 = vrot.slane %v6284_v6, 7  ;;  %v1992_v7 = vshrl.u32 %v1970_v61, 16  ;;  %v6307_v6 = vld [vmem:[%s7123_s3 + $0x80] sm:$0xff]   ;;  %v2146_v29 = vpop.permute.xlu1 %2145 }
 0x118   :  { %v1995_v5 = vshll.u32 %v1970_v61, 16  ;;  %v4503_v8 = vcombine.low %v5160_v40, %v5161_v0  ;;  %v7449_v55 = vrot.slane %v6177_v19, 7  ;;  %v7450_v60 = vmov 0 }
 0x119   :  { %v1982_v30 = vshrl.u32 %v1969_v48, 16  ;;  %v1985_v38 = vshll.u32 %v1969_v48, 16  ;;  %v1718_v61 = vshll.u32 %v6277_v44, 16  ;;  %v6310_v4 = vshll.u32 %v4516_v42, 16  ;;  %v6323_v42 = vld [vmem:[#allocation2 + $0x4] sm:$0xe] }
 0x11a   :  { %vm6300_vm5 = vcmp.ne.s16.totalorder %v7449_v55, 0  ;;  %v1849_v19 = vsel %vm7236_vm12, %v6133_v62, 0  ;;  %v1971_v55 = vsel %vm6292_vm11, 65537, %v7399_v46  ;;  %vm7453_vm10 = vcmask 130048  }
 0x11b   :  { %v7451_v60 = vsel %vm6300_vm5, 4294967295, %v7450_v60  ;;  %4813 = vmatprep.mubr.msk.bf16.mxu0 %vm7453_vm10, %v4503_v8  ;;  %v1840_v0 = vrot.slane %v1828_v32, 7  ;;  %v1975_v40 = vrot.slane %v1973_v18, 6  ;;  %v1978_v48 = vrot.slane %v1976_v33, 7  ;;  %vm7455_vm1 = vmmov %vm7453_vm10 }
 0x11c   :  { %7452 = vst [vmem:[#allocation36_spill] sm:$0xff] %v7451_v60  ;;  %vm2147_vm13 = vcmp.eq.s32.totalorder %v2137_v41, 1  ;;  %v7454_v27 = vcombine.low %v6170_v2, %v5998_v58  ;;  %v1839_v31 = vrot.slane %v1837_v51, 4  ;;  %v1994_v50 = vrot.slane %v1992_v7, 6  ;;  %v2324_v60 = vpop.permute.xlu1 %2323 }
 0x11d   :  { %v1997_v57 = vrot.slane %v1995_v5, 7  ;;  %vm2149_vm4 = vcmp.eq.s32.totalorder %v2143_v9, 1  ;;  %v1984_v21 = vrot.slane %v1982_v30, 6  ;;  %v1987_v8 = vrot.slane %v1985_v38, 7  ;;  %vm6332_vm2 = vmpackc.low %vm2147_vm13, %vm2147_vm13 }
 0x11e   :  { %4814 = vmatmul.mubr.msk.bf16.vlgmr.msra.gmra.mrb[0].mxu0 %vm7455_vm1, %v7454_v27  ;;  %v2002_v32 = vshrl.u32 %v1971_v55, 16  ;;  %vm2148_vm14 = vcmp.eq.s32.totalorder %v2140_v59, 1  ;;  %v1697_v2 = vsel %vm7237_vm9, %v6205_v39, 0  ;;  %v2005_v58 = vshll.u32 %v1971_v55, 16  ;;  %vm2153_vm10 = vmpackc.low %vm2149_vm4, %vm2149_vm4 }
 0x11f   :  { %4818 = vmatpush3.bf16.msra.mxu0 %v6193_v45  ;;  %vm2150_vm11 = vcmp.eq.s32.totalorder %v2146_v29, 1  ;;  %v4509_v45 = vcombine.low %v6243_v37, %v6248_v52  ;;  %v1698_v38 = vsel %vm7245_vm8, %v6210_v1, 0  ;;  %v1848_v7 = vsel %vm6300_vm5, %v6323_v42, 0  ;;  %vm2152_vm13 = vmpackc.low %vm2148_vm14, %vm2148_vm14  ;;  %v6355_v52 = vpop.permute.xlu0 %2320 }
 0x120   :  { %4823 = vmatprep.subr.bf16.mxu0 %v6307_v6  ;;  %v6344_v18 = vrot.slane %v1840_v0, 4  ;;  %v6346_v41 = vor.u32 %v1978_v48, %v1975_v40  ;;  %v1720_v33 = vrot.slane %v1718_v61, 1  ;;  %v6351_v30 = vcombine.low %v1848_v7, %v1849_v19  ;;  %vm2154_vm1 = vmpackc.low %vm2150_vm11, %vm2150_vm11 }
 0x121   :  { %v1998_v37 = vor.u32 %v1997_v57, %v1994_v50  ;;  %v6360_v55 = vsel %vm6215_vm7, %v6279_v10, %v1837_v51  ;;  %v6364_v9 = vsel %vm6215_vm7, %v1839_v31, %v1840_v0  ;;  %v1988_v61 = vor.u32 %v1987_v8, %v1984_v21 }
 0x122   :  { %7458 = vst [vmem:[#allocation37_spill] sm:$0xff] %v6344_v18  ;;  %v2004_v40 = vrot.slane %v2002_v32, 6  ;;  %v2007_v50 = vrot.slane %v2005_v58, 7  ;;  %v2155_v57 = vsel %vm6332_vm2, 65537, %v7399_v46  ;;  %v2157_v59 = vsel %vm2153_vm10, 65537, %v7399_v46 }
 0x123   :  { %v1546_v19 = vshll.u32 %v4509_v45, 16  ;;  %vm7238_vm4 = vcmp.ne.s16.totalorder %v6344_v18, 0  ;;  %v1980_v10 = vrot.slane %v6346_v41, 4  ;;  %v2156_v25 = vsel %vm2152_vm13, 65537, %v7399_v46  ;;  %v6383_v54 = vpop.permute.xlu0 %2326 }
 0x124   :  { %vm7244_vm7 = vsmask.f32 7424  ;;  %v6375_v31 = vcombine.low %v1697_v2, %v1698_v38  ;;  %v2000_v29 = vrot.slane %v1998_v37, 4  ;;  %v2158_v51 = vsel %vm2154_vm1, 65537, %v7399_v46 }
 0x125   :  { %v7459_v0 = vshrl.u32 %v6174_v35, 16  ;;  %v1548_v21 = vrot.slane %v1546_v19, 1  ;;  %v2160_v8 = vshrl.u32 %v2155_v57, 16  ;;  %v2163_v32 = vshll.u32 %v2155_v57, 16 }
 0x126   :  { %v2179_v58 = vshrl.u32 %v2157_v59, 16  ;;  %v1550_v27 = vshrl.u32 %v4509_v45, 16  ;;  %v6381_v7 = vor.u32 %v2007_v50, %v2004_v40  ;;  %v2182_v5 = vshll.u32 %v2157_v59, 16 }
 0x127   :  { %v1544_v48 = vor.u32 %v6258_v11, %v7459_v0  ;;  %v1723_v38 = vshll.u32 %v6375_v31, 16  ;;  %vm7235_vm14 = vcmp.ne.s16.totalorder %v6364_v9, 0  ;;  %v1990_v35 = vrot.slane %v1988_v61, 4 }
 0x128   :  { %v6390_v11 = vsel %vm5730_vm3, %v1980_v10, %v1988_v61  ;;  %v1552_v57 = vor.u32 %v1550_v27, %v1548_v21  ;;  %vm7460_vm2 = vcmask 130048   ;;  %v6396_v45 = vsel %vm5730_vm3, %v2000_v29, %v6381_v7  ;;  %v6401_v61 = vld [vmem:[%s7123_s3 + $0x88] sm:$0xff]  }
 0x129   :  { %v1549_v2 = vsel %vm7244_vm7, %v1544_v48, %v1548_v21  ;;  %v2169_v40 = vshrl.u32 %v2156_v25, 16  ;;  %v2172_v50 = vshll.u32 %v2156_v25, 16  ;;  %v2189_v59 = vshrl.u32 %v2158_v51, 16  ;;  %vm7463_vm1 = vmmov %vm7460_vm2 }
 0x12a   :  { %4819 = vmatprep.mubr.msk.bf16.mxu0 %vm7460_vm2, %v1549_v2  ;;  %v2162_v19 = vrot.slane %v2160_v8, 6  ;;  %v2165_v0 = vrot.slane %v2163_v32, 7  ;;  %v2192_v48 = vshll.u32 %v2158_v51, 16  ;;  %v2181_v23 = vrot.slane %v2179_v58, 6  ;;  %v6416_v51 = vpop.permute.xlu1 %2329  ;;  %v6418_v8 = vpop.permute.xlu0 %2459 }
 0x12b   :  { %v2184_v10 = vrot.slane %v2182_v5, 7  ;;  %v7461_v21 = vrot.slane %v6220_v34, 1  ;;  %v7462_v29 = vshrl.u32 %v6277_v44, 16  ;;  %v1725_v13 = vrot.slane %v1723_v38, 1 }
 0x12c   :  { %vm7243_vm11 = vcmp.ne.s16.totalorder %v6360_v55, 0  ;;  %vm7242_vm10 = vcmp.ne.s16.totalorder %v6390_v11, 0  ;;  %v6412_v25 = vsel %vm5730_vm3, %v1990_v35, %v1998_v37  ;;  %vm7241_vm13 = vcmp.ne.s16.totalorder %v6396_v45, 0 }
 0x12d   :  { %v1557_v27 = vsel %vm7244_vm7, %v1552_v57, %v7461_v21  ;;  %v1721_v2 = vor.u32 %v1720_v33, %v7462_v29  ;;  %v2171_v5 = vrot.slane %v2169_v40, 6  ;;  %v2174_v34 = vrot.slane %v2172_v50, 7 }
 0x12e   :  { %4820 = vmatmul.mubr.msk.bf16.vlgmr.msra.gmra.mrb[0].mxu0 %vm7463_vm1, %v1557_v27  ;;  %v1851_v33 = vsel %vm7235_vm14, %v6210_v1, 0  ;;  %v6425_v37 = vor.u32 %v2165_v0, %v2162_v19  ;;  %v2191_v32 = vrot.slane %v2189_v59, 6  ;;  %v2194_v58 = vrot.slane %v2192_v48, 7  ;;  %v2463_v27 = vpop.permute.xlu1 %2462  ;;  %v2466_v29 = vpop.permute.xlu0 %2465 }
 0x12f   :  { %4824 = vmatpush3.bf16.msra.mxu0 %v6307_v6  ;;  %v1726_v44 = vsel %vm7244_vm7, %v1721_v2, %v1725_v13  ;;  %vm2332_vm2 = vcmp.eq.s32.totalorder %v2324_v60, 1  ;;  %v1852_v38 = vsel %vm7238_vm4, %v6139_v28, 0  ;;  %v1850_v6 = vsel %vm7243_vm11, %v6205_v39, 0 }
 0x130   :  { %7464 = vst [vmem:[#allocation38_spill] sm:$0xff] %v6425_v37  ;;  %4825 = vmatprep.mubr.msk.bf16.mxu0 %vm7463_vm1, %v1726_v44  ;;  %4829 = vmatprep.subr.bf16.mxu0 %v6401_v61  ;;  %v2185_v35 = vor.u32 %v2184_v10, %v2181_v23  ;;  %vm2331_vm14 = vcmp.eq.s32.totalorder %v6355_v52, 1  ;;  %vm7240_vm12 = vcmp.ne.s16.totalorder %v6346_v41, 0  ;;  %v2010_v57 = vrot.slane %v6381_v7, 4  ;;  %vm6445_vm1 = vmpackc.low %vm2332_vm2, %vm2332_vm2 }
 0x131   :  { %vm7239_vm9 = vcmp.ne.s16.totalorder %v6412_v25, 0  ;;  %v4521_v60 = vcombine.low %v1850_v6, %v1851_v33  ;;  %v2017_v40 = vsel %vm7242_vm10, %v6133_v62, 0  ;;  %v2019_v28 = vsel %vm7241_vm13, %v6210_v1, 0  ;;  %vm2335_vm4 = vmpackc.low %vm2331_vm14, %vm2331_vm14  ;;  %v6482_v6 = vld [vmem:[%s7123_s3 + $0x90] sm:$0xff]  }
 0x132   :  { %v2175_v50 = vor.u32 %v2174_v34, %v2171_v5  ;;  %v1727_v52 = vshrl.u32 %v6375_v31, 16  ;;  %v1869_v7 = vrot.slane %v6351_v30, 1  ;;  %v4522_v59 = vcombine.low %v1852_v38, %v1852_v38  ;;  %v6477_v38 = vld [vmem:[#allocation2 + $0x14] sm:$0x3] }
 0x133   :  { %v2167_v19 = vrot.slane %v6425_v37, 4  ;;  %v2195_v0 = vor.u32 %v2194_v58, %v2191_v32  ;;  %v2016_v48 = vsel %vm7240_vm12, %v6323_v42, 0  ;;  %v2018_v10 = vsel %vm7239_vm9, %v6205_v39, 0 }
 0x134   :  { %v2187_v21 = vrot.slane %v2185_v35, 4  ;;  %v1729_v2 = vor.u32 %v1727_v52, %v1725_v13  ;;  %v4526_v31 = vcombine.low %v2016_v48, %v2017_v40  ;;  %vm6458_vm2 = vcmp.ne.s16.totalorder %v2010_v57, 0 }
 0x135   :  { %v7467_v30 = vmov 0  ;;  %v4527_v5 = vcombine.low %v2018_v10, %v2019_v28  ;;  %v6462_v34 = vrot.slane %v4521_v60, 1  ;;  %v2177_v44 = vrot.slane %v2175_v50, 4 }
 0x136   :  { %v7468_v30 = vsel %vm6458_vm2, 4294967295, %v7467_v30  ;;  %v6467_v33 = vsel %vm6445_vm1, 65537, %v7399_v46  ;;  %v6470_v32 = vsel %vm2335_vm4, 65537, %v7399_v46  ;;  %vm7246_vm14 = vcmask 1046528  }
 0x137   :  { %7469 = vst [vmem:[#allocation39_spill] sm:$0xff] %v7468_v30  ;;  %v6474_v13 = vsel %vm5730_vm3, %v2167_v19, %v2175_v50  ;;  %vm7258_vm9 = vcmp.ne.s16.totalorder %v6425_v37, 0  ;;  %v2197_v58 = vrot.slane %v2195_v0, 4  ;;  %vm2472_vm12 = vcmp.eq.s32.totalorder %v2466_v29, 1 }
 0x138   :  { %7470 = vst [vmem:[#allocation40_spill] sm:$0xff] %v6474_v13  ;;  %v6486_v57 = vsel %vm5730_vm3, %v2177_v44, %v2185_v35  ;;  %v6490_v60 = vsel %vm5730_vm3, %v2187_v21, %v2195_v0  ;;  %vm2333_vm4 = vcmp.eq.s32.totalorder %v6383_v54, 1  ;;  %v7473_v40 = vrot.slane %v6310_v4, 1  ;;  %v2469_v4 = vpop.permute.xlu1 %2468  ;;  %vm6506_vm11 = vmpackc.low %vm2472_vm12, %vm2472_vm12 }
 0x139   :  { %7471 = vst [vmem:[#allocation41_spill] sm:$0xff] %v6486_v57  ;;  %7472 = vst [vmem:[#allocation42_spill] sm:$0xff] %v6490_v60  ;;  %vm2470_vm1 = vcmp.eq.s32.totalorder %v6418_v8, 1  ;;  %vm7474_vm13 = vcmask 130048   ;;  %v1871_v50 = vsel %vm7246_vm14, %v1869_v7, %v6462_v34  ;;  %v2045_v23 = vshrl.u32 %v4527_v5, 16 }
 0x13a   :  { %v1734_v28 = vsel %vm7244_vm7, %v1729_v2, %v7473_v40  ;;  %v2048_v35 = vshll.u32 %v4527_v5, 16  ;;  %v1872_v52 = vrot.slane %v4522_v59, 1  ;;  %vm7260_vm10 = vcmp.ne.s16.totalorder %v6474_v13, 0  ;;  %vm6517_vm14 = vmpackc.low %vm2333_vm4, %vm2333_vm4 }
 0x13b   :  { %4826 = vmatmul.mubr.msk.bf16.vlgmr.msra.gmra.mrb[0].mxu0 %vm7474_vm13, %v1734_v28  ;;  %v2020_v15 = vsel %vm6458_vm2, %v6477_v38, 0  ;;  %vm2471_vm3 = vcmp.eq.s32.totalorder %v2463_v27, 1  ;;  %vm7257_vm7 = vcmp.ne.s16.totalorder %v6486_v57, 0  ;;  %v2037_v59 = vshrl.u32 %v4526_v31, 16  ;;  %vm2474_vm4 = vmpackc.low %vm2470_vm1, %vm2470_vm1 }
 0x13c   :  { %4830 = vmatpush3.bf16.msra.mxu0 %v6401_v61  ;;  %4831 = vmatprep.mubr.msk.bf16.mxu0 %vm7474_vm13, %v1871_v50  ;;  %v2040_v0 = vshll.u32 %v4526_v31, 16  ;;  %v2203_v61 = vsel %vm7258_vm9, %v6323_v42, 0  ;;  %vm6525_vm12 = vcmp.ne.s16.totalorder %v2197_v58, 0  ;;  %v7479_v48 = vmov 0  ;;  %vm2475_vm13 = vmpackc.low %vm2471_vm3, %vm2471_vm3 }
 0x13d   :  { %4835 = vmatprep.subr.bf16.mxu0 %v6482_v6  ;;  %v7480_v48 = vsel %vm6525_vm12, 4294967295, %v7479_v48  ;;  %vm2473_vm8 = vcmp.eq.s32.totalorder %v2469_v4, 1  ;;  %v2480_v42 = vsel %vm6506_vm11, 65537, %v7399_v46  ;;  %v2047_v21 = vrot.slane %v2045_v23, 1 }
 0x13e   :  { %7481 = vst [vmem:[#allocation43_spill] sm:$0xff] %v7480_v48  ;;  %v2050_v29 = vrot.slane %v2048_v35, 2  ;;  %v2204_v2 = vsel %vm7260_vm10, %v6133_v62, 0  ;;  %v2205_v8 = vsel %vm7257_vm7, %v6205_v39, 0  ;;  %vm7482_vm1 = vcmp.ne.s16.totalorder %v6490_v60, 0  ;;  %vm2477_vm11 = vmpackc.low %vm2473_vm8, %vm2473_vm8 }
 0x13f   :  { %v2206_v27 = vsel %vm7482_vm1, %v6210_v1, 0  ;;  %v4528_v31 = vcombine.low %v2020_v15, %v2020_v15  ;;  %vm2334_vm3 = vcmp.eq.s32.totalorder %v6416_v51, 1  ;;  %v2478_v5 = vsel %vm2474_vm4, 65537, %v7399_v46 }
 0x140   :  { %v2039_v44 = vrot.slane %v2037_v59, 1  ;;  %v2042_v58 = vrot.slane %v2040_v0, 2  ;;  %v2341_v40 = vsel %vm6517_vm14, 65537, %v7399_v46  ;;  %v2479_v28 = vsel %vm2475_vm13, 65537, %v7399_v46  ;;  %vm2338_vm4 = vmpackc.low %vm2334_vm3, %vm2334_vm3 }
 0x141   :  { %v2502_v50 = vshrl.u32 %v2480_v42, 16  ;;  %v2505_v23 = vshll.u32 %v2480_v42, 16  ;;  %v4532_v35 = vcombine.low %v2203_v61, %v2204_v2  ;;  %v4533_v4 = vcombine.low %v2205_v8, %v2206_v27  ;;  %v5108_v61 = vld [vmem:[%s7123_s3 + $0xa8] sm:$0xff]  }
 0x142   :  { %v2207_v15 = vsel %vm6525_vm12, %v6477_v38, 0  ;;  %v6557_v51 = vor.u32 %v2050_v29, %v2047_v21  ;;  %v2054_v19 = vshrl.u32 %v4528_v31, 16  ;;  %v2057_v59 = vshll.u32 %v4528_v31, 16 }
 0x143   :  { %v2483_v0 = vshrl.u32 %v2478_v5, 16  ;;  %v2486_v10 = vshll.u32 %v2478_v5, 16  ;;  %v2348_v7 = vrot.slane %v2341_v40, 6  ;;  %v2492_v54 = vshrl.u32 %v2479_v28, 16 }
 0x144   :  { %v2481_v57 = vsel %vm2477_vm11, 65537, %v7399_v46  ;;  %v2043_v37 = vor.u32 %v2042_v58, %v2039_v44  ;;  %v2495_v42 = vshll.u32 %v2479_v28, 16  ;;  %v2504_v2 = vrot.slane %v2502_v50, 5 }
 0x145   :  { %v2507_v8 = vrot.slane %v2505_v23, 6  ;;  %vm7483_vm8 = vcmask 1046528   ;;  %v6566_v29 = vsel %vm2338_vm4, 65537, %v7399_v46  ;;  %vm7484_vm14 = vcmask 130048  }
 0x146   :  { %v1873_v21 = vsel %vm7483_vm8, %v6462_v34, %v1872_v52  ;;  %vm7485_vm13 = vsmask.f32 6400  ;;  %v2232_v31 = vshrl.u32 %v4533_v4, 16  ;;  %v2235_v5 = vshll.u32 %v4533_v4, 16  ;;  %vm7486_vm1 = vmmov %vm7484_vm14 }
 0x147   :  { %4832 = vmatmul.mubr.msk.bf16.vlgmr.msra.gmra.mrb[0].mxu0 %vm7484_vm14, %v1873_v21  ;;  %v2052_v27 = vsel %vm7485_vm13, %v2043_v37, %v6557_v51  ;;  %v2485_v44 = vrot.slane %v2483_v0, 5  ;;  %v2488_v58 = vrot.slane %v2486_v10, 6  ;;  %v2512_v40 = vshrl.u32 %v2481_v57, 16  ;;  %vm7493_vm8 = vmmov %vm7486_vm1 }
 0x148   :  { %v2515_v48 = vshll.u32 %v2481_v57, 16  ;;  %4836 = vmatpush3.bf16.msra.mxu0 %v6482_v6  ;;  %4837 = vmatprep.mubr.msk.bf16.mxu0 %vm7486_vm1, %v2052_v27  ;;  %v2350_v28 = vrot.slane %v2348_v7, 4  ;;  %v2494_v34 = vrot.slane %v2492_v54, 5  ;;  %v2224_v46 = vshrl.u32 %v4532_v35, 16 }
 0x149   :  { %4841 = vmatprep.subr.bf16.mxu0 %v5108_v61  ;;  %v2227_v52 = vshll.u32 %v4532_v35, 16  ;;  %v2497_v50 = vrot.slane %v2495_v42, 6  ;;  %v2508_v23 = vor.u32 %v2507_v8, %v2504_v2  ;;  %v2056_v21 = vrot.slane %v2054_v19, 1 }
 0x14a   :  { %v2059_v30 = vrot.slane %v2057_v59, 2  ;;  %v7487_v37 = vrot.slane %v6470_v32, 6  ;;  %v2234_v0 = vrot.slane %v2232_v31, 1  ;;  %v2237_v10 = vrot.slane %v2235_v5, 2 }
 0x14b   :  { %v2351_v57 = vrot.slane %v6566_v29, 6  ;;  %v6576_v60 = vor.u32 %v2488_v58, %v2485_v44  ;;  %v2514_v6 = vrot.slane %v2512_v40, 5  ;;  %v2517_v27 = vrot.slane %v2515_v48, 6 }
 0x14c   :  { %v2344_v4 = vrot.slane %v7487_v37, 4  ;;  %v7488_v54 = vrot.slane %v6467_v33, 6  ;;  %v4534_v18 = vcombine.low %v2207_v15, %v2207_v15  ;;  %v2226_v35 = vrot.slane %v2224_v46, 1  ;;  %v2314_v46 = vld [vmem:[#allocation2 + $0x4] sm:$0xc] }
 0x14d   :  { %v2229_v42 = vrot.slane %v2227_v52, 2  ;;  %v6582_v19 = vsel %vm5655_vm0, %v2350_v28, %v2351_v57  ;;  %v2498_v59 = vor.u32 %v2497_v50, %v2494_v34  ;;  %v2510_v2 = vrot.slane %v2508_v23, 4 }
 0x14e   :  { %v2347_v13 = vrot.slane %v7488_v54, 4  ;;  %7489 = vst [vmem:[#allocation44_spill] sm:$0xff] %v6582_v19  ;;  %v2060_v8 = vor.u32 %v2059_v30, %v2056_v21  ;;  %v2238_v31 = vor.u32 %v2237_v10, %v2234_v0  ;;  %v7490_v29 = vmov %v7488_v54  ;;  %v5109_v30 = vld [vmem:[%s7123_s3 + $0xb0] sm:$0xff]  }
 0x14f   :  { %v6588_v5 = vsel %vm5655_vm0, %v2344_v4, %v7490_v29  ;;  %v2490_v15 = vrot.slane %v6576_v60, 4  ;;  %v2518_v44 = vor.u32 %v2517_v27, %v2514_v6  ;;  %v2241_v58 = vshrl.u32 %v4534_v18, 16 }
 0x150   :  { %v6592_v48 = vsel %vm5655_vm0, %v2347_v13, %v2348_v7  ;;  %vm7255_vm3 = vcmp.ne.s16.totalorder %v6582_v19, 0  ;;  %v2230_v40 = vor.u32 %v2229_v42, %v2226_v35  ;;  %v2244_v33 = vshll.u32 %v4534_v18, 16  ;;  %vm7492_vm0 = vmmov %vm7485_vm13 }
 0x151   :  { %7491 = vst [vmem:[#allocation45_spill] sm:$0xff] %v6592_v48  ;;  %v2500_v28 = vrot.slane %v2498_v59, 4  ;;  %v6601_v34 = vsel %vm5767_vm6, %v2510_v2, %v2518_v44  ;;  %v2061_v14 = vsel %vm7492_vm0, %v6557_v51, %v2060_v8  ;;  %vm7256_vm11 = vcmp.ne.s16.totalorder %v6588_v5, 0  ;;  %vm7494_vm14 = vmmov %vm7492_vm0  ;;  %v5110_v8 = vld [vmem:[%s7123_s3 + $0xb8] sm:$0xff]  }
 0x152   :  { %vm7254_vm4 = vcmp.ne.s16.totalorder %v6592_v48, 0  ;;  %v2239_v13 = vsel %vm7494_vm14, %v2230_v40, %v2238_v31  ;;  %v6611_v7 = vsel %vm5767_vm6, %v2490_v15, %v2498_v59  ;;  %vm7495_vm13 = vmmov %vm7486_vm1  ;;  %v2362_v51 = vsel %vm7255_vm3, %v6210_v1, 0  ;;  %v2449_v40 = vld [vmem:[#allocation2 + $0x14] sm:$0x7] }
 0x153   :  { %4838 = vmatmul.mubr.msk.bf16.vlgmr.msra.gmra.mrb[0].mxu0 %vm7493_vm8, %v2061_v14  ;;  %v6615_v18 = vsel %vm5767_vm6, %v2500_v28, %v2508_v23  ;;  %v7496_v52 = vmov %v7487_v37  ;;  %v7497_v50 = vmov 0  ;;  %vm2524_vm0 = vcmp.ne.s16.totalorder %v6601_v34, 0 }
 0x154   :  { %4842 = vmatpush3.bf16.msra.mxu0 %v5108_v61  ;;  %4843 = vmatprep.mubr.msk.bf16.mxu0 %vm7495_vm13, %v2239_v13  ;;  %vm6623_vm1 = vcmp.ne.s16.totalorder %v7496_v52, 0  ;;  %v2360_v56 = vsel %vm7256_vm11, %v6133_v62, 0  ;;  %v2361_v61 = vsel %vm7254_vm4, %v6205_v39, 0  ;;  %v2243_v23 = vrot.slane %v2241_v58, 1 }
 0x155   :  { %v7498_v50 = vsel %vm6623_vm1, 4294967295, %v7497_v50  ;;  %4847 = vmatprep.subr.bf16.mxu0 %v5109_v30  ;;  %v2246_v21 = vrot.slane %v2244_v33, 2  ;;  %vm2522_vm6 = vcmp.ne.s16.totalorder %v6611_v7, 0  ;;  %vm2523_vm8 = vcmp.ne.s16.totalorder %v6615_v18, 0  ;;  %v5122_v7 = vld [vmem:[%s7124_s5 + $0x88] sm:$0xff]  }
 0x156   :  { %7499 = vst [vmem:[#allocation46_spill] sm:$0xff] %v7498_v50  ;;  %v4539_v32 = vcombine.low %v2361_v61, %v2362_v51  ;;  %v2359_v37 = vsel %vm6623_vm1, %v2314_v46, 0  ;;  %v6638_v4 = vrot.slane %v2351_v57, 4  ;;  %v2529_v0 = vsel %vm2524_vm0, %v6210_v1, 0 }
 0x157   :  { %v4538_v10 = vcombine.low %v2359_v37, %v2360_v56  ;;  %vm2521_vm14 = vcmp.ne.s16.totalorder %v6576_v60, 0  ;;  %v2527_v6 = vsel %vm2522_vm6, %v6133_v62, 0  ;;  %v2528_v27 = vsel %vm2523_vm8, %v6205_v39, 0 }
 0x158   :  { %7500 = vst [vmem:[#allocation47_spill] sm:$0xff] %v6638_v4  ;;  %v2247_v54 = vor.u32 %v2246_v21, %v2243_v23  ;;  %v4545_v35 = vcombine.low %v2528_v27, %v2529_v0  ;;  %v2380_v42 = vrot.slane %v4539_v32, 2  ;;  %vm7259_vm13 = vcmp.ne.s16.totalorder %v6638_v4, 0 }
 0x159   :  { %v2526_v57 = vsel %vm2521_vm14, %v2314_v46, 0  ;;  %v2520_v1 = vrot.slane %v2518_v44, 4  ;;  %v2379_v59 = vrot.slane %v4538_v10, 2  ;;  %vm7501_vm4 = vsmask.f32 6400 }
 0x15a   :  { %v4544_v2 = vcombine.low %v2526_v57, %v2527_v6  ;;  %v2248_v62 = vsel %vm7501_vm4, %v2238_v31, %v2247_v54  ;;  %v2363_v39 = vsel %vm7259_vm13, %v6477_v38, 0  ;;  %vm7502_vm3 = vcmask 130048   ;;  %v5111_v54 = vld [vmem:[%s7124_s5 + $0x20] sm:$0xff]  }
 0x15b   :  { %vm7503_vm11 = vcmask 1045504   ;;  %v2555_v15 = vshrl.u32 %v4545_v35, 16  ;;  %v2558_v58 = vshll.u32 %v4545_v35, 16  ;;  %vm6662_vm7 = vcmp.ne.s16.totalorder %v2520_v1, 0  ;;  %vm7506_vm9 = vmmov %vm7502_vm3  ;;  %v5112_v35 = vld [vmem:[%s7124_s5 + $0x28] sm:$0xff]   ;;  %4859 = vmatprep.subr.bf16.mxu1 %v5111_v54 }
 0x15c   :  { %v2381_v29 = vsel %vm7503_vm11, %v2379_v59, %v2380_v42  ;;  %v2547_v31 = vshrl.u32 %v4544_v2, 16  ;;  %v2550_v33 = vshll.u32 %v4544_v2, 16  ;;  %v4540_v28 = vcombine.low %v2363_v39, %v2363_v39  ;;  %vm7509_vm4 = vmmov %vm7506_vm9  ;;  %4860 = vmatpush3.bf16.msra.mxu1 %v5111_v54  ;;  %v4550_v57 = vld [vmem:[%s7125_s4] ss:$0 sm:$0xff] }
 0x15d   :  { %v2530_v38 = vsel %vm6662_vm7, %v2449_v40, 0  ;;  %v2557_v14 = vrot.slane %v2555_v15, 2  ;;  %v2560_v13 = vrot.slane %v2558_v58, 3  ;;  %vm7511_vm10 = vmmov %vm7509_vm4  ;;  %4861 = vmatprep.subr.bf16.mxu1 %v5112_v35 }
 0x15e   :  { %v2549_v51 = vrot.slane %v2547_v31, 2  ;;  %v2552_v46 = vrot.slane %v2550_v33, 3  ;;  %v2382_v52 = vrot.slane %v4540_v28, 2  ;;  %v4546_v56 = vcombine.low %v2530_v38, %v2530_v38 }
 0x15f   :  { %4844 = vmatmul.mubr.msk.bf16.vlgmr.msra.gmra.mrb[0].mxu0 %vm7502_vm3, %v2248_v62  ;;  %v2561_v61 = vor.u32 %v2560_v13, %v2557_v14  ;;  %vm7507_vm3 = vmmov %vm7503_vm11  ;;  %vm7508_vm11 = vsmask.f32 5376 }
 0x160   :  { %4848 = vmatpush3.bf16.msra.mxu0 %v5109_v30  ;;  %4849 = vmatprep.mubr.msk.bf16.mxu0 %vm7506_vm9, %v2381_v29  ;;  %v2553_v23 = vor.u32 %v2552_v46, %v2549_v51  ;;  %v2564_v21 = vshrl.u32 %v4546_v56, 16  ;;  %v2567_v32 = vshll.u32 %v4546_v56, 16  ;;  %v2383_v30 = vsel %vm7507_vm3, %v2380_v42, %v2382_v52  ;;  %vm7510_vm13 = vmmov %vm7508_vm11  ;;  %v6684_v42 = vld [vmem:[%s7124_s5 + $0x10] sm:$0xff]  }
 0x161   :  { %4853 = vmatprep.subr.bf16.mxu0 %v5110_v8  ;;  %4862 = vmatpush3.bf16.msra.mxu1 %v5112_v35 }
 0x162   :  { %v2562_v37 = vsel %vm7508_vm11, %v2553_v23, %v2561_v61  ;;  %v2566_v0 = vrot.slane %v2564_v21, 2  ;;  %v2569_v10 = vrot.slane %v2567_v32, 3  ;;  %4867 = vmatprep.subr.bf16.mxu1 %v6684_v42 }
 0x164   :  { %v2570_v6 = vor.u32 %v2569_v10, %v2566_v0 }
 0x166   :  { %v2571_v27 = vsel %vm7510_vm13, %v2561_v61, %v2570_v6 }
 0x16b   :  { %4850 = vmatmul.mubr.msk.bf16.vlgmr.msra.gmra.mrb[0].mxu0 %vm7506_vm9, %v2383_v30  ;;  %vm2771_vm9 = vcmask 257024  }
 0x16c   :  { %4854 = vmatpush3.bf16.msra.mxu0 %v5110_v8  ;;  %4855 = vmatprep.mubr.msk.bf16.mxu0 %vm7509_vm4, %v2562_v37  ;;  %vm7512_vm4 = vcmp.ne.s16.totalorder %v5713_v49, 0 }
 0x177   :  { %4856 = vmatmul.mubr.msk.bf16.vlgmr.msra.gmra.mrb[0].mxu0 %vm7511_vm10, %v2571_v27 }
 0x24a   :  { %v4857_v1 = vpop.f32.mrb[0].mxu0 }
 0x24b   :  { %v6690_v59 = vadd.f32 %v4857_v1, %v4550_v57  ;;  %v2618_v2 = vpop.f32.mrb[1].mxu0 }
 0x24c   :  { %v6692_v8 = vadd.f32 %v4550_v57, %v2618_v2  ;;  %v4858_v62 = vpop.f32.mrb[2].mxu0 }
 0x24d   :  { %v6695_v39 = vmul.f32 0.70710677, %v6690_v59  ;;  %v6697_v29 = vadd.f32 %v4858_v62, %v4550_v57  ;;  %v2621_v15 = vpop.f32.mrb[3].mxu0 }
 0x24e   :  { %v6700_v58 = vmul.f32 0.70710677, %v6692_v8  ;;  %v6702_v40 = vadd.f32 %v4550_v57, %v2621_v15 }
 0x24f   :  { %v2657_v31 = vand.u32 2147483647, %v6695_v39  ;;  %v6706_v33 = vmul.f32 0.70710677, %v6697_v29  ;;  %vm2737_vm10 = vcmp.ge.f32.partialorder %v6695_v39, 0.0 }
 0x250   :  { %v2655_v28 = vand.u32 2147483647, %v6700_v58  ;;  %v6710_v38 = vmul.f32 0.70710677, %v6702_v40  ;;  %vm2735_vm13 = vcmp.ge.f32.partialorder %v6700_v58, 0.0  ;;  %v2650_v58 = vmul.f32 0.5, %v6697_v29 }
 0x251   :  { %v2661_v14 = vmul.f32 0.3275911, %v2657_v31  ;;  %v2658_v13 = vand.u32 2147483647, %v6706_v33  ;;  %v2713_v30 = vsub.f32 0.0, %v2657_v31  ;;  %vm2738_vm3 = vcmp.ge.f32.partialorder %v6706_v33, 0.0 }
 0x252   :  { %v2659_v51 = vmul.f32 0.3275911, %v2655_v28  ;;  %v2656_v46 = vand.u32 2147483647, %v6710_v38  ;;  %v2711_v37 = vsub.f32 0.0, %v2655_v28  ;;  %vm2736_vm11 = vcmp.ge.f32.partialorder %v6710_v38, 0.0 }
 0x253   :  { %v2665_v52 = vadd.f32 1.0, %v2661_v14  ;;  %v2662_v56 = vmul.f32 0.3275911, %v2658_v13  ;;  %v2717_v10 = vmul.f32 %v2713_v30, %v2657_v31  ;;  %v2714_v6 = vsub.f32 0.0, %v2658_v13  ;;  %v6726_v29 = vld [vmem:[#allocation3] sm:$0xc] }
 0x254   :  { %v2663_v61 = vadd.f32 1.0, %v2659_v51  ;;  %v2660_v23 = vmul.f32 0.3275911, %v2656_v46  ;;  %v2715_v35 = vmul.f32 %v2711_v37, %v2655_v28  ;;  %v2712_v1 = vsub.f32 0.0, %v2656_v46 }
 0x255   :  { %5143 = vrcp.f32 %v2665_v52  ;;  %v2666_v21 = vadd.f32 1.0, %v2662_v56  ;;  %v2723_v15 = vmul.f32 1.442695, %v2717_v10  ;;  %v2718_v51 = vmul.f32 %v2714_v6, %v2658_v13 }
 0x256   :  { %5145 = vrcp.f32 %v2663_v61  ;;  %v2664_v32 = vadd.f32 1.0, %v2660_v23  ;;  %v2719_v56 = vmul.f32 1.442695, %v2715_v35 }
 0x257   :  { %5147 = vrcp.f32 %v2666_v21  ;;  %v2725_v50 = vmul.f32 1.442695, %v2718_v51 }
 0x258   :  { %5149 = vrcp.f32 %v2664_v32  ;;  %v2716_v32 = vmul.f32 %v2712_v1, %v2656_v46 }
 0x259   :  { %5151 = vpow2.f32 %v2723_v15 }
 0x25a   :  { %5153 = vpow2.f32 %v2719_v56  ;;  %v2721_v10 = vmul.f32 1.442695, %v2716_v32 }
 0x25b   :  { %5155 = vpow2.f32 %v2725_v50 }
 0x25c   :  { %5157 = vpow2.f32 %v2721_v10 }
 0x25f   :  { %v5144_v0 = vpop.eup %5143 }
 0x260   :  { %v5146_v27 = vpop.eup %5145  ;;  %v2677_v54 = vmul.f32 1.0614054, %v5144_v0 }
 0x261   :  { %v2675_v57 = vmul.f32 1.0614054, %v5146_v27  ;;  %v5148_v62 = vpop.eup %5147 }
 0x262   :  { %v2681_v2 = vadd.f32 -1.4531521, %v2677_v54  ;;  %v2678_v61 = vmul.f32 1.0614054, %v5148_v62  ;;  %v5150_v23 = vpop.eup %5149 }
 0x263   :  { %v2679_v14 = vadd.f32 -1.4531521, %v2675_v57  ;;  %v2676_v31 = vmul.f32 1.0614054, %v5150_v23 }
 0x264   :  { %v2685_v52 = vmul.f32 %v5144_v0, %v2681_v2  ;;  %v2682_v48 = vadd.f32 -1.4531521, %v2678_v61 }
 0x265   :  { %v2683_v21 = vmul.f32 %v5146_v27, %v2679_v14  ;;  %v2680_v54 = vadd.f32 -1.4531521, %v2676_v31 }
 0x266   :  { %v2689_v4 = vadd.f32 1.4214138, %v2685_v52  ;;  %v2686_v37 = vmul.f32 %v5148_v62, %v2682_v48 }
 0x267   :  { %v2687_v30 = vadd.f32 1.4214138, %v2683_v21  ;;  %v2684_v6 = vmul.f32 %v5150_v23, %v2680_v54  ;;  %v5152_v21 = vpop.eup %5151 }
 0x268   :  { %v2693_v28 = vmul.f32 %v5144_v0, %v2689_v4  ;;  %v2690_v13 = vadd.f32 1.4214138, %v2686_v37  ;;  %v5154_v32 = vpop.eup %5153 }
 0x269   :  { %v2691_v19 = vmul.f32 %v5146_v27, %v2687_v30  ;;  %v2688_v46 = vadd.f32 1.4214138, %v2684_v6 }
 0x26a   :  { %v2697_v57 = vadd.f32 -0.28449672, %v2693_v28  ;;  %v2694_v14 = vmul.f32 %v5148_v62, %v2690_v13  ;;  %v5156_v13 = vpop.eup %5155 }
 0x26b   :  { %v2695_v35 = vadd.f32 -0.28449672, %v2691_v19  ;;  %v2692_v61 = vmul.f32 %v5150_v23, %v2688_v46 }
 0x26c   :  { %v2701_v2 = vmul.f32 %v5144_v0, %v2697_v57  ;;  %v2698_v15 = vadd.f32 -0.28449672, %v2694_v14  ;;  %v5158_v14 = vpop.eup %5157 }
 0x26d   :  { %v2699_v1 = vmul.f32 %v5146_v27, %v2695_v35  ;;  %v2696_v48 = vadd.f32 -0.28449672, %v2692_v61 }
 0x26e   :  { %v2705_v52 = vadd.f32 0.2548296, %v2701_v2  ;;  %v2702_v56 = vmul.f32 %v5148_v62, %v2698_v15 }
 0x26f   :  { %v2703_v51 = vadd.f32 0.2548296, %v2699_v1  ;;  %v2700_v37 = vmul.f32 %v5150_v23, %v2696_v48 }
 0x270   :  { %v2709_v4 = vmul.f32 %v5144_v0, %v2705_v52  ;;  %v2706_v28 = vadd.f32 0.2548296, %v2702_v56  ;;  %v2649_v52 = vmul.f32 0.5, %v6690_v59 }
 0x271   :  { %v2707_v31 = vmul.f32 %v5146_v27, %v2703_v51  ;;  %v2704_v57 = vadd.f32 0.2548296, %v2700_v37 }
 0x272   :  { %v2729_v30 = vmul.f32 %v5152_v21, %v2709_v4  ;;  %v2710_v54 = vmul.f32 %v5148_v62, %v2706_v28  ;;  %v2647_v62 = vmul.f32 0.5, %v6692_v8  ;;  %v2648_v28 = vmul.f32 0.5, %v6702_v40 }
 0x273   :  { %v2727_v19 = vmul.f32 %v5154_v32, %v2707_v31  ;;  %v2708_v2 = vmul.f32 %v5150_v23, %v2704_v57 }
 0x274   :  { %v2733_v50 = vsub.f32 1.0, %v2729_v30  ;;  %v2730_v35 = vmul.f32 %v5156_v13, %v2710_v54  ;;  %v2777_v54 = vld [vmem:[#allocation3] sm:$0xe] }
 0x275   :  { %v2731_v6 = vsub.f32 1.0, %v2727_v19  ;;  %v2728_v1 = vmul.f32 %v5158_v14, %v2708_v2  ;;  %v2782_v57 = vsel %vm7512_vm4, %v2777_v54, 0  ;;  %vm7517_vm4 = vcmp.ne.s16.totalorder %v5669_v22, 0 }
 0x276   :  { %v2741_v10 = vsub.f32 0.0, %v2733_v50  ;;  %v2734_v27 = vsub.f32 1.0, %v2730_v35 }
 0x277   :  { %v2739_v0 = vsub.f32 0.0, %v2731_v6  ;;  %v2732_v56 = vsub.f32 1.0, %v2728_v1 }
 0x278   :  { %v2745_v46 = vsel %vm2737_vm10, %v2733_v50, %v2741_v10  ;;  %v2742_v4 = vsub.f32 0.0, %v2734_v27  ;;  %vm7513_vm10 = vcmp.ne.s16.totalorder %v5665_v20, 0 }
 0x279   :  { %v2749_v15 = vadd.f32 1.0, %v2745_v46  ;;  %v2743_v61 = vsel %vm2735_vm13, %v2731_v6, %v2739_v0  ;;  %v2740_v21 = vsub.f32 0.0, %v2732_v56  ;;  %vm7514_vm13 = vcmp.ne.s16.totalorder %v5743_v36, 0 }
 0x27a   :  { %v2747_v51 = vadd.f32 1.0, %v2743_v61  ;;  %v2746_v23 = vsel %vm2738_vm3, %v2734_v27, %v2742_v4  ;;  %vm7515_vm3 = vnez %v7342_v3 }
 0x27b   :  { %v2753_v48 = vmul.f32 %v2749_v15, %v2649_v52  ;;  %v2750_v32 = vadd.f32 1.0, %v2746_v23  ;;  %v2744_v30 = vsel %vm2736_vm11, %v2732_v56, %v2740_v21  ;;  %v2792_v35 = vsel %vm7515_vm3, %v6726_v29, 0 }
 0x27c   :  { %v2751_v39 = vmul.f32 %v2747_v51, %v2647_v62  ;;  %v2748_v37 = vadd.f32 1.0, %v2744_v30  ;;  %vm2831_vm11 = vcmask 261120   ;;  %vm7520_vm3 = vcmp.ne.s16.totalorder %v5751_v43, 0 }
 0x27d   :  { %v4662_v31 = vpack.c.bf16 %v2753_v48, %v2753_v48  ;;  %v2754_v8 = vmul.f32 %v2750_v32, %v2650_v58 }
 0x27e   :  { %v4660_v59 = vpack.c.bf16 %v2751_v39, %v2751_v39  ;;  %v2752_v19 = vmul.f32 %v2748_v37, %v2648_v28 }
 0x27f   :  { %2774 = vst.msk [vmem:[#allocation3 + $0xc] sm:$0xf] %vm2771_vm9, %v4662_v31  ;;  %v4663_v33 = vpack.c.bf16 %v2754_v8, %v2754_v8 }
 0x280   :  { %2772 = vst.msk [vmem:[#allocation3 + $0x4] sm:$0xf] %vm2771_vm9, %v4660_v59  ;;  %v4661_v50 = vpack.c.bf16 %v2752_v19, %v2752_v19 }
 0x281   :  { %2775 = vst.msk [vmem:[#allocation3 + $0x10] sm:$0xf] %vm2771_vm9, %v4663_v33 }
 0x282   :  { %2773 = vst.msk [vmem:[#allocation3 + $0x8] sm:$0xf] %vm2771_vm9, %v4661_v50  ;;  %vm7516_vm9 = vcmp.ne.s16.totalorder %v5753_v47, 0  ;;  %v5115_v50 = vld [vmem:[%s7124_s5 + $0x30] sm:$0xff]  }
 0x283   :  { %v2994_v49 = vsel %vm7516_vm9, %v6726_v29, 0  ;;  %vm7521_vm9 = vcmp.ne.s16.totalorder %v5676_v26, 0 }
 0x286   :  { %v6732_v13 = vld [vmem:[#allocation3 + $0xc] sm:$0xf] }
 0x287   :  { %v6728_v38 = vld [vmem:[#allocation3 + $0x4] sm:$0xf]  ;;  %v2795_v20 = vsel %vm7517_vm4, %v6732_v13, 0  ;;  %v2785_v47 = vsel %vm7520_vm3, %v6732_v13, 0  ;;  %vm7522_vm4 = vcmp.ne.s16.totalorder %v5758_v53, 0  ;;  %vm7525_vm3 = vcmp.ne.s16.totalorder %v5781_v63, 0 }
 0x288   :  { %v2793_v40 = vsel %vm7513_vm10, %v6728_v38, 0  ;;  %v2783_v6 = vsel %vm7514_vm13, %v6728_v38, 0  ;;  %v2781_v2 = vld [vmem:[#allocation3 + $0x10] sm:$0x3]  ;;  %vm7518_vm10 = vcmp.ne.s16.totalorder %v5653_v12, 0  ;;  %vm7519_vm13 = vnez %v7348_v24  ;;  %v5114_v63 = vld [vmem:[%s7124_s5 + $0x18] sm:$0xff]  }
 0x289   :  { %v4562_v10 = vcombine.low %v2782_v57, %v2783_v6  ;;  %v4555_v14 = vcombine.low %v2792_v35, %v2793_v40  ;;  %v2796_v36 = vsel %vm7518_vm10, %v2781_v2, 0  ;;  %v6751_v46 = vld [vmem:[#allocation3 + $0x8] sm:$0xf]  ;;  %v2786_v3 = vsel %vm7519_vm13, %v2781_v2, 0  ;;  %v6781_v33 = vld [vmem:[#allocation3 + $0x10] sm:$0x7] }
 0x28a   :  { %v4557_v27 = vcombine.low %v2796_v36, %v2796_v36  ;;  %v2794_v22 = vsel %vm7521_vm9, %v6751_v46, 0  ;;  %v2784_v12 = vsel %vm7522_vm4, %v6751_v46, 0  ;;  %vm7523_vm10 = vcmp.ne.s16.totalorder %v5792_v17, 0  ;;  %v7531_v2 = vld [vmem:[#allocation8_spill] sm:$0xff] }
 0x28b   :  { %v2901_v0 = vshrl.u32 %v4562_v10, 16  ;;  %v2904_v1 = vshll.u32 %v4562_v10, 16  ;;  %v2996_v52 = vsel %vm7523_vm10, %v6751_v46, 0  ;;  %vm7524_vm13 = vcmp.ne.s16.totalorder %v5788_v16, 0 }
 0x28c   :  { %v2997_v24 = vsel %vm7524_vm13, %v6732_v13, 0  ;;  %v4556_v15 = vcombine.low %v2794_v22, %v2795_v20  ;;  %v2817_v43 = vrot.slane %v4557_v27, 2  ;;  %v4563_v61 = vcombine.low %v2784_v12, %v2785_v47  ;;  %v7533_v27 = vld [vmem:[#allocation6_spill] sm:$0xff] }
 0x28d   :  { %v2995_v26 = vsel %vm7525_vm3, %v6728_v38, 0  ;;  %v2814_v62 = vrot.slane %v4555_v14, 2  ;;  %v4564_v51 = vcombine.low %v2786_v3, %v2786_v3  ;;  %v2903_v4 = vrot.slane %v2901_v0, 1 }
 0x28e   :  { %v2906_v53 = vrot.slane %v2904_v1, 2  ;;  %v2815_v56 = vrot.slane %v4556_v15, 2  ;;  %v2909_v48 = vshrl.u32 %v4563_v61, 16  ;;  %v2912_v39 = vshll.u32 %v4563_v61, 16  ;;  %v7535_v1 = vld [vmem:[#allocation7_spill] sm:$0xff]  ;;  %v5116_v61 = vld [vmem:[%s7124_s5 + $0x38] sm:$0xff]  }
 0x28f   :  { %v4570_v17 = vcombine.low %v2996_v52, %v2997_v24  ;;  %v4569_v23 = vcombine.low %v2994_v49, %v2995_v26  ;;  %vm7526_vm9 = vcmask 1045504   ;;  %v2918_v32 = vshrl.u32 %v4564_v51, 16  ;;  %v7529_v49 = vld [vmem:[#allocation5_spill] sm:$0xff]  ;;  %v7537_v24 = vld [vmem:[#allocation4_spill] sm:$0xff] }
 0x290   :  { %v2816_v21 = vsel %vm7526_vm9, %v2814_v62, %v2815_v56  ;;  %vm7527_vm4 = vmmov %vm7526_vm9  ;;  %v2911_v31 = vrot.slane %v2909_v48, 1  ;;  %v2914_v58 = vrot.slane %v2912_v39, 2  ;;  %v2921_v59 = vshll.u32 %v4564_v51, 16 }
 0x291   :  { %v2818_v16 = vsel %vm7527_vm4, %v2815_v56, %v2817_v43  ;;  %4863 = vmatprep.mubr.msk.bf16.mxu1 %vm2831_vm11, %v2816_v21  ;;  %v2907_v30 = vor.u32 %v2906_v53, %v2903_v4  ;;  %v3025_v28 = vshrl.u32 %v4570_v17, 16  ;;  %v3028_v37 = vshll.u32 %v4570_v17, 16 }
 0x292   :  { %4864 = vmatmul.mubr.msk.bf16.vlgmr.msra.gmra.mrb[0].mxu1 %vm2831_vm11, %v2818_v16  ;;  %v2915_v8 = vor.u32 %v2914_v58, %v2911_v31  ;;  %vm7528_vm10 = vsmask.f32 6400  ;;  %v3017_v54 = vshrl.u32 %v4569_v23, 16  ;;  %v3020_v57 = vshll.u32 %v4569_v23, 16  ;;  %v7541_v58 = vld [vmem:[#allocation9_spill] sm:$0xff] }
 0x293   :  { %4868 = vmatpush3.bf16.msra.mxu1 %v6684_v42  ;;  %v2920_v40 = vrot.slane %v2918_v32, 1  ;;  %v2923_v6 = vrot.slane %v2921_v59, 2  ;;  %v3027_v10 = vrot.slane %v3025_v28, 2  ;;  %v3030_v35 = vrot.slane %v3028_v37, 3 }
 0x294   :  { %v2916_v19 = vsel %vm7528_vm10, %v2907_v30, %v2915_v8  ;;  %4869 = vmatprep.subr.bf16.mxu1 %v5114_v63  ;;  %vm7530_vm13 = vnez %v7529_v49  ;;  %vm7532_vm3 = vcmp.ne.s16.totalorder %v7531_v2, 0  ;;  %v3019_v14 = vrot.slane %v3017_v54, 2  ;;  %v3232_v49 = vld [vmem:[#allocation3] sm:$0x8] }
 0x295   :  { %4871 = vmatprep.mubr.msk.bf16.mxu1 %vm2831_vm11, %v2916_v19  ;;  %v2998_v42 = vsel %vm7530_vm13, %v6781_v33, 0  ;;  %v3115_v20 = vsel %vm7532_vm3, %v6751_v46, 0  ;;  %v3022_v36 = vrot.slane %v3020_v57, 3  ;;  %v2924_v0 = vor.u32 %v2923_v6, %v2920_v40 }
 0x296   :  { %v4571_v3 = vcombine.low %v2998_v42, %v2998_v42  ;;  %vm7534_vm9 = vcmp.ne.s16.totalorder %v7533_v27, 0  ;;  %vm7536_vm4 = vcmp.ne.s16.totalorder %v7535_v1, 0  ;;  %v3031_v12 = vor.u32 %v3030_v35, %v3027_v10  ;;  %v7545_v10 = vld [vmem:[#allocation13_spill] sm:$0xff]  ;;  %v5119_v42 = vld [vmem:[%s7124_s5 + $0x70] sm:$0xff]  }
 0x297   :  { %4870 = vmatpush3.bf16.msra.mxu1 %v5114_v63  ;;  %v3114_v47 = vsel %vm7534_vm9, %v6728_v38, 0  ;;  %v3116_v22 = vsel %vm7536_vm4, %v6732_v13, 0  ;;  %vm7538_vm10 = vcmp.ne.s16.totalorder %v7537_v24, 0  ;;  %v3023_v43 = vor.u32 %v3022_v36, %v3019_v14  ;;  %v7547_v14 = vld [vmem:[#allocation10_spill] sm:$0xff] }
 0x298   :  { %4875 = vmatprep.subr.bf16.mxu1 %v5115_v50  ;;  %v4577_v52 = vcombine.low %v3115_v20, %v3116_v22  ;;  %v3113_v15 = vsel %vm7538_vm10, %v6726_v29, 0  ;;  %vm7539_vm13 = vsmask.f32 6400  ;;  %v3034_v51 = vshrl.u32 %v4571_v3, 16  ;;  %v5117_v29 = vld [vmem:[%s7124_s5 + $0x60] sm:$0xff]   ;;  %v7553_v22 = vld [vmem:[#allocation11_spill] sm:$0xff] }
 0x299   :  { %v4576_v26 = vcombine.low %v3113_v15, %v3114_v47  ;;  %v2925_v62 = vsel %vm7539_vm13, %v2915_v8, %v2924_v0  ;;  %v3037_v4 = vshll.u32 %v4571_v3, 16  ;;  %vm7540_vm3 = vsmask.f32 5376  ;;  %v7549_v0 = vld [vmem:[#allocation14_spill] sm:$0xff]  ;;  %v7551_v47 = vld [vmem:[#allocation20_spill] sm:$0xff]  ;;  %v7555_v15 = vld [vmem:[#allocation17_spill] sm:$0xff] }
 0x29a   :  { %v3032_v53 = vsel %vm7540_vm3, %v3023_v43, %v3031_v12  ;;  %v3144_v56 = vshrl.u32 %v4577_v52, 16  ;;  %v3147_v48 = vshll.u32 %v4577_v52, 16  ;;  %v3036_v23 = vrot.slane %v3034_v51, 2  ;;  %vm7543_vm4 = vmmov %vm7540_vm3  ;;  %v4323_v52 = vld [vmem:[#allocation3 + $0x14] sm:$0x7] }
 0x29b   :  { %v3136_v39 = vshrl.u32 %v4576_v26, 16  ;;  %v3139_v17 = vshll.u32 %v4576_v26, 16  ;;  %v3039_v21 = vrot.slane %v3037_v4, 3  ;;  %vm7542_vm9 = vnez %v7541_v58  ;;  %vm7544_vm10 = vmmov %vm7540_vm3  ;;  %v7559_v4 = vld [vmem:[#allocation15_spill] sm:$0xff] }
 0x29c   :  { %v3146_v16 = vrot.slane %v3144_v56, 2  ;;  %v3149_v31 = vrot.slane %v3147_v48, 3  ;;  %v3117_v63 = vsel %vm7542_vm9, %v6781_v33, 0  ;;  %v4604_v37 = vcombine.low %v6728_v38, %v6751_v46 }
 0x29d   :  { %v3138_v32 = vrot.slane %v3136_v39, 2  ;;  %v3141_v59 = vrot.slane %v3139_v17, 3  ;;  %v3040_v30 = vor.u32 %v3039_v21, %v3036_v23  ;;  %v4578_v8 = vcombine.low %v3117_v63, %v3117_v63  ;;  %v5120_v17 = vld [vmem:[%s7124_s5 + $0x78] sm:$0xff]   ;;  %v7562_v21 = vld [vmem:[#allocation12_spill] sm:$0xff] }
 0x29e   :  { %4872 = vmatmul.mubr.msk.bf16.vlgmr.msra.gmra.mrb[0].mxu1 %vm2831_vm11, %v2925_v62  ;;  %v3150_v28 = vor.u32 %v3149_v31, %v3146_v16  ;;  %vm7546_vm13 = vcmp.ne.s16.totalorder %v7545_v10, 0  ;;  %vm7548_vm3 = vcmp.ne.s16.totalorder %v7547_v14, 0  ;;  %vm7550_vm9 = vcmp.ne.s16.totalorder %v7549_v0, 0 }
 0x29f   :  { %4876 = vmatpush3.bf16.msra.mxu1 %v5115_v50  ;;  %4879 = vmatprep.mubr.msk.bf16.mxu1 %vm2831_vm11, %v3032_v53  ;;  %v3142_v19 = vor.u32 %v3141_v59, %v3138_v32  ;;  %v5118_v50 = vld [vmem:[%s7124_s5 + $0x68] sm:$0xff]   ;;  %v3041_v54 = vsel %vm7543_vm4, %v3031_v12, %v3040_v30  ;;  %v3153_v57 = vshrl.u32 %v4578_v8, 16  ;;  %v3156_v40 = vshll.u32 %v4578_v8, 16  ;;  %v5121_v8 = vld [vmem:[%s7124_s5 + $0x80] sm:$0xff]  }
 0x2a0   :  { %4877 = vmatprep.subr.bf16.mxu1 %v5116_v61  ;;  %v3235_v35 = vsel %vm7546_vm13, %v6751_v46, 0  ;;  %v3234_v36 = vsel %vm7548_vm3, %v6728_v38, 0  ;;  %v3236_v3 = vsel %vm7550_vm9, %v6732_v13, 0  ;;  %vm7552_vm4 = vnez %v7551_v47  ;;  %v6861_v32 = vld [vmem:[#allocation3 + $0x10] sm:$0xf] }
 0x2a1   :  { %v3151_v6 = vsel %vm7544_vm10, %v3142_v19, %v3150_v28  ;;  %v3155_v2 = vrot.slane %v3153_v57, 2  ;;  %v3158_v20 = vrot.slane %v3156_v40, 3  ;;  %v4584_v27 = vcombine.low %v3235_v35, %v3236_v3  ;;  %v6873_v35 = vld [vmem:[#allocation3 + $0xc] sm:$0xf] }
 0x2a2   :  { %v3334_v1 = vsel %vm7552_vm4, %v6751_v46, 0  ;;  %vm7554_vm10 = vnez %v7553_v22  ;;  %vm7556_vm13 = vnez %v7555_v15  ;;  %vm7560_vm9 = vcmp.ne.s16.totalorder %v7559_v4, 0  ;;  %v6885_v22 = vld [vmem:[#allocation3 + $0x4] sm:$0xc] }
 0x2a3   :  { %4878 = vmatpush3.bf16.msra.mxu1 %v5116_v61  ;;  %v3233_v12 = vsel %vm7554_vm10, %v3232_v49, 0  ;;  %v3333_v43 = vsel %vm7556_vm13, %v6728_v38, 0  ;;  %v7557_v61 = vld [vmem:[#allocation19_spill] sm:$0xff]  ;;  %v3159_v62 = vor.u32 %v3158_v20, %v3155_v2  ;;  %v3332_v53 = vsel %vm7560_vm9, %v3232_v49, 0  ;;  %v7569_v20 = vld [vmem:[#allocation21_spill] sm:$0xff] }
 0x2a4   :  { %4883 = vmatprep.subr.bf16.mxu1 %v5117_v29  ;;  %v4583_v24 = vcombine.low %v3233_v12, %v3234_v36  ;;  %vm7558_vm3 = vnez %v7557_v61  ;;  %v3256_v56 = vrot.slane %v4584_v27, 3  ;;  %v4328_v48 = vsel %vm6662_vm7, %v4323_v52, 0  ;;  %v6878_v36 = vld [vmem:[#allocation3 + $0x8] sm:$0xf]  ;;  %v7571_v27 = vld [vmem:[#allocation23_spill] sm:$0xff]  ;;  %v7573_v12 = vld [vmem:[#allocation16_spill] sm:$0xff] }
 0x2a5   :  { %v3335_v26 = vsel %vm7558_vm3, %v6732_v13, 0  ;;  %vm7561_vm4 = vsmask.f32 5376  ;;  %vm7563_vm10 = vcmp.ne.s16.totalorder %v7562_v21, 0  ;;  %v4654_v63 = vcombine.low %v4328_v48, %v4328_v48 }
 0x2a6   :  { %v4591_v51 = vcombine.low %v3334_v1, %v3335_v26  ;;  %v3255_v39 = vrot.slane %v4583_v24, 3  ;;  %v3160_v23 = vsel %vm7561_vm4, %v3150_v28, %v3159_v62  ;;  %v3237_v16 = vsel %vm7563_vm10, %v6781_v33, 0  ;;  %v6883_v1 = vld [vmem:[#allocation3 + $0x10] sm:$0xf] }
 0x2a7   :  { %vm7564_vm13 = vcmask 1044480   ;;  %v4585_v33 = vcombine.low %v3237_v16, %v3237_v16  ;;  %v4364_v57 = vshrl.u32 %v4654_v63, 16  ;;  %v4367_v40 = vshll.u32 %v4654_v63, 16 }
 0x2a8   :  { %v3363_v31 = vshrl.u32 %v4591_v51, 16  ;;  %v3366_v58 = vshll.u32 %v4591_v51, 16  ;;  %v3257_v44 = vsel %vm7564_vm13, %v3255_v39, %v3256_v56  ;;  %vm7570_vm9 = vnez %v7569_v20 }
 0x2a9   :  { %v3452_v14 = vsel %vm7570_vm9, %v6728_v38, 0  ;;  %v3258_v0 = vrot.slane %v4585_v33, 3  ;;  %vm7572_vm4 = vnez %v7571_v27  ;;  %vm7574_vm10 = vcmp.ne.s16.totalorder %v7573_v12, 0 }
 0x2aa   :  { %4880 = vmatmul.mubr.msk.bf16.vlgmr.msra.gmra.mrb[0].mxu1 %vm2831_vm11, %v3041_v54  ;;  %v3365_v28 = vrot.slane %v3363_v31, 3  ;;  %v3368_v19 = vrot.slane %v3366_v58, 4  ;;  %v3454_v47 = vsel %vm7572_vm4, %v6732_v13, 0  ;;  %v3451_v52 = vsel %vm7574_vm10, %v3232_v49, 0 }
 0x2ab   :  { %4884 = vmatpush3.bf16.msra.mxu1 %v5117_v29  ;;  %4887 = vmatprep.mubr.msk.bf16.mxu1 %vm2831_vm11, %v3151_v6  ;;  %v4590_v29 = vcombine.low %v3332_v53, %v3333_v43  ;;  %v7567_v6 = vld [vmem:[#allocation24_spill] sm:$0xff]  ;;  %v4366_v43 = vrot.slane %v4364_v57, 2  ;;  %v4369_v61 = vrot.slane %v4367_v40, 3  ;;  %v4597_v26 = vcombine.low %v3451_v52, %v3452_v14  ;;  %v5124_v52 = vld [vmem:[%s7124_s5 + $0xb8] sm:$0xff]  }
 0x2ac   :  { %4885 = vmatprep.subr.bf16.mxu1 %v5118_v50  ;;  %vm7568_vm3 = vnez %v7567_v6  ;;  %v3369_v24 = vor.u32 %v3368_v19, %v3365_v28  ;;  %v4325_v62 = vsel %vm2522_vm6, %v6878_v36, 0  ;;  %v4324_v4 = vsel %vm2521_vm14, %v6885_v22, 0 }
 0x2ad   :  { %v3355_v59 = vshrl.u32 %v4590_v29, 16  ;;  %v3358_v30 = vshll.u32 %v4590_v29, 16  ;;  %v3453_v10 = vsel %vm7568_vm3, %v6751_v46, 0  ;;  %v4326_v53 = vsel %vm2523_vm8, %v6873_v35, 0 }
 0x2ae   :  { %v4598_v15 = vcombine.low %v3453_v10, %v3454_v47  ;;  %v4327_v49 = vsel %vm2524_vm0, %v6883_v1, 0  ;;  %v3259_v48 = vsel %vm7564_vm13, %v3256_v56, %v3258_v0  ;;  %v4652_v39 = vcombine.low %v4324_v4, %v4325_v62  ;;  %v5125_v62 = vld [vmem:[%s7124_s5 + $0xc0] sm:$0xff]  }
 0x2af   :  { %4886 = vmatpush3.bf16.msra.mxu1 %v5118_v50  ;;  %v7565_v50 = vld [vmem:[#allocation18_spill] sm:$0xff]  ;;  %v3360_v2 = vrot.slane %v3358_v30, 4  ;;  %vm7575_vm6 = vsmask.f32 4352  ;;  %v3474_v56 = vshrl.u32 %v4597_v26, 16  ;;  %v3477_v63 = vshll.u32 %v4597_v26, 16 }
 0x2b0   :  { %4891 = vmatprep.subr.bf16.mxu1 %v5119_v42  ;;  %vm7566_vm7 = vcmp.ne.s16.totalorder %v7565_v50, 0  ;;  %v3482_v21 = vshrl.u32 %v4598_v15, 16  ;;  %v3485_v16 = vshll.u32 %v4598_v15, 16  ;;  %v4347_v18 = vshrl.u32 %v4652_v39, 16  ;;  %vm7581_vm3 = vmmov %vm7575_vm6 }
 0x2b1   :  { %v3336_v54 = vsel %vm7566_vm7, %v6861_v32, 0  ;;  %v4350_v31 = vshll.u32 %v4652_v39, 16  ;;  %v3479_v20 = vrot.slane %v3477_v63, 4  ;;  %vm7578_vm8 = vsmask.f32 5376  ;;  %vm7580_vm7 = vmmov %vm7575_vm6  ;;  %v7591_v63 = vld [vmem:[#allocation31_spill] sm:$0xff] }
 0x2b2   :  { %v4592_v3 = vcombine.low %v3336_v54, %v3336_v54  ;;  %v7576_v54 = vld [vmem:[#allocation22_spill] sm:$0xff]  ;;  %v3484_v40 = vrot.slane %v3482_v21, 3  ;;  %v3487_v6 = vrot.slane %v3485_v16, 4  ;;  %vm7579_vm14 = vmmov %vm7578_vm8 }
 0x2b3   :  { %v4352_v30 = vrot.slane %v4350_v31, 3  ;;  %vm7577_vm0 = vcmp.ne.s16.totalorder %v7576_v54, 0  ;;  %vm7586_vm10 = vmmov %vm7581_vm3  ;;  %v4605_v54 = vcombine.low %v6732_v13, %v6861_v32  ;;  %v7600_v13 = vld [vmem:[#allocation33_spill] sm:$0xff] }
 0x2b4   :  { %v3372_v29 = vshrl.u32 %v4592_v3, 16  ;;  %v3455_v57 = vsel %vm7577_vm0, %v6861_v32, 0  ;;  %v3488_v47 = vor.u32 %v3487_v6, %v3484_v40  ;;  %vm7592_vm0 = vcmp.ne.s16.totalorder %v7591_v63, 0  ;;  %v7597_v40 = vld [vmem:[#allocation34_spill] sm:$0xff] }
 0x2b5   :  { %v4599_v27 = vcombine.low %v3455_v57, %v3455_v57 }
 0x2b6   :  { %4888 = vmatmul.mubr.msk.bf16.vlgmr.msra.gmra.mrb[0].mxu1 %vm2831_vm11, %v3160_v23  ;;  %v3375_v23 = vshll.u32 %v4592_v3, 16  ;;  %v3374_v19 = vrot.slane %v3372_v29, 3 }
 0x2b7   :  { %4892 = vmatpush3.bf16.msra.mxu1 %v5119_v42  ;;  %4895 = vmatprep.mubr.msk.bf16.mxu1 %vm2831_vm11, %v3257_v44  ;;  %v3357_v42 = vrot.slane %v3355_v59, 3  ;;  %v5123_v44 = vld [vmem:[%s7124_s5 + $0xb0] sm:$0xff]   ;;  %v4349_v59 = vrot.slane %v4347_v18, 2 }
 0x2b8   :  { %4893 = vmatprep.subr.bf16.mxu1 %v5120_v17  ;;  %v3377_v50 = vrot.slane %v3375_v23, 4  ;;  %v7587_v23 = vld [vmem:[#allocation29_spill] sm:$0xff]  ;;  %v7589_v18 = vld [vmem:[#allocation28_spill] sm:$0xff] }
 0x2b9   :  { %v3361_v51 = vor.u32 %v3360_v2, %v3357_v42  ;;  %v4353_v10 = vor.u32 %v4352_v30, %v4349_v59  ;;  %v3476_v2 = vrot.slane %v3474_v56, 3  ;;  %vm7588_vm13 = vcmp.ne.s16.totalorder %v7587_v23, 0  ;;  %v7593_v59 = vld [vmem:[#allocation30_spill] sm:$0xff] }
 0x2ba   :  { %v3378_v3 = vor.u32 %v3377_v50, %v3374_v19  ;;  %v3663_v21 = vsel %vm7588_vm13, %v6883_v1, 0  ;;  %v7595_v19 = vld [vmem:[#allocation27_spill] sm:$0xff] }
 0x2bb   :  { %4894 = vmatpush3.bf16.msra.mxu1 %v5120_v17  ;;  %v4653_v17 = vcombine.low %v4326_v53, %v4327_v49  ;;  %v3370_v60 = vsel %vm7575_vm6, %v3361_v51, %v3369_v24  ;;  %v3480_v12 = vor.u32 %v3479_v20, %v3476_v2  ;;  %v3655_v53 = vld [vmem:[#allocation3 + $0x4] sm:$0xf]  ;;  %vm7590_vm6 = vcmp.ne.s16.totalorder %v7589_v18, 0  ;;  %v5131_v20 = vld [vmem:[%s7124_s5 + $0x100] sm:$0xff]  }
 0x2bc   :  { %4899 = vmatprep.subr.bf16.mxu1 %v5121_v8  ;;  %v3379_v15 = vsel %vm7580_vm7, %v3369_v24, %v3378_v3  ;;  %v7582_v24 = vld [vmem:[#allocation26_spill] sm:$0xff]  ;;  %v3662_v31 = vsel %vm7590_vm6, %v6873_v35, 0  ;;  %vm7598_vm7 = vcmp.ne.s16.totalorder %v7597_v40, 0  ;;  %vm7607_vm6 = vcmp.ne.s16.totalorder %v6364_v9, 0  ;;  %v7028_v40 = vld [vmem:[#allocation3 + $0x14] sm:$0x3] }
 0x2bd   :  { %v4355_v34 = vshrl.u32 %v4653_v17, 16  ;;  %v4358_v58 = vshll.u32 %v4653_v17, 16  ;;  %v3489_v26 = vsel %vm7581_vm3, %v3480_v12, %v3488_v47  ;;  %vm7583_vm9 = vcmp.ne.s16.totalorder %v7582_v24, 0  ;;  %v5127_v17 = vld [vmem:[%s7124_s5 + $0xc8] sm:$0xff]  }
 0x2be   :  { %v3661_v49 = vsel %vm7583_vm9, %v6878_v36, 0  ;;  %v3776_v6 = vsel %vm7598_vm7, %v6883_v1, 0  ;;  %vm7599_vm3 = vsmask.f32 7424  ;;  %vm7601_vm9 = vcmp.ne.s16.totalorder %v7600_v13, 0 }
 0x2bf   :  { %v4357_v33 = vrot.slane %v4355_v34, 2  ;;  %v4360_v28 = vrot.slane %v4358_v58, 3  ;;  %v5128_v34 = vld [vmem:[%s7124_s5 + $0xd0] sm:$0xff]   ;;  %v4611_v58 = vcombine.low %v3662_v31, %v3663_v21  ;;  %v3775_v32 = vsel %vm7601_vm9, %v6873_v35, 0  ;;  %vm7614_vm7 = vmmov %vm7599_vm3 }
 0x2c0   :  { %v4618_v3 = vcombine.low %v3775_v32, %v3776_v6  ;;  %v7618_v6 = vld [vmem:[#allocation40_spill] sm:$0xff] }
 0x2c1   :  { %v4361_v42 = vor.u32 %v4360_v28, %v4357_v33  ;;  %v3690_v46 = vshll.u32 %v4611_v58, 16  ;;  %v3694_v12 = vshrl.u32 %v4611_v58, 16 }
 0x2c2   :  { %4896 = vmatmul.mubr.msk.bf16.vlgmr.msra.gmra.mrb[0].mxu1 %vm2831_vm11, %v3259_v48 }
 0x2c3   :  { %4900 = vmatpush3.bf16.msra.mxu1 %v5121_v8  ;;  %4903 = vmatprep.mubr.msk.bf16.mxu1 %vm2831_vm11, %v3370_v60  ;;  %v4370_v8 = vor.u32 %v4369_v61, %v4366_v43  ;;  %v6915_v14 = vsel %vm7578_vm8, %v4353_v10, %v4361_v42  ;;  %v3491_v43 = vshrl.u32 %v4599_v27, 16  ;;  %v3494_v61 = vshll.u32 %v4599_v27, 16 }
 0x2c4   :  { %4901 = vmatprep.subr.bf16.mxu1 %v5122_v7  ;;  %vm7594_vm8 = vcmp.ne.s16.totalorder %v7593_v59, 0  ;;  %v3692_v57 = vrot.slane %v3690_v46, 1 }
 0x2c5   :  { %v6918_v0 = vsel %vm7579_vm14, %v4361_v42, %v4370_v8  ;;  %v3493_v51 = vrot.slane %v3491_v43, 3  ;;  %v3496_v4 = vrot.slane %v3494_v61, 4  ;;  %v3773_v30 = vsel %vm7594_vm8, %v3655_v53, 0  ;;  %v5130_v8 = vld [vmem:[%s7124_s5 + $0xd8] sm:$0xff]  }
 0x2c6   :  { %vm7596_vm14 = vnez %v7595_v19  ;;  %v3696_v43 = vor.u32 %v3694_v12, %v3692_v57  ;;  %vm7611_vm8 = vcmp.ne.s16.totalorder %v6396_v45, 0  ;;  %v7623_v12 = vld [vmem:[#allocation38_spill] sm:$0xff] }
 0x2c7   :  { %4902 = vmatpush3.bf16.msra.mxu1 %v5122_v7  ;;  %v3497_v48 = vor.u32 %v3496_v4, %v3493_v51  ;;  %v7584_v7 = vld [vmem:[#allocation25_spill] sm:$0xff] }
 0x2c8   :  { %4907 = vmatprep.subr.bf16.mxu1 %v5123_v44  ;;  %vm7585_vm4 = vcmp.ne.s16.totalorder %v7584_v7, 0  ;;  %v7605_v7 = vld [vmem:[#allocation35_spill] sm:$0xff] }
 0x2c9   :  { %v3660_v29 = vsel %vm7585_vm4, %v3655_v53, 0  ;;  %v3498_v60 = vsel %vm7586_vm10, %v3488_v47, %v3497_v48  ;;  %v5132_v53 = vld [vmem:[%s7124_s5 + $0x108] sm:$0xff]   ;;  %vm7603_vm4 = vmmov %vm7599_vm3  ;;  %vm7606_vm13 = vcmp.ne.s16.totalorder %v7605_v7, 0 }
 0x2ca   :  { %v4610_v39 = vcombine.low %v3660_v29, %v3661_v49  ;;  %v3886_v49 = vld [vmem:[#allocation3 + $0x4] sm:$0xe]  ;;  %vm7604_vm10 = vmmov %vm7599_vm3  ;;  %v3888_v29 = vsel %vm7606_vm13, %v6878_v36, 0  ;;  %vm7624_vm13 = vcmp.ne.s16.totalorder %v7623_v12, 0 }
 0x2cb   :  { %v3887_v21 = vsel %vm6300_vm5, %v3886_v49, 0  ;;  %vm7612_vm5 = vcmp.ne.s16.totalorder %v6346_v41, 0 }
 0x2cc   :  { %v3685_v16 = vshll.u32 %v4610_v39, 16  ;;  %v3683_v38 = vshrl.u32 %v4610_v39, 16  ;;  %v3890_v39 = vsel %vm7607_vm6, %v6883_v1, 0  ;;  %v4624_v18 = vcombine.low %v3887_v21, %v3888_v29  ;;  %v5137_v21 = vld [vmem:[%s7124_s5 + $0x150] sm:$0xff]  }
 0x2cd   :  { %v3986_v63 = vsel %vm7612_vm5, %v3886_v49, 0 }
 0x2ce   :  { %4904 = vmatmul.mubr.msk.bf16.vlgmr.msra.gmra.mrb[0].mxu1 %vm2831_vm11, %v3379_v15  ;;  %v3687_v56 = vrot.slane %v3685_v16, 1  ;;  %v3803_v15 = vshll.u32 %v4618_v3, 16 }
 0x2cf   :  { %4908 = vmatpush3.bf16.msra.mxu1 %v5123_v44  ;;  %4911 = vmatprep.mubr.msk.bf16.mxu1 %vm2831_vm11, %v3489_v26  ;;  %v3774_v44 = vsel %vm7592_vm0, %v6878_v36, 0  ;;  %vm7610_vm0 = vcmp.ne.s16.totalorder %v6390_v11, 0  ;;  %v5134_v11 = vld [vmem:[%s7124_s5 + $0x118] sm:$0xff]  }
 0x2d0   :  { %4909 = vmatprep.subr.bf16.mxu1 %v5124_v52  ;;  %v3688_v33 = vor.u32 %v3687_v56, %v3683_v38  ;;  %v4617_v28 = vcombine.low %v3773_v30, %v3774_v44  ;;  %v3805_v4 = vrot.slane %v3803_v15, 1  ;;  %v3987_v58 = vsel %vm7610_vm0, %v6878_v36, 0  ;;  %v7625_v15 = vld [vmem:[#allocation41_spill] sm:$0xff] }
 0x2d1   :  { %v3989_v56 = vsel %vm7611_vm8, %v6883_v1, 0  ;;  %v4631_v59 = vcombine.low %v3986_v63, %v3987_v58  ;;  %vm7626_vm6 = vcmp.ne.s16.totalorder %v7625_v15, 0  ;;  %v4109_v63 = vsel %vm6525_vm12, %v7028_v40, 0 }
 0x2d2   :  { %v3693_v10 = vsel %vm7599_vm3, %v3688_v33, %v3692_v57  ;;  %v3798_v42 = vshll.u32 %v4617_v28, 16  ;;  %vm7615_vm3 = vcmask 1046528   ;;  %vm7632_vm12 = vcmp.ne.s16.totalorder %v6588_v5, 0 }
 0x2d3   :  { %4910 = vmatpush3.bf16.msra.mxu1 %v5124_v52  ;;  %v3796_v52 = vshrl.u32 %v4617_v28, 16  ;;  %v4009_v41 = vshrl.u32 %v4631_v59, 16  ;;  %v4012_v19 = vshll.u32 %v4631_v59, 16  ;;  %v5138_v59 = vld [vmem:[%s7124_s5 + $0x158] sm:$0xff]  }
 0x2d4   :  { %4915 = vmatprep.subr.bf16.mxu1 %v5125_v62  ;;  %v3800_v27 = vrot.slane %v3798_v42, 1 }
 0x2d5   :  { %v4011_v42 = vrot.slane %v4009_v41, 1  ;;  %v7633_v41 = vld [vmem:[#allocation44_spill] sm:$0xff] }
 0x2d6   :  { %v3801_v61 = vor.u32 %v3800_v27, %v3796_v52  ;;  %v4105_v52 = vsel %vm7624_vm13, %v3886_v49, 0  ;;  %vm7634_vm5 = vcmp.ne.s16.totalorder %v7633_v41, 0 }
 0x2d8   :  { %v3806_v48 = vsel %vm7604_vm10, %v3801_v61, %v3805_v4 }
 0x2da   :  { %4912 = vmatmul.mubr.msk.bf16.vlgmr.msra.gmra.mrb[0].mxu1 %vm2831_vm11, %v3498_v60  ;;  %v5133_v60 = vld [vmem:[%s7124_s5 + $0x110] sm:$0xff]  }
 0x2db   :  { %4916 = vmatpush3.bf16.msra.mxu1 %v5125_v62  ;;  %4919 = vmatprep.mubr.msk.bf16.mxu1 %vm2831_vm11, %v4604_v37  ;;  %v6956_v37 = vld [vmem:[#allocation3 + $0x14] sm:$0x1] }
 0x2dc   :  { %4917 = vmatprep.subr.bf16.mxu1 %v5127_v17  ;;  %v3664_v50 = vsel %vm7596_vm14, %v6956_v37, 0  ;;  %v3777_v51 = vsel %vm6222_vm15, %v6956_v37, 0  ;;  %vm7609_vm15 = vcmp.ne.s16.totalorder %v6360_v55, 0  ;;  %v3909_v55 = vrot.slane %v4624_v18, 1 }
 0x2dd   :  { %v4612_v2 = vcombine.low %v3664_v50, %v3664_v50  ;;  %v3889_v16 = vsel %vm7609_vm15, %v6873_v35, 0  ;;  %vm7613_vm14 = vcmp.ne.s16.totalorder %v6412_v25, 0  ;;  %v7616_v25 = vld [vmem:[#allocation37_spill] sm:$0xff]  ;;  %vm7627_vm15 = vmmov %vm7615_vm3 }
 0x2de   :  { %v4625_v31 = vcombine.low %v3889_v16, %v3890_v39  ;;  %v3988_v46 = vsel %vm7613_vm14, %v6873_v35, 0  ;;  %vm7617_vm9 = vcmp.ne.s16.totalorder %v7616_v25, 0  ;;  %v4225_v25 = vsel %vm6623_vm1, %v6885_v22, 0 }
 0x2df   :  { %4918 = vmatpush3.bf16.msra.mxu1 %v5127_v17  ;;  %v3698_v47 = vshll.u32 %v4612_v2, 16  ;;  %v4619_v17 = vcombine.low %v3777_v51, %v3777_v51  ;;  %v4632_v30 = vcombine.low %v3988_v46, %v3989_v56  ;;  %v3891_v57 = vsel %vm7617_vm9, %v6956_v37, 0 }
 0x2e0   :  { %4923 = vmatprep.subr.bf16.mxu1 %v5128_v34  ;;  %v3910_v38 = vrot.slane %v4625_v31, 1  ;;  %v4014_v2 = vrot.slane %v4012_v19, 2  ;;  %v4228_v19 = vsel %vm7634_vm5, %v6883_v1, 0  ;;  %vm7639_vm1 = vcmask 1045504  }
 0x2e1   :  { %v3700_v26 = vrot.slane %v3698_v47, 1  ;;  %v3811_v9 = vshll.u32 %v4619_v17, 16  ;;  %v4017_v50 = vshrl.u32 %v4632_v30, 16  ;;  %v3990_v47 = vsel %vm6458_vm2, %v7028_v40, 0  ;;  %vm7642_vm9 = vmmov %vm7639_vm1 }
 0x2e2   :  { %v3911_v28 = vsel %vm7615_vm3, %v3909_v55, %v3910_v38  ;;  %vm7628_vm2 = vsmask.f32 6400 }
 0x2e3   :  { %v3701_v24 = vsel %vm7603_vm4, %v3696_v43, %v3700_v26  ;;  %v3813_v33 = vrot.slane %v3811_v9, 1  ;;  %vm7619_vm4 = vcmp.ne.s16.totalorder %v7618_v6, 0  ;;  %v4019_v13 = vrot.slane %v4017_v50, 1  ;;  %vm7630_vm0 = vmmov %vm7628_vm2  ;;  %v5139_v50 = vld [vmem:[%s7124_s5 + $0x160] sm:$0xff]  }
 0x2e4   :  { %v4107_v43 = vsel %vm7626_vm6, %v6873_v35, 0  ;;  %v4015_v26 = vor.u32 %v4014_v2, %v4011_v42  ;;  %vm7631_vm8 = vmmov %vm7630_vm0 }
 0x2e6   :  { %4920 = vmatmul.mubr.msk.bf16.vlgmr.msra.gmra.mrb[0].mxu1 %vm2831_vm11, %v4605_v54  ;;  %v4020_v54 = vshll.u32 %v4632_v30, 16 }
 0x2e7   :  { %4924 = vmatpush3.bf16.msra.mxu1 %v5128_v34  ;;  %4927 = vmatprep.mubr.msk.bf16.mxu1 %vm2831_vm11, %v3693_v10  ;;  %v3807_v34 = vshrl.u32 %v4618_v3, 16  ;;  %v4106_v10 = vsel %vm7619_vm4, %v6878_v36, 0  ;;  %v7620_v3 = vld [vmem:[#allocation42_spill] sm:$0xff]  ;;  %vm7643_vm4 = vcmask 130048  }
 0x2e8   :  { %4925 = vmatprep.subr.bf16.mxu1 %v5130_v8  ;;  %v4022_v32 = vrot.slane %v4020_v54, 2  ;;  %vm7621_vm10 = vcmp.ne.s16.totalorder %v7620_v3, 0  ;;  %v4638_v61 = vcombine.low %v4105_v52, %v4106_v10  ;;  %v5141_v3 = vld [vmem:[%s7124_s5 + $0x170] sm:$0xff]   ;;  %vm7646_vm13 = vmmov %vm7643_vm4 }
 0x2e9   :  { %v3809_v44 = vor.u32 %v3807_v34, %v3805_v4  ;;  %v4108_v37 = vsel %vm7621_vm10, %v6883_v1, 0  ;;  %vm7644_vm10 = vmmov %vm7643_vm4 }
 0x2ea   :  { %v4023_v62 = vor.u32 %v4022_v32, %v4019_v13  ;;  %v4639_v51 = vcombine.low %v4107_v43, %v4108_v37  ;;  %v4128_v7 = vshrl.u32 %v4638_v61, 16  ;;  %v4131_v29 = vshll.u32 %v4638_v61, 16  ;;  %v5140_v13 = vld [vmem:[%s7124_s5 + $0x168] sm:$0xff]  }
 0x2eb   :  { %4926 = vmatpush3.bf16.msra.mxu1 %v5130_v8  ;;  %v3814_v45 = vsel %vm7614_vm7, %v3809_v44, %v3813_v33  ;;  %v5135_v8 = vld [vmem:[%s7124_s5 + $0x120] sm:$0xff]   ;;  %vm7638_vm7 = vmmov %vm7630_vm0 }
 0x2ec   :  { %4931 = vmatprep.subr.bf16.mxu1 %v5131_v20  ;;  %v4024_v49 = vsel %vm7628_vm2, %v4015_v26, %v4023_v62  ;;  %v4136_v39 = vshrl.u32 %v4639_v51, 16  ;;  %v4139_v17 = vshll.u32 %v4639_v51, 16  ;;  %v4130_v16 = vrot.slane %v4128_v7, 1 }
 0x2ed   :  { %v4133_v18 = vrot.slane %v4131_v29, 2 }
 0x2ee   :  { %v4138_v31 = vrot.slane %v4136_v39, 1  ;;  %v4141_v9 = vrot.slane %v4139_v17, 2 }
 0x2ef   :  { %v4134_v44 = vor.u32 %v4133_v18, %v4130_v16 }
 0x2f0   :  { %v4142_v55 = vor.u32 %v4141_v9, %v4138_v31 }
 0x2f2   :  { %4928 = vmatmul.mubr.msk.bf16.vlgmr.msra.gmra.mrb[0].mxu1 %vm2831_vm11, %v3701_v24  ;;  %v5136_v24 = vld [vmem:[%s7124_s5 + $0x128] sm:$0xff]   ;;  %v4143_v33 = vsel %vm7631_vm8, %v4134_v44, %v4142_v55 }
 0x2f3   :  { %4932 = vmatpush3.bf16.msra.mxu1 %v5131_v20  ;;  %4935 = vmatprep.mubr.msk.bf16.mxu1 %vm2831_vm11, %v3806_v48  ;;  %v4626_v20 = vcombine.low %v3891_v57, %v3891_v57  ;;  %v7636_v57 = vld [vmem:[#allocation45_spill] sm:$0xff] }
 0x2f4   :  { %4933 = vmatprep.subr.bf16.mxu1 %v5132_v53  ;;  %vm7637_vm14 = vcmp.ne.s16.totalorder %v7636_v57, 0 }
 0x2f5   :  { %v3912_v4 = vrot.slane %v4626_v20, 1 }
 0x2f7   :  { %4934 = vmatpush3.bf16.msra.mxu1 %v5132_v53  ;;  %v4633_v53 = vcombine.low %v3990_v47, %v3990_v47  ;;  %v3913_v48 = vsel %vm7627_vm15, %v3910_v38, %v3912_v4  ;;  %v4640_v38 = vcombine.low %v4109_v63, %v4109_v63  ;;  %v5142_v47 = vld [vmem:[%s7124_s5 + $0x178] sm:$0xff]  }
 0x2f8   :  { %4939 = vmatprep.subr.bf16.mxu1 %v5133_v60 }
 0x2f9   :  { %v4029_v23 = vshll.u32 %v4633_v53, 16 }
 0x2fb   :  { %v4031_v58 = vrot.slane %v4029_v23, 2 }
 0x2fe   :  { %4936 = vmatmul.mubr.msk.bf16.vlgmr.msra.gmra.mrb[0].mxu1 %vm2831_vm11, %v3814_v45  ;;  %v4148_v45 = vshll.u32 %v4640_v38, 16 }
 0x2ff   :  { %4940 = vmatpush3.bf16.msra.mxu1 %v5133_v60  ;;  %4943 = vmatprep.mubr.msk.bf16.mxu1 %vm2831_vm11, %v3911_v28  ;;  %v4026_v60 = vshrl.u32 %v4633_v53, 16  ;;  %v4226_v28 = vsel %vm7632_vm12, %v6878_v36, 0 }
 0x300   :  { %4941 = vmatprep.subr.bf16.mxu1 %v5134_v11  ;;  %v4645_v6 = vcombine.low %v4225_v25, %v4226_v28  ;;  %v4150_v10 = vrot.slane %v4148_v45, 2 }
 0x301   :  { %v4028_v34 = vrot.slane %v4026_v60, 1 }
 0x302   :  { %v4247_v1 = vrot.slane %v4645_v6, 2 }
 0x303   :  { %4942 = vmatpush3.bf16.msra.mxu1 %v5134_v11  ;;  %v4032_v46 = vor.u32 %v4031_v58, %v4028_v34  ;;  %v4145_v11 = vshrl.u32 %v4640_v38, 16 }
 0x304   :  { %4947 = vmatprep.subr.bf16.mxu1 %v5135_v8 }
 0x305   :  { %v4033_v30 = vsel %vm7630_vm0, %v4023_v62, %v4032_v46  ;;  %v4147_v36 = vrot.slane %v4145_v11, 1 }
 0x307   :  { %v4151_v2 = vor.u32 %v4150_v10, %v4147_v36 }
 0x309   :  { %v4152_v32 = vsel %vm7638_vm7, %v4142_v55, %v4151_v2 }
 0x30a   :  { %4944 = vmatmul.mubr.msk.bf16.vlgmr.msra.gmra.mrb[0].mxu1 %vm2831_vm11, %v3913_v48 }
 0x30b   :  { %4948 = vmatpush3.bf16.msra.mxu1 %v5135_v8  ;;  %4951 = vmatprep.mubr.msk.bf16.mxu1 %vm2831_vm11, %v4024_v49  ;;  %v4227_v8 = vsel %vm7637_vm14, %v6873_v35, 0  ;;  %v7640_v35 = vld [vmem:[#allocation47_spill] sm:$0xff] }
 0x30c   :  { %4949 = vmatprep.subr.bf16.mxu1 %v5136_v24  ;;  %v4646_v5 = vcombine.low %v4227_v8, %v4228_v19  ;;  %vm7641_vm3 = vcmp.ne.s16.totalorder %v7640_v35, 0 }
 0x30d   :  { %v4229_v20 = vsel %vm7641_vm3, %v7028_v40, 0  ;;  %v4659_v40 = vld [vmem:[%s7126_s6] ss:$0 sm:$0xff] }
 0x30e   :  { %v4248_v42 = vrot.slane %v4646_v5, 2  ;;  %v4647_v37 = vcombine.low %v4229_v20, %v4229_v20 }
 0x30f   :  { %4950 = vmatpush3.bf16.msra.mxu1 %v5136_v24 }
 0x310   :  { %4955 = vmatprep.subr.bf16.mxu1 %v5137_v21  ;;  %v4249_v22 = vsel %vm7639_vm1, %v4247_v1, %v4248_v42  ;;  %v4250_v27 = vrot.slane %v4647_v37, 2 }
 0x312   :  { %v4251_v12 = vsel %vm7642_vm9, %v4248_v42, %v4250_v27 }
 0x316   :  { %4952 = vmatmul.mubr.msk.bf16.vlgmr.msra.gmra.mrb[0].mxu1 %vm2831_vm11, %v4033_v30 }
 0x317   :  { %4956 = vmatpush3.bf16.msra.mxu1 %v5137_v21  ;;  %4959 = vmatprep.mubr.msk.bf16.mxu1 %vm2831_vm11, %v4143_v33 }
 0x318   :  { %4957 = vmatprep.subr.bf16.mxu1 %v5138_v59 }
 0x31b   :  { %4958 = vmatpush3.bf16.msra.mxu1 %v5138_v59 }
 0x31c   :  { %4963 = vmatprep.subr.bf16.mxu1 %v5139_v50 }
 0x322   :  { %4960 = vmatmul.mubr.msk.bf16.vlgmr.msra.gmra.mrb[0].mxu1 %vm2831_vm11, %v4152_v32 }
 0x323   :  { %4964 = vmatpush3.bf16.msra.mxu1 %v5139_v50  ;;  %4967 = vmatprep.mubr.msk.bf16.mxu1 %vm2831_vm11, %v4249_v22 }
 0x324   :  { %4965 = vmatprep.subr.bf16.mxu1 %v5140_v13 }
 0x327   :  { %4966 = vmatpush3.bf16.msra.mxu1 %v5140_v13 }
 0x328   :  { %4971 = vmatprep.subr.bf16.mxu1 %v5141_v3 }
 0x32e   :  { %4968 = vmatmul.mubr.msk.bf16.vlgmr.msra.gmra.mrb[0].mxu1 %vm2831_vm11, %v4251_v12 }
 0x32f   :  { %4972 = vmatpush3.bf16.msra.mxu1 %v5141_v3  ;;  %4975 = vmatprep.mubr.msk.bf16.mxu1 %vm2831_vm11, %v6915_v14 }
 0x330   :  { %4973 = vmatprep.subr.bf16.mxu1 %v5142_v47 }
 0x333   :  { %4974 = vmatpush3.bf16.msra.mxu1 %v5142_v47 }
 0x33a   :  { %4976 = vmatmul.mubr.msk.bf16.vlgmr.msra.gmra.mrb[0].mxu1 %vm2831_vm11, %v6918_v0  ;;  %vm7645_vm11 = vmmov %vm7643_vm4 }
 0x40d   :  { %v4977_v52 = vpop.f32.mrb[0].mxu1 }
 0x40e   :  { %v4451_v15 = vadd.f32 %v4977_v52, %v4659_v40  ;;  %v4424_v43 = vpop.f32.mrb[1].mxu1 }
 0x40f   :  { %v4449_v61 = vadd.f32 %v4659_v40, %v4424_v43  ;;  %v4978_v26 = vpop.f32.mrb[2].mxu1 }
 0x410   :  { %4455 = vst.msk [vmem:[%s7127_s7 + $0x10] sm:$0xff] %vm7643_vm4, %v4451_v15  ;;  %v4452_v14 = vadd.f32 %v4978_v26, %v4659_v40  ;;  %v4427_v62 = vpop.f32.mrb[3].mxu1 }
 0x411   :  { %4453 = vst.msk [vmem:[%s7127_s7] sm:$0xff] %vm7644_vm10, %v4449_v61  ;;  %v4450_v0 = vadd.f32 %v4659_v40, %v4427_v62 }
 0x412   :  { %4456 = vst.msk [vmem:[%s7127_s7 + $0x18] sm:$0xff] %vm7645_vm11, %v4452_v14 }
 0x413   :  { %4454 = vst.msk [vmem:[%s7127_s7 + $0x8] sm:$0xff] %vm7646_vm13, %v4450_v0 }

</bundles_post_ra>
